<compile_context>
chip_gen: v5e
topology: v5e:2x2
jax: 0.10.0
libtpu: 0.0.40
codegen_flags: <defaults>
</compile_context>

<pallas_src>
import numpy as np
import jax
import jax.numpy as jnp
from jax.experimental import pallas as pl
from jax.experimental.pallas import tpu as pltpu


# ----------------------------------------------------------------------------
# Static architecture description: (H, W, Cin, Cout, has_bn, pool_relu)
# ----------------------------------------------------------------------------
def _net_cfg(channels):
    return [
        (32, 32, channels, 4, False, True),   # conv1              -> pool -> relu
        (16, 16, 4, 6, True, False),          # conv2 + bn1         (no pool/relu)
        (16, 16, 6, 8, True, True),           # conv3 + bn2         -> pool -> relu
        (8, 8, 8, 10, True, True),            # conv4 + bn3         -> pool -> relu
        (4, 4, 10, 12, True, True),           # conv5 + bn (+drop)  -> pool -> relu
    ]


# ----------------------------------------------------------------------------
# Parameter initialization (mirrors the PyTorch module, numpy / deterministic)
# ----------------------------------------------------------------------------
def init_params(seed, no_classes=10, channels=3):
    rng = np.random.default_rng(seed)
    cfg = _net_cfg(channels)
    params = {"convs": [], "bns": []}
    for (_, _, cin, cout, has_bn, _) in cfg:
        bound = 1.0 / np.sqrt(cin * 25)
        w = rng.uniform(-bound, bound, (cout, cin, 5, 5)).astype(np.float32)
        b = rng.uniform(-bound, bound, (cout,)).astype(np.float32)
        params["convs"].append((w, b))
        if has_bn:
            gamma = (1.0 + 0.1 * rng.standard_normal(cout)).astype(np.float32)
            beta = (0.1 * rng.standard_normal(cout)).astype(np.float32)
            mean = (0.05 * rng.standard_normal(cout)).astype(np.float32)
            var = (0.9 + 0.1 * np.abs(rng.standard_normal(cout))).astype(np.float32)
            params["bns"].append((gamma, beta, mean, var))
        else:
            params["bns"].append(None)
    b1 = 1.0 / np.sqrt(48.0)
    params["fc1_w"] = rng.uniform(-b1, b1, (48, 100)).astype(np.float32)
    params["fc1_b"] = rng.uniform(-b1, b1, (1, 100)).astype(np.float32)
    b2 = 1.0 / np.sqrt(100.0)
    params["fc_w"] = rng.uniform(-b2, b2, (100, no_classes)).astype(np.float32)
    params["fc_b"] = rng.uniform(-b2, b2, (1, no_classes)).astype(np.float32)
    return params


# ----------------------------------------------------------------------------
# Constant matrices consumed by the fused kernel (built once, in numpy)
# ----------------------------------------------------------------------------
def _fold_bn(w, b, bn, eps=1e-5):
    if bn is None:
        return w, b
    gamma, beta, mean, var = bn
    s = gamma / np.sqrt(var + eps)
    return w * s[:, None, None, None], (b - mean) * s + beta


def _banded_conv_weights(w, W):
    # w: (Cout, Cin, 5, 5) -> (5, (W+4)*Cin, W*Cout), one banded matrix per kh.
    cout, cin = w.shape[0], w.shape[1]
    wt = np.transpose(w, (2, 3, 1, 0))            # (kh, kw, Cin, Cout)
    band = np.zeros((5, (W + 4) * cin, W * cout), np.float32)
    for kh in range(5):
        for kw in range(5):
            for wo in range(W):
                band[kh, (wo + kw) * cin:(wo + kw + 1) * cin,
                     wo * cout:(wo + 1) * cout] = wt[kh, kw]
    return band


def _pool_select_mats(N, H, W, C):
    # 2x2 max-pool as two column selections + two row selections; the selection
    # matrices also re-insert the next layer's zero padding (rows and columns).
    Ho, Wo = H // 2, W // 2
    col_e = np.zeros((W * C, (Wo + 4) * C), np.float32)
    col_o = np.zeros_like(col_e)
    for wo in range(Wo):
        for c in range(C):
            col_e[(2 * wo) * C + c, (wo + 2) * C + c] = 1.0
            col_o[(2 * wo + 1) * C + c, (wo + 2) * C + c] = 1.0
    row_e = np.zeros((N * (Ho + 4) + 4, N * (H + 4)), np.float32)
    row_o = np.zeros_like(row_e)
    for n in range(N):
        for ho in range(Ho):
            row_e[n * (Ho + 4) + 2 + ho, n * (H + 4) + 2 * ho] = 1.0
            row_o[n * (Ho + 4) + 2 + ho, n * (H + 4) + 2 * ho + 1] = 1.0
    return col_e, col_o, row_e, row_o


def _place_mats(N, H, W, C):
    # No pooling (conv2): just re-insert zero padding around the conv output.
    col = np.zeros((W * C, (W + 4) * C), np.float32)
    for w in range(W):
        for c in range(C):
            col[w * C + c, (w + 2) * C + c] = 1.0
    row = np.zeros((N * (H + 4) + 4, N * (H + 4)), np.float32)
    for n in range(N):
        for h in range(H):
            row[n * (H + 4) + 2 + h, n * (H + 4) + h] = 1.0
    return col, row


def _head_mats(N, fc1_w):
    # Final feature map is 2x2x12 in the padded buffer (N*6+4, 6*12).  Fold the
    # NCHW-order flatten into two row selections and two fc1 sub-matrices.
    C, Hf, Wf = 12, 2, 2
    w1h = np.zeros((Hf, (Wf + 4) * C, fc1_w.shape[1]), np.float32)
    rsel = np.zeros((Hf, N, N * (Hf + 4) + 4), np.float32)
    for ho in range(Hf):
        for wo in range(Wf):
            for c in range(C):
                w1h[ho, (wo + 2) * C + c, :] = fc1_w[c * Hf * Wf + ho * Wf + wo, :]
        for n in range(N):
            rsel[ho, n, n * (Hf + 4) + 2 + ho] = 1.0
    return w1h, rsel


# ----------------------------------------------------------------------------
# The fused Pallas kernel
# ----------------------------------------------------------------------------
def _make_kernel(N, cfg):
    def kernel(*refs):
        it = iter(refs)
        src = next(it)                                   # padded input image
        per_layer = []
        for (_, _, _, _, _, pool_relu) in cfg:
            wband = next(it)
            brow = next(it)
            trans = tuple(next(it) for _ in range(4 if pool_relu else 2))
            per_layer.append((wband, brow, trans, pool_relu))
        w1h = next(it)
        rsel = next(it)
        b1 = next(it)
        w2 = next(it)
        b2 = next(it)
        out_ref = next(it)
        acts = list(it)                                  # per-layer VMEM scratch

        # ---- conv / pool chain: everything stays in VMEM --------------------
        for li, ((H, W, _, _, _, _), (wband, brow, trans, pool_relu)) in enumerate(
                zip(cfg, per_layer)):
            racc = N * (H + 4)
            # 5x5 conv = 5 banded matmuls over row-shifted views (in-VMEM im2col)
            acc = jnp.dot(src[pl.ds(0, racc), :], wband[0],
                          preferred_element_type=jnp.float32)
            for kh in range(1, 5):
                acc += jnp.dot(src[pl.ds(kh, racc), :], wband[kh],
                               preferred_element_type=jnp.float32)
            acc += brow[...]                             # conv (+ folded BN) bias

            if pool_relu:
                ce, co, re_, ro = trans
                m = jnp.maximum(
                    jnp.dot(acc, ce[...], preferred_element_type=jnp.float32),
                    jnp.dot(acc, co[...], preferred_element_type=jnp.float32))
                m = jnp.maximum(
                    jnp.dot(re_[...], m, preferred_element_type=jnp.float32),
                    jnp.dot(ro[...], m, preferred_element_type=jnp.float32))
                nxt = jnp.maximum(m, 0.0)                # ReLU (padding stays 0)
            else:
                cpm, rpm = trans                         # conv2: no pool / relu
                nxt = jnp.dot(rpm[...],
                              jnp.dot(acc, cpm[...],
                                      preferred_element_type=jnp.float32),
                              preferred_element_type=jnp.float32)

            acts[li][...] = nxt
            src = acts[li]

        # ---- head: NCHW flatten folded into rsel/w1h, fc1+relu+fc+log_softmax
        p = acts[-1][...]
        h = (jnp.dot(jnp.dot(rsel[0], p, preferred_element_type=jnp.float32),
                     w1h[0], preferred_element_type=jnp.float32)
             + jnp.dot(jnp.dot(rsel[1], p, preferred_element_type=jnp.float32),
                       w1h[1], preferred_element_type=jnp.float32)
             + b1[...])
        h = jnp.maximum(h, 0.0)
        # TODO(synk): F.dropout / Dropout2d are identity in eval mode.
        z = jnp.dot(h, w2[...], preferred_element_type=jnp.float32) + b2[...]
        z = z - jnp.max(z, axis=-1, keepdims=True)
        out_ref[...] = z - jnp.log(jnp.sum(jnp.exp(z), axis=-1, keepdims=True))

    return kernel


# ----------------------------------------------------------------------------
# Wrapper: build constants once, lay out the input, single pallas_call
# ----------------------------------------------------------------------------
def build_fused_net(params, N, no_classes, channels):
    cfg = _net_cfg(channels)
    ins = []
    scratch = []
    for li, (H, W, _cin, cout, _bn, pool_relu) in enumerate(cfg):
        w, b = _fold_bn(*params["convs"][li], params["bns"][li])
        ins.append(_banded_conv_weights(w, W))
        ins.append(np.tile(np.asarray(b, np.float32), W)[None, :])     # (1, W*Cout)
        if pool_relu:
            ce, co, re_, ro = _pool_select_mats(N, H, W, cout)
            ins += [ce, co, re_, ro]
            rows, cols = N * (H // 2 + 4) + 4, (W // 2 + 4) * cout
        else:
            cpm, rpm = _place_mats(N, H, W, cout)
            ins += [cpm, rpm]
            rows, cols = N * (H + 4) + 4, (W + 4) * cout
        scratch.append(pltpu.VMEM((rows, cols), jnp.float32))
    w1h, rsel = _head_mats(N, params["fc1_w"])
    ins += [w1h, rsel, params["fc1_b"], params["fc_w"], params["fc_b"]]
    ins = [jnp.asarray(a, jnp.float32) for a in ins]

    kernel = _make_kernel(N, cfg)
    H0, W0, C0 = cfg[0][0], cfg[0][1], cfg[0][2]

    @jax.jit
    def forward(x_nchw):
        # NCHW -> padded, channel-interleaved 2-D layout; the only XLA-side prep.
        x = jnp.transpose(x_nchw, (0, 2, 3, 1)).astype(jnp.float32)
        x = jnp.pad(x, ((0, 0), (2, 2), (2, 2), (0, 0)))
        x = x.reshape(N * (H0 + 4), (W0 + 4) * C0)
        x = jnp.pad(x, ((0, 4), (0, 0)))                 # 4 extra zero rows
        return pl.pallas_call(
            kernel,
            out_shape=jax.ShapeDtypeStruct((N, no_classes), jnp.float32),
            scratch_shapes=scratch,
            compiler_params=pltpu.CompilerParams(
                vmem_limit_bytes=32 * 1024 * 1024),
        )(x, *ins)

    return forward


# ----------------------------------------------------------------------------
# Pure-numpy reference (eval-mode PyTorch semantics) for the self-check
# ----------------------------------------------------------------------------
def _np_forward(params, x_nchw, channels):
    cfg = _net_cfg(channels)
    x = np.transpose(np.asarray(x_nchw, np.float32), (0, 2, 3, 1))
    for li, (H, W, _cin, cout, _has_bn, pool_relu) in enumerate(cfg):
        w, b = params["convs"][li]
        xp = np.pad(x, ((0, 0), (2, 2), (2, 2), (0, 0)))
        y = np.zeros(x.shape[:3] + (cout,), np.float32)
        for kh in range(5):
            for kw in range(5):
                y += xp[:, kh:kh + H, kw:kw + W, :] @ w[:, :, kh, kw].T
        y += b
        bn = params["bns"][li]
        if bn is not None:
            gamma, beta, mean, var = bn
            y = (y - mean) / np.sqrt(var + 1e-5) * gamma + beta
        if pool_relu:
            Nb, Hh, Ww, Cc = y.shape
            y = y.reshape(Nb, Hh // 2, 2, Ww // 2, 2, Cc).max(axis=(2, 4))
            y = np.maximum(y, 0.0)
        x = y
    feat = np.transpose(x, (0, 3, 1, 2)).reshape(x.shape[0], -1)   # NCHW flatten
    h = np.maximum(feat @ params["fc1_w"] + params["fc1_b"], 0.0)
    z = h @ params["fc_w"] + params["fc_b"]
    z = z - z.max(axis=-1, keepdims=True)
    return z - np.log(np.exp(z).sum(axis=-1, keepdims=True))


if __name__ == "__main__":
    no_classes, channels, batch = 10, 3, 2
    params = init_params(seed=0, no_classes=no_classes, channels=channels)

    # 32x32 spatial input so the flattened feature size matches featureSize == 48.
    x = jax.random.normal(jax.random.PRNGKey(0), (batch, channels, 32, 32),
                          dtype=jnp.float32)

    forward = build_fused_net(params, batch, no_classes, channels)
    out = jax.block_until_ready(forward(x))

    assert out.shape == (batch, no_classes)
    ref = _np_forward(params, np.asarray(x), channels)
    np.testing.assert_allclose(np.asarray(out), ref, atol=3e-2, rtol=0)
    # log_softmax rows must exponentiate-sum to 1.
    assert np.allclose(np.exp(np.asarray(out)).sum(-1), 1.0, atol=1e-4)
    print("KERNEL_OK")
</pallas_src>

<mosaic_0001>
module attributes {stable_mosaic.version = 11 : i64} {
  func.func @kernel(%arg0: memref<76x108xf32, #tpu.memory_space<vmem>>, %arg1: memref<5x108x128xf32, #tpu.memory_space<vmem>>, %arg2: memref<1x128xf32, #tpu.memory_space<vmem>>, %arg3: memref<128x80xf32, #tpu.memory_space<vmem>>, %arg4: memref<128x80xf32, #tpu.memory_space<vmem>>, %arg5: memref<44x72xf32, #tpu.memory_space<vmem>>, %arg6: memref<44x72xf32, #tpu.memory_space<vmem>>, %arg7: memref<5x80x96xf32, #tpu.memory_space<vmem>>, %arg8: memref<1x96xf32, #tpu.memory_space<vmem>>, %arg9: memref<96x120xf32, #tpu.memory_space<vmem>>, %arg10: memref<44x40xf32, #tpu.memory_space<vmem>>, %arg11: memref<5x120x128xf32, #tpu.memory_space<vmem>>, %arg12: memref<1x128xf32, #tpu.memory_space<vmem>>, %arg13: memref<128x96xf32, #tpu.memory_space<vmem>>, %arg14: memref<128x96xf32, #tpu.memory_space<vmem>>, %arg15: memref<28x40xf32, #tpu.memory_space<vmem>>, %arg16: memref<28x40xf32, #tpu.memory_space<vmem>>, %arg17: memref<5x96x80xf32, #tpu.memory_space<vmem>>, %arg18: memref<1x80xf32, #tpu.memory_space<vmem>>, %arg19: memref<80x80xf32, #tpu.memory_space<vmem>>, %arg20: memref<80x80xf32, #tpu.memory_space<vmem>>, %arg21: memref<20x24xf32, #tpu.memory_space<vmem>>, %arg22: memref<20x24xf32, #tpu.memory_space<vmem>>, %arg23: memref<5x80x48xf32, #tpu.memory_space<vmem>>, %arg24: memref<1x48xf32, #tpu.memory_space<vmem>>, %arg25: memref<48x72xf32, #tpu.memory_space<vmem>>, %arg26: memref<48x72xf32, #tpu.memory_space<vmem>>, %arg27: memref<16x16xf32, #tpu.memory_space<vmem>>, %arg28: memref<16x16xf32, #tpu.memory_space<vmem>>, %arg29: memref<2x72x100xf32, #tpu.memory_space<vmem>>, %arg30: memref<2x2x16xf32, #tpu.memory_space<vmem>>, %arg31: memref<1x100xf32, #tpu.memory_space<vmem>>, %arg32: memref<100x10xf32, #tpu.memory_space<vmem>>, %arg33: memref<1x10xf32, #tpu.memory_space<vmem>>, %arg34: memref<2x10xf32, #tpu.memory_space<vmem>>, %arg35: memref<44x80xf32, #tpu.memory_space<vmem>>, %arg36: memref<44x120xf32, #tpu.memory_space<vmem>>, %arg37: memref<28x96xf32, #tpu.memory_space<vmem>>, %arg38: memref<20x80xf32, #tpu.memory_space<vmem>>, %arg39: memref<16x72xf32, #tpu.memory_space<vmem>>) attributes {dimension_semantics = [], scalar_prefetch = 0 : i64, scratch_operands = 5 : i64, tpu.core_type = #tpu.core_type<tc>} {
    %c0 = arith.constant 0 : index
    %c0_0 = arith.constant 0 : index
    %0 = vector.load %arg0[%c0, %c0_0] : memref<76x108xf32, #tpu.memory_space<vmem>>, vector<72x108xf32>
    %c0_1 = arith.constant 0 : index
    %c0_2 = arith.constant 0 : index
    %c0_3 = arith.constant 0 : index
    %1 = vector.load %arg1[%c0_1, %c0_2, %c0_3] : memref<5x108x128xf32, #tpu.memory_space<vmem>>, vector<1x108x128xf32>
    %2 = vector.shape_cast %1 : vector<1x108x128xf32> to vector<108x128xf32>
    %cst = arith.constant dense<0.000000e+00> : vector<72x128xf32>
    %3 = tpu.matmul %0, %2, %cst {dimension_numbers = #tpu.dot_dimension_numbers<[1], [0], [0], [1], [0, 0, 1, 1], [], []>} : vector<72x108xf32>, vector<108x128xf32>, vector<72x128xf32> -> vector<72x128xf32>
    %c1 = arith.constant 1 : index
    %c0_4 = arith.constant 0 : index
    %4 = vector.load %arg0[%c1, %c0_4] : memref<76x108xf32, #tpu.memory_space<vmem>>, vector<72x108xf32>
    %c1_5 = arith.constant 1 : index
    %c0_6 = arith.constant 0 : index
    %c0_7 = arith.constant 0 : index
    %5 = vector.load %arg1[%c1_5, %c0_6, %c0_7] : memref<5x108x128xf32, #tpu.memory_space<vmem>>, vector<1x108x128xf32>
    %6 = vector.shape_cast %5 : vector<1x108x128xf32> to vector<108x128xf32>
    %cst_8 = arith.constant dense<0.000000e+00> : vector<72x128xf32>
    %7 = tpu.matmul %4, %6, %cst_8 {dimension_numbers = #tpu.dot_dimension_numbers<[1], [0], [0], [1], [0, 0, 1, 1], [], []>} : vector<72x108xf32>, vector<108x128xf32>, vector<72x128xf32> -> vector<72x128xf32>
    %8 = arith.addf %3, %7 : vector<72x128xf32>
    %c2 = arith.constant 2 : index
    %c0_9 = arith.constant 0 : index
    %9 = vector.load %arg0[%c2, %c0_9] : memref<76x108xf32, #tpu.memory_space<vmem>>, vector<72x108xf32>
    %c2_10 = arith.constant 2 : index
    %c0_11 = arith.constant 0 : index
    %c0_12 = arith.constant 0 : index
    %10 = vector.load %arg1[%c2_10, %c0_11, %c0_12] : memref<5x108x128xf32, #tpu.memory_space<vmem>>, vector<1x108x128xf32>
    %11 = vector.shape_cast %10 : vector<1x108x128xf32> to vector<108x128xf32>
    %cst_13 = arith.constant dense<0.000000e+00> : vector<72x128xf32>
    %12 = tpu.matmul %9, %11, %cst_13 {dimension_numbers = #tpu.dot_dimension_numbers<[1], [0], [0], [1], [0, 0, 1, 1], [], []>} : vector<72x108xf32>, vector<108x128xf32>, vector<72x128xf32> -> vector<72x128xf32>
    %13 = arith.addf %8, %12 : vector<72x128xf32>
    %c3 = arith.constant 3 : index
    %c0_14 = arith.constant 0 : index
    %14 = vector.load %arg0[%c3, %c0_14] : memref<76x108xf32, #tpu.memory_space<vmem>>, vector<72x108xf32>
    %c3_15 = arith.constant 3 : index
    %c0_16 = arith.constant 0 : index
    %c0_17 = arith.constant 0 : index
    %15 = vector.load %arg1[%c3_15, %c0_16, %c0_17] : memref<5x108x128xf32, #tpu.memory_space<vmem>>, vector<1x108x128xf32>
    %16 = vector.shape_cast %15 : vector<1x108x128xf32> to vector<108x128xf32>
    %cst_18 = arith.constant dense<0.000000e+00> : vector<72x128xf32>
    %17 = tpu.matmul %14, %16, %cst_18 {dimension_numbers = #tpu.dot_dimension_numbers<[1], [0], [0], [1], [0, 0, 1, 1], [], []>} : vector<72x108xf32>, vector<108x128xf32>, vector<72x128xf32> -> vector<72x128xf32>
    %18 = arith.addf %13, %17 : vector<72x128xf32>
    %c4 = arith.constant 4 : index
    %c0_19 = arith.constant 0 : index
    %19 = vector.load %arg0[%c4, %c0_19] : memref<76x108xf32, #tpu.memory_space<vmem>>, vector<72x108xf32>
    %c4_20 = arith.constant 4 : index
    %c0_21 = arith.constant 0 : index
    %c0_22 = arith.constant 0 : index
    %20 = vector.load %arg1[%c4_20, %c0_21, %c0_22] : memref<5x108x128xf32, #tpu.memory_space<vmem>>, vector<1x108x128xf32>
    %21 = vector.shape_cast %20 : vector<1x108x128xf32> to vector<108x128xf32>
    %cst_23 = arith.constant dense<0.000000e+00> : vector<72x128xf32>
    %22 = tpu.matmul %19, %21, %cst_23 {dimension_numbers = #tpu.dot_dimension_numbers<[1], [0], [0], [1], [0, 0, 1, 1], [], []>} : vector<72x108xf32>, vector<108x128xf32>, vector<72x128xf32> -> vector<72x128xf32>
    %23 = arith.addf %18, %22 : vector<72x128xf32>
    %c0_24 = arith.constant 0 : index
    %c0_25 = arith.constant 0 : index
    %24 = vector.load %arg2[%c0_24, %c0_25] : memref<1x128xf32, #tpu.memory_space<vmem>>, vector<1x128xf32>
    %25 = vector.broadcast %24 : vector<1x128xf32> to vector<72x128xf32>
    %26 = arith.addf %23, %25 : vector<72x128xf32>
    %c0_26 = arith.constant 0 : index
    %c0_27 = arith.constant 0 : index
    %27 = vector.load %arg3[%c0_26, %c0_27] : memref<128x80xf32, #tpu.memory_space<vmem>>, vector<128x80xf32>
    %cst_28 = arith.constant dense<0.000000e+00> : vector<72x80xf32>
    %28 = tpu.matmul %26, %27, %cst_28 {dimension_numbers = #tpu.dot_dimension_numbers<[1], [0], [0], [1], [0, 0, 1, 1], [], []>} : vector<72x128xf32>, vector<128x80xf32>, vector<72x80xf32> -> vector<72x80xf32>
    %c0_29 = arith.constant 0 : index
    %c0_30 = arith.constant 0 : index
    %29 = vector.load %arg4[%c0_29, %c0_30] : memref<128x80xf32, #tpu.memory_space<vmem>>, vector<128x80xf32>
    %cst_31 = arith.constant dense<0.000000e+00> : vector<72x80xf32>
    %30 = tpu.matmul %26, %29, %cst_31 {dimension_numbers = #tpu.dot_dimension_numbers<[1], [0], [0], [1], [0, 0, 1, 1], [], []>} : vector<72x128xf32>, vector<128x80xf32>, vector<72x80xf32> -> vector<72x80xf32>
    %31 = arith.maximumf %28, %30 : vector<72x80xf32>
    %c0_32 = arith.constant 0 : index
    %c0_33 = arith.constant 0 : index
    %32 = vector.load %arg5[%c0_32, %c0_33] : memref<44x72xf32, #tpu.memory_space<vmem>>, vector<44x72xf32>
    %cst_34 = arith.constant dense<0.000000e+00> : vector<44x80xf32>
    %33 = tpu.matmul %32, %31, %cst_34 {dimension_numbers = #tpu.dot_dimension_numbers<[1], [0], [0], [1], [0, 0, 1, 1], [], []>} : vector<44x72xf32>, vector<72x80xf32>, vector<44x80xf32> -> vector<44x80xf32>
    %c0_35 = arith.constant 0 : index
    %c0_36 = arith.constant 0 : index
    %34 = vector.load %arg6[%c0_35, %c0_36] : memref<44x72xf32, #tpu.memory_space<vmem>>, vector<44x72xf32>
    %cst_37 = arith.constant dense<0.000000e+00> : vector<44x80xf32>
    %35 = tpu.matmul %34, %31, %cst_37 {dimension_numbers = #tpu.dot_dimension_numbers<[1], [0], [0], [1], [0, 0, 1, 1], [], []>} : vector<44x72xf32>, vector<72x80xf32>, vector<44x80xf32> -> vector<44x80xf32>
    %36 = arith.maximumf %33, %35 : vector<44x80xf32>
    %cst_38 = arith.constant 0.000000e+00 : f32
    %37 = vector.broadcast %cst_38 : f32 to vector<44x80xf32>
    %38 = arith.maximumf %36, %37 : vector<44x80xf32>
    %c0_39 = arith.constant 0 : index
    %c0_40 = arith.constant 0 : index
    %39 = vector.load %arg35[%c0_39, %c0_40] : memref<44x80xf32, #tpu.memory_space<vmem>>, vector<44x80xf32>
    tpu.vector_store %arg35[%c0_39, %c0_40], %38 {strides = array<i32>} : memref<44x80xf32, #tpu.memory_space<vmem>>, vector<44x80xf32>,
    %c0_41 = arith.constant 0 : index
    %c0_42 = arith.constant 0 : index
    %40 = vector.load %arg35[%c0_41, %c0_42] : memref<44x80xf32, #tpu.memory_space<vmem>>, vector<40x80xf32>
    %c0_43 = arith.constant 0 : index
    %c0_44 = arith.constant 0 : index
    %c0_45 = arith.constant 0 : index
    %41 = vector.load %arg7[%c0_43, %c0_44, %c0_45] : memref<5x80x96xf32, #tpu.memory_space<vmem>>, vector<1x80x96xf32>
    %42 = vector.shape_cast %41 : vector<1x80x96xf32> to vector<80x96xf32>
    %cst_46 = arith.constant dense<0.000000e+00> : vector<40x96xf32>
    %43 = tpu.matmul %40, %42, %cst_46 {dimension_numbers = #tpu.dot_dimension_numbers<[1], [0], [0], [1], [0, 0, 1, 1], [], []>} : vector<40x80xf32>, vector<80x96xf32>, vector<40x96xf32> -> vector<40x96xf32>
    %c1_47 = arith.constant 1 : index
    %c0_48 = arith.constant 0 : index
    %44 = vector.load %arg35[%c1_47, %c0_48] : memref<44x80xf32, #tpu.memory_space<vmem>>, vector<40x80xf32>
    %c1_49 = arith.constant 1 : index
    %c0_50 = arith.constant 0 : index
    %c0_51 = arith.constant 0 : index
    %45 = vector.load %arg7[%c1_49, %c0_50, %c0_51] : memref<5x80x96xf32, #tpu.memory_space<vmem>>, vector<1x80x96xf32>
    %46 = vector.shape_cast %45 : vector<1x80x96xf32> to vector<80x96xf32>
    %cst_52 = arith.constant dense<0.000000e+00> : vector<40x96xf32>
    %47 = tpu.matmul %44, %46, %cst_52 {dimension_numbers = #tpu.dot_dimension_numbers<[1], [0], [0], [1], [0, 0, 1, 1], [], []>} : vector<40x80xf32>, vector<80x96xf32>, vector<40x96xf32> -> vector<40x96xf32>
    %48 = arith.addf %43, %47 : vector<40x96xf32>
    %c2_53 = arith.constant 2 : index
    %c0_54 = arith.constant 0 : index
    %49 = vector.load %arg35[%c2_53, %c0_54] : memref<44x80xf32, #tpu.memory_space<vmem>>, vector<40x80xf32>
    %c2_55 = arith.constant 2 : index
    %c0_56 = arith.constant 0 : index
    %c0_57 = arith.constant 0 : index
    %50 = vector.load %arg7[%c2_55, %c0_56, %c0_57] : memref<5x80x96xf32, #tpu.memory_space<vmem>>, vector<1x80x96xf32>
    %51 = vector.shape_cast %50 : vector<1x80x96xf32> to vector<80x96xf32>
    %cst_58 = arith.constant dense<0.000000e+00> : vector<40x96xf32>
    %52 = tpu.matmul %49, %51, %cst_58 {dimension_numbers = #tpu.dot_dimension_numbers<[1], [0], [0], [1], [0, 0, 1, 1], [], []>} : vector<40x80xf32>, vector<80x96xf32>, vector<40x96xf32> -> vector<40x96xf32>
    %53 = arith.addf %48, %52 : vector<40x96xf32>
    %c3_59 = arith.constant 3 : index
    %c0_60 = arith.constant 0 : index
    %54 = vector.load %arg35[%c3_59, %c0_60] : memref<44x80xf32, #tpu.memory_space<vmem>>, vector<40x80xf32>
    %c3_61 = arith.constant 3 : index
    %c0_62 = arith.constant 0 : index
    %c0_63 = arith.constant 0 : index
    %55 = vector.load %arg7[%c3_61, %c0_62, %c0_63] : memref<5x80x96xf32, #tpu.memory_space<vmem>>, vector<1x80x96xf32>
    %56 = vector.shape_cast %55 : vector<1x80x96xf32> to vector<80x96xf32>
    %cst_64 = arith.constant dense<0.000000e+00> : vector<40x96xf32>
    %57 = tpu.matmul %54, %56, %cst_64 {dimension_numbers = #tpu.dot_dimension_numbers<[1], [0], [0], [1], [0, 0, 1, 1], [], []>} : vector<40x80xf32>, vector<80x96xf32>, vector<40x96xf32> -> vector<40x96xf32>
    %58 = arith.addf %53, %57 : vector<40x96xf32>
    %c4_65 = arith.constant 4 : index
    %c0_66 = arith.constant 0 : index
    %59 = vector.load %arg35[%c4_65, %c0_66] : memref<44x80xf32, #tpu.memory_space<vmem>>, vector<40x80xf32>
    %c4_67 = arith.constant 4 : index
    %c0_68 = arith.constant 0 : index
    %c0_69 = arith.constant 0 : index
    %60 = vector.load %arg7[%c4_67, %c0_68, %c0_69] : memref<5x80x96xf32, #tpu.memory_space<vmem>>, vector<1x80x96xf32>
    %61 = vector.shape_cast %60 : vector<1x80x96xf32> to vector<80x96xf32>
    %cst_70 = arith.constant dense<0.000000e+00> : vector<40x96xf32>
    %62 = tpu.matmul %59, %61, %cst_70 {dimension_numbers = #tpu.dot_dimension_numbers<[1], [0], [0], [1], [0, 0, 1, 1], [], []>} : vector<40x80xf32>, vector<80x96xf32>, vector<40x96xf32> -> vector<40x96xf32>
    %63 = arith.addf %58, %62 : vector<40x96xf32>
    %c0_71 = arith.constant 0 : index
    %c0_72 = arith.constant 0 : index
    %64 = vector.load %arg8[%c0_71, %c0_72] : memref<1x96xf32, #tpu.memory_space<vmem>>, vector<1x96xf32>
    %65 = vector.broadcast %64 : vector<1x96xf32> to vector<40x96xf32>
    %66 = arith.addf %63, %65 : vector<40x96xf32>
    %c0_73 = arith.constant 0 : index
    %c0_74 = arith.constant 0 : index
    %67 = vector.load %arg10[%c0_73, %c0_74] : memref<44x40xf32, #tpu.memory_space<vmem>>, vector<44x40xf32>
    %c0_75 = arith.constant 0 : index
    %c0_76 = arith.constant 0 : index
    %68 = vector.load %arg9[%c0_75, %c0_76] : memref<96x120xf32, #tpu.memory_space<vmem>>, vector<96x120xf32>
    %cst_77 = arith.constant dense<0.000000e+00> : vector<40x120xf32>
    %69 = tpu.matmul %66, %68, %cst_77 {dimension_numbers = #tpu.dot_dimension_numbers<[1], [0], [0], [1], [0, 0, 1, 1], [], []>} : vector<40x96xf32>, vector<96x120xf32>, vector<40x120xf32> -> vector<40x120xf32>
    %cst_78 = arith.constant dense<0.000000e+00> : vector<44x120xf32>
    %70 = tpu.matmul %67, %69, %cst_78 {dimension_numbers = #tpu.dot_dimension_numbers<[1], [0], [0], [1], [0, 0, 1, 1], [], []>} : vector<44x40xf32>, vector<40x120xf32>, vector<44x120xf32> -> vector<44x120xf32>
    %c0_79 = arith.constant 0 : index
    %c0_80 = arith.constant 0 : index
    %71 = vector.load %arg36[%c0_79, %c0_80] : memref<44x120xf32, #tpu.memory_space<vmem>>, vector<44x120xf32>
    tpu.vector_store %arg36[%c0_79, %c0_80], %70 {strides = array<i32>} : memref<44x120xf32, #tpu.memory_space<vmem>>, vector<44x120xf32>,
    %c0_81 = arith.constant 0 : index
    %c0_82 = arith.constant 0 : index
    %72 = vector.load %arg36[%c0_81, %c0_82] : memref<44x120xf32, #tpu.memory_space<vmem>>, vector<40x120xf32>
    %c0_83 = arith.constant 0 : index
    %c0_84 = arith.constant 0 : index
    %c0_85 = arith.constant 0 : index
    %73 = vector.load %arg11[%c0_83, %c0_84, %c0_85] : memref<5x120x128xf32, #tpu.memory_space<vmem>>, vector<1x120x128xf32>
    %74 = vector.shape_cast %73 : vector<1x120x128xf32> to vector<120x128xf32>
    %cst_86 = arith.constant dense<0.000000e+00> : vector<40x128xf32>
    %75 = tpu.matmul %72, %74, %cst_86 {dimension_numbers = #tpu.dot_dimension_numbers<[1], [0], [0], [1], [0, 0, 1, 1], [], []>} : vector<40x120xf32>, vector<120x128xf32>, vector<40x128xf32> -> vector<40x128xf32>
    %c1_87 = arith.constant 1 : index
    %c0_88 = arith.constant 0 : index
    %76 = vector.load %arg36[%c1_87, %c0_88] : memref<44x120xf32, #tpu.memory_space<vmem>>, vector<40x120xf32>
    %c1_89 = arith.constant 1 : index
    %c0_90 = arith.constant 0 : index
    %c0_91 = arith.constant 0 : index
    %77 = vector.load %arg11[%c1_89, %c0_90, %c0_91] : memref<5x120x128xf32, #tpu.memory_space<vmem>>, vector<1x120x128xf32>
    %78 = vector.shape_cast %77 : vector<1x120x128xf32> to vector<120x128xf32>
    %cst_92 = arith.constant dense<0.000000e+00> : vector<40x128xf32>
    %79 = tpu.matmul %76, %78, %cst_92 {dimension_numbers = #tpu.dot_dimension_numbers<[1], [0], [0], [1], [0, 0, 1, 1], [], []>} : vector<40x120xf32>, vector<120x128xf32>, vector<40x128xf32> -> vector<40x128xf32>
    %80 = arith.addf %75, %79 : vector<40x128xf32>
    %c2_93 = arith.constant 2 : index
    %c0_94 = arith.constant 0 : index
    %81 = vector.load %arg36[%c2_93, %c0_94] : memref<44x120xf32, #tpu.memory_space<vmem>>, vector<40x120xf32>
    %c2_95 = arith.constant 2 : index
    %c0_96 = arith.constant 0 : index
    %c0_97 = arith.constant 0 : index
    %82 = vector.load %arg11[%c2_95, %c0_96, %c0_97] : memref<5x120x128xf32, #tpu.memory_space<vmem>>, vector<1x120x128xf32>
    %83 = vector.shape_cast %82 : vector<1x120x128xf32> to vector<120x128xf32>
    %cst_98 = arith.constant dense<0.000000e+00> : vector<40x128xf32>
    %84 = tpu.matmul %81, %83, %cst_98 {dimension_numbers = #tpu.dot_dimension_numbers<[1], [0], [0], [1], [0, 0, 1, 1], [], []>} : vector<40x120xf32>, vector<120x128xf32>, vector<40x128xf32> -> vector<40x128xf32>
    %85 = arith.addf %80, %84 : vector<40x128xf32>
    %c3_99 = arith.constant 3 : index
    %c0_100 = arith.constant 0 : index
    %86 = vector.load %arg36[%c3_99, %c0_100] : memref<44x120xf32, #tpu.memory_space<vmem>>, vector<40x120xf32>
    %c3_101 = arith.constant 3 : index
    %c0_102 = arith.constant 0 : index
    %c0_103 = arith.constant 0 : index
    %87 = vector.load %arg11[%c3_101, %c0_102, %c0_103] : memref<5x120x128xf32, #tpu.memory_space<vmem>>, vector<1x120x128xf32>
    %88 = vector.shape_cast %87 : vector<1x120x128xf32> to vector<120x128xf32>
    %cst_104 = arith.constant dense<0.000000e+00> : vector<40x128xf32>
    %89 = tpu.matmul %86, %88, %cst_104 {dimension_numbers = #tpu.dot_dimension_numbers<[1], [0], [0], [1], [0, 0, 1, 1], [], []>} : vector<40x120xf32>, vector<120x128xf32>, vector<40x128xf32> -> vector<40x128xf32>
    %90 = arith.addf %85, %89 : vector<40x128xf32>
    %c4_105 = arith.constant 4 : index
    %c0_106 = arith.constant 0 : index
    %91 = vector.load %arg36[%c4_105, %c0_106] : memref<44x120xf32, #tpu.memory_space<vmem>>, vector<40x120xf32>
    %c4_107 = arith.constant 4 : index
    %c0_108 = arith.constant 0 : index
    %c0_109 = arith.constant 0 : index
    %92 = vector.load %arg11[%c4_107, %c0_108, %c0_109] : memref<5x120x128xf32, #tpu.memory_space<vmem>>, vector<1x120x128xf32>
    %93 = vector.shape_cast %92 : vector<1x120x128xf32> to vector<120x128xf32>
    %cst_110 = arith.constant dense<0.000000e+00> : vector<40x128xf32>
    %94 = tpu.matmul %91, %93, %cst_110 {dimension_numbers = #tpu.dot_dimension_numbers<[1], [0], [0], [1], [0, 0, 1, 1], [], []>} : vector<40x120xf32>, vector<120x128xf32>, vector<40x128xf32> -> vector<40x128xf32>
    %95 = arith.addf %90, %94 : vector<40x128xf32>
    %c0_111 = arith.constant 0 : index
    %c0_112 = arith.constant 0 : index
    %96 = vector.load %arg12[%c0_111, %c0_112] : memref<1x128xf32, #tpu.memory_space<vmem>>, vector<1x128xf32>
    %97 = vector.broadcast %96 : vector<1x128xf32> to vector<40x128xf32>
    %98 = arith.addf %95, %97 : vector<40x128xf32>
    %c0_113 = arith.constant 0 : index
    %c0_114 = arith.constant 0 : index
    %99 = vector.load %arg13[%c0_113, %c0_114] : memref<128x96xf32, #tpu.memory_space<vmem>>, vector<128x96xf32>
    %cst_115 = arith.constant dense<0.000000e+00> : vector<40x96xf32>
    %100 = tpu.matmul %98, %99, %cst_115 {dimension_numbers = #tpu.dot_dimension_numbers<[1], [0], [0], [1], [0, 0, 1, 1], [], []>} : vector<40x128xf32>, vector<128x96xf32>, vector<40x96xf32> -> vector<40x96xf32>
    %c0_116 = arith.constant 0 : index
    %c0_117 = arith.constant 0 : index
    %101 = vector.load %arg14[%c0_116, %c0_117] : memref<128x96xf32, #tpu.memory_space<vmem>>, vector<128x96xf32>
    %cst_118 = arith.constant dense<0.000000e+00> : vector<40x96xf32>
    %102 = tpu.matmul %98, %101, %cst_118 {dimension_numbers = #tpu.dot_dimension_numbers<[1], [0], [0], [1], [0, 0, 1, 1], [], []>} : vector<40x128xf32>, vector<128x96xf32>, vector<40x96xf32> -> vector<40x96xf32>
    %103 = arith.maximumf %100, %102 : vector<40x96xf32>
    %c0_119 = arith.constant 0 : index
    %c0_120 = arith.constant 0 : index
    %104 = vector.load %arg15[%c0_119, %c0_120] : memref<28x40xf32, #tpu.memory_space<vmem>>, vector<28x40xf32>
    %cst_121 = arith.constant dense<0.000000e+00> : vector<28x96xf32>
    %105 = tpu.matmul %104, %103, %cst_121 {dimension_numbers = #tpu.dot_dimension_numbers<[1], [0], [0], [1], [0, 0, 1, 1], [], []>} : vector<28x40xf32>, vector<40x96xf32>, vector<28x96xf32> -> vector<28x96xf32>
    %c0_122 = arith.constant 0 : index
    %c0_123 = arith.constant 0 : index
    %106 = vector.load %arg16[%c0_122, %c0_123] : memref<28x40xf32, #tpu.memory_space<vmem>>, vector<28x40xf32>
    %cst_124 = arith.constant dense<0.000000e+00> : vector<28x96xf32>
    %107 = tpu.matmul %106, %103, %cst_124 {dimension_numbers = #tpu.dot_dimension_numbers<[1], [0], [0], [1], [0, 0, 1, 1], [], []>} : vector<28x40xf32>, vector<40x96xf32>, vector<28x96xf32> -> vector<28x96xf32>
    %108 = arith.maximumf %105, %107 : vector<28x96xf32>
    %cst_125 = arith.constant 0.000000e+00 : f32
    %109 = vector.broadcast %cst_125 : f32 to vector<28x96xf32>
    %110 = arith.maximumf %108, %109 : vector<28x96xf32>
    %c0_126 = arith.constant 0 : index
    %c0_127 = arith.constant 0 : index
    %111 = vector.load %arg37[%c0_126, %c0_127] : memref<28x96xf32, #tpu.memory_space<vmem>>, vector<28x96xf32>
    tpu.vector_store %arg37[%c0_126, %c0_127], %110 {strides = array<i32>} : memref<28x96xf32, #tpu.memory_space<vmem>>, vector<28x96xf32>,
    %c0_128 = arith.constant 0 : index
    %c0_129 = arith.constant 0 : index
    %112 = vector.load %arg37[%c0_128, %c0_129] : memref<28x96xf32, #tpu.memory_space<vmem>>, vector<24x96xf32>
    %c0_130 = arith.constant 0 : index
    %c0_131 = arith.constant 0 : index
    %c0_132 = arith.constant 0 : index
    %113 = vector.load %arg17[%c0_130, %c0_131, %c0_132] : memref<5x96x80xf32, #tpu.memory_space<vmem>>, vector<1x96x80xf32>
    %114 = vector.shape_cast %113 : vector<1x96x80xf32> to vector<96x80xf32>
    %cst_133 = arith.constant dense<0.000000e+00> : vector<24x80xf32>
    %115 = tpu.matmul %112, %114, %cst_133 {dimension_numbers = #tpu.dot_dimension_numbers<[1], [0], [0], [1], [0, 0, 1, 1], [], []>} : vector<24x96xf32>, vector<96x80xf32>, vector<24x80xf32> -> vector<24x80xf32>
    %c1_134 = arith.constant 1 : index
    %c0_135 = arith.constant 0 : index
    %116 = vector.load %arg37[%c1_134, %c0_135] : memref<28x96xf32, #tpu.memory_space<vmem>>, vector<24x96xf32>
    %c1_136 = arith.constant 1 : index
    %c0_137 = arith.constant 0 : index
    %c0_138 = arith.constant 0 : index
    %117 = vector.load %arg17[%c1_136, %c0_137, %c0_138] : memref<5x96x80xf32, #tpu.memory_space<vmem>>, vector<1x96x80xf32>
    %118 = vector.shape_cast %117 : vector<1x96x80xf32> to vector<96x80xf32>
    %cst_139 = arith.constant dense<0.000000e+00> : vector<24x80xf32>
    %119 = tpu.matmul %116, %118, %cst_139 {dimension_numbers = #tpu.dot_dimension_numbers<[1], [0], [0], [1], [0, 0, 1, 1], [], []>} : vector<24x96xf32>, vector<96x80xf32>, vector<24x80xf32> -> vector<24x80xf32>
    %120 = arith.addf %115, %119 : vector<24x80xf32>
    %c2_140 = arith.constant 2 : index
    %c0_141 = arith.constant 0 : index
    %121 = vector.load %arg37[%c2_140, %c0_141] : memref<28x96xf32, #tpu.memory_space<vmem>>, vector<24x96xf32>
    %c2_142 = arith.constant 2 : index
    %c0_143 = arith.constant 0 : index
    %c0_144 = arith.constant 0 : index
    %122 = vector.load %arg17[%c2_142, %c0_143, %c0_144] : memref<5x96x80xf32, #tpu.memory_space<vmem>>, vector<1x96x80xf32>
    %123 = vector.shape_cast %122 : vector<1x96x80xf32> to vector<96x80xf32>
    %cst_145 = arith.constant dense<0.000000e+00> : vector<24x80xf32>
    %124 = tpu.matmul %121, %123, %cst_145 {dimension_numbers = #tpu.dot_dimension_numbers<[1], [0], [0], [1], [0, 0, 1, 1], [], []>} : vector<24x96xf32>, vector<96x80xf32>, vector<24x80xf32> -> vector<24x80xf32>
    %125 = arith.addf %120, %124 : vector<24x80xf32>
    %c3_146 = arith.constant 3 : index
    %c0_147 = arith.constant 0 : index
    %126 = vector.load %arg37[%c3_146, %c0_147] : memref<28x96xf32, #tpu.memory_space<vmem>>, vector<24x96xf32>
    %c3_148 = arith.constant 3 : index
    %c0_149 = arith.constant 0 : index
    %c0_150 = arith.constant 0 : index
    %127 = vector.load %arg17[%c3_148, %c0_149, %c0_150] : memref<5x96x80xf32, #tpu.memory_space<vmem>>, vector<1x96x80xf32>
    %128 = vector.shape_cast %127 : vector<1x96x80xf32> to vector<96x80xf32>
    %cst_151 = arith.constant dense<0.000000e+00> : vector<24x80xf32>
    %129 = tpu.matmul %126, %128, %cst_151 {dimension_numbers = #tpu.dot_dimension_numbers<[1], [0], [0], [1], [0, 0, 1, 1], [], []>} : vector<24x96xf32>, vector<96x80xf32>, vector<24x80xf32> -> vector<24x80xf32>
    %130 = arith.addf %125, %129 : vector<24x80xf32>
    %c4_152 = arith.constant 4 : index
    %c0_153 = arith.constant 0 : index
    %131 = vector.load %arg37[%c4_152, %c0_153] : memref<28x96xf32, #tpu.memory_space<vmem>>, vector<24x96xf32>
    %c4_154 = arith.constant 4 : index
    %c0_155 = arith.constant 0 : index
    %c0_156 = arith.constant 0 : index
    %132 = vector.load %arg17[%c4_154, %c0_155, %c0_156] : memref<5x96x80xf32, #tpu.memory_space<vmem>>, vector<1x96x80xf32>
    %133 = vector.shape_cast %132 : vector<1x96x80xf32> to vector<96x80xf32>
    %cst_157 = arith.constant dense<0.000000e+00> : vector<24x80xf32>
    %134 = tpu.matmul %131, %133, %cst_157 {dimension_numbers = #tpu.dot_dimension_numbers<[1], [0], [0], [1], [0, 0, 1, 1], [], []>} : vector<24x96xf32>, vector<96x80xf32>, vector<24x80xf32> -> vector<24x80xf32>
    %135 = arith.addf %130, %134 : vector<24x80xf32>
    %c0_158 = arith.constant 0 : index
    %c0_159 = arith.constant 0 : index
    %136 = vector.load %arg18[%c0_158, %c0_159] : memref<1x80xf32, #tpu.memory_space<vmem>>, vector<1x80xf32>
    %137 = vector.broadcast %136 : vector<1x80xf32> to vector<24x80xf32>
    %138 = arith.addf %135, %137 : vector<24x80xf32>
    %c0_160 = arith.constant 0 : index
    %c0_161 = arith.constant 0 : index
    %139 = vector.load %arg19[%c0_160, %c0_161] : memref<80x80xf32, #tpu.memory_space<vmem>>, vector<80x80xf32>
    %cst_162 = arith.constant dense<0.000000e+00> : vector<24x80xf32>
    %140 = tpu.matmul %138, %139, %cst_162 {dimension_numbers = #tpu.dot_dimension_numbers<[1], [0], [0], [1], [0, 0, 1, 1], [], []>} : vector<24x80xf32>, vector<80x80xf32>, vector<24x80xf32> -> vector<24x80xf32>
    %c0_163 = arith.constant 0 : index
    %c0_164 = arith.constant 0 : index
    %141 = vector.load %arg20[%c0_163, %c0_164] : memref<80x80xf32, #tpu.memory_space<vmem>>, vector<80x80xf32>
    %cst_165 = arith.constant dense<0.000000e+00> : vector<24x80xf32>
    %142 = tpu.matmul %138, %141, %cst_165 {dimension_numbers = #tpu.dot_dimension_numbers<[1], [0], [0], [1], [0, 0, 1, 1], [], []>} : vector<24x80xf32>, vector<80x80xf32>, vector<24x80xf32> -> vector<24x80xf32>
    %143 = arith.maximumf %140, %142 : vector<24x80xf32>
    %c0_166 = arith.constant 0 : index
    %c0_167 = arith.constant 0 : index
    %144 = vector.load %arg21[%c0_166, %c0_167] : memref<20x24xf32, #tpu.memory_space<vmem>>, vector<20x24xf32>
    %cst_168 = arith.constant dense<0.000000e+00> : vector<20x80xf32>
    %145 = tpu.matmul %144, %143, %cst_168 {dimension_numbers = #tpu.dot_dimension_numbers<[1], [0], [0], [1], [0, 0, 1, 1], [], []>} : vector<20x24xf32>, vector<24x80xf32>, vector<20x80xf32> -> vector<20x80xf32>
    %c0_169 = arith.constant 0 : index
    %c0_170 = arith.constant 0 : index
    %146 = vector.load %arg22[%c0_169, %c0_170] : memref<20x24xf32, #tpu.memory_space<vmem>>, vector<20x24xf32>
    %cst_171 = arith.constant dense<0.000000e+00> : vector<20x80xf32>
    %147 = tpu.matmul %146, %143, %cst_171 {dimension_numbers = #tpu.dot_dimension_numbers<[1], [0], [0], [1], [0, 0, 1, 1], [], []>} : vector<20x24xf32>, vector<24x80xf32>, vector<20x80xf32> -> vector<20x80xf32>
    %148 = arith.maximumf %145, %147 : vector<20x80xf32>
    %cst_172 = arith.constant 0.000000e+00 : f32
    %149 = vector.broadcast %cst_172 : f32 to vector<20x80xf32>
    %150 = arith.maximumf %148, %149 : vector<20x80xf32>
    %c0_173 = arith.constant 0 : index
    %c0_174 = arith.constant 0 : index
    %151 = vector.load %arg38[%c0_173, %c0_174] : memref<20x80xf32, #tpu.memory_space<vmem>>, vector<20x80xf32>
    tpu.vector_store %arg38[%c0_173, %c0_174], %150 {strides = array<i32>} : memref<20x80xf32, #tpu.memory_space<vmem>>, vector<20x80xf32>,
    %c0_175 = arith.constant 0 : index
    %c0_176 = arith.constant 0 : index
    %152 = vector.load %arg38[%c0_175, %c0_176] : memref<20x80xf32, #tpu.memory_space<vmem>>, vector<16x80xf32>
    %c0_177 = arith.constant 0 : index
    %c0_178 = arith.constant 0 : index
    %c0_179 = arith.constant 0 : index
    %153 = vector.load %arg23[%c0_177, %c0_178, %c0_179] : memref<5x80x48xf32, #tpu.memory_space<vmem>>, vector<1x80x48xf32>
    %154 = vector.shape_cast %153 : vector<1x80x48xf32> to vector<80x48xf32>
    %cst_180 = arith.constant dense<0.000000e+00> : vector<16x48xf32>
    %155 = tpu.matmul %152, %154, %cst_180 {dimension_numbers = #tpu.dot_dimension_numbers<[1], [0], [0], [1], [0, 0, 1, 1], [], []>} : vector<16x80xf32>, vector<80x48xf32>, vector<16x48xf32> -> vector<16x48xf32>
    %c1_181 = arith.constant 1 : index
    %c0_182 = arith.constant 0 : index
    %156 = vector.load %arg38[%c1_181, %c0_182] : memref<20x80xf32, #tpu.memory_space<vmem>>, vector<16x80xf32>
    %c1_183 = arith.constant 1 : index
    %c0_184 = arith.constant 0 : index
    %c0_185 = arith.constant 0 : index
    %157 = vector.load %arg23[%c1_183, %c0_184, %c0_185] : memref<5x80x48xf32, #tpu.memory_space<vmem>>, vector<1x80x48xf32>
    %158 = vector.shape_cast %157 : vector<1x80x48xf32> to vector<80x48xf32>
    %cst_186 = arith.constant dense<0.000000e+00> : vector<16x48xf32>
    %159 = tpu.matmul %156, %158, %cst_186 {dimension_numbers = #tpu.dot_dimension_numbers<[1], [0], [0], [1], [0, 0, 1, 1], [], []>} : vector<16x80xf32>, vector<80x48xf32>, vector<16x48xf32> -> vector<16x48xf32>
    %160 = arith.addf %155, %159 : vector<16x48xf32>
    %c2_187 = arith.constant 2 : index
    %c0_188 = arith.constant 0 : index
    %161 = vector.load %arg38[%c2_187, %c0_188] : memref<20x80xf32, #tpu.memory_space<vmem>>, vector<16x80xf32>
    %c2_189 = arith.constant 2 : index
    %c0_190 = arith.constant 0 : index
    %c0_191 = arith.constant 0 : index
    %162 = vector.load %arg23[%c2_189, %c0_190, %c0_191] : memref<5x80x48xf32, #tpu.memory_space<vmem>>, vector<1x80x48xf32>
    %163 = vector.shape_cast %162 : vector<1x80x48xf32> to vector<80x48xf32>
    %cst_192 = arith.constant dense<0.000000e+00> : vector<16x48xf32>
    %164 = tpu.matmul %161, %163, %cst_192 {dimension_numbers = #tpu.dot_dimension_numbers<[1], [0], [0], [1], [0, 0, 1, 1], [], []>} : vector<16x80xf32>, vector<80x48xf32>, vector<16x48xf32> -> vector<16x48xf32>
    %165 = arith.addf %160, %164 : vector<16x48xf32>
    %c3_193 = arith.constant 3 : index
    %c0_194 = arith.constant 0 : index
    %166 = vector.load %arg38[%c3_193, %c0_194] : memref<20x80xf32, #tpu.memory_space<vmem>>, vector<16x80xf32>
    %c3_195 = arith.constant 3 : index
    %c0_196 = arith.constant 0 : index
    %c0_197 = arith.constant 0 : index
    %167 = vector.load %arg23[%c3_195, %c0_196, %c0_197] : memref<5x80x48xf32, #tpu.memory_space<vmem>>, vector<1x80x48xf32>
    %168 = vector.shape_cast %167 : vector<1x80x48xf32> to vector<80x48xf32>
    %cst_198 = arith.constant dense<0.000000e+00> : vector<16x48xf32>
    %169 = tpu.matmul %166, %168, %cst_198 {dimension_numbers = #tpu.dot_dimension_numbers<[1], [0], [0], [1], [0, 0, 1, 1], [], []>} : vector<16x80xf32>, vector<80x48xf32>, vector<16x48xf32> -> vector<16x48xf32>
    %170 = arith.addf %165, %169 : vector<16x48xf32>
    %c4_199 = arith.constant 4 : index
    %c0_200 = arith.constant 0 : index
    %171 = vector.load %arg38[%c4_199, %c0_200] : memref<20x80xf32, #tpu.memory_space<vmem>>, vector<16x80xf32>
    %c4_201 = arith.constant 4 : index
    %c0_202 = arith.constant 0 : index
    %c0_203 = arith.constant 0 : index
    %172 = vector.load %arg23[%c4_201, %c0_202, %c0_203] : memref<5x80x48xf32, #tpu.memory_space<vmem>>, vector<1x80x48xf32>
    %173 = vector.shape_cast %172 : vector<1x80x48xf32> to vector<80x48xf32>
    %cst_204 = arith.constant dense<0.000000e+00> : vector<16x48xf32>
    %174 = tpu.matmul %171, %173, %cst_204 {dimension_numbers = #tpu.dot_dimension_numbers<[1], [0], [0], [1], [0, 0, 1, 1], [], []>} : vector<16x80xf32>, vector<80x48xf32>, vector<16x48xf32> -> vector<16x48xf32>
    %175 = arith.addf %170, %174 : vector<16x48xf32>
    %c0_205 = arith.constant 0 : index
    %c0_206 = arith.constant 0 : index
    %176 = vector.load %arg24[%c0_205, %c0_206] : memref<1x48xf32, #tpu.memory_space<vmem>>, vector<1x48xf32>
    %177 = vector.broadcast %176 : vector<1x48xf32> to vector<16x48xf32>
    %178 = arith.addf %175, %177 : vector<16x48xf32>
    %c0_207 = arith.constant 0 : index
    %c0_208 = arith.constant 0 : index
    %179 = vector.load %arg25[%c0_207, %c0_208] : memref<48x72xf32, #tpu.memory_space<vmem>>, vector<48x72xf32>
    %cst_209 = arith.constant dense<0.000000e+00> : vector<16x72xf32>
    %180 = tpu.matmul %178, %179, %cst_209 {dimension_numbers = #tpu.dot_dimension_numbers<[1], [0], [0], [1], [0, 0, 1, 1], [], []>} : vector<16x48xf32>, vector<48x72xf32>, vector<16x72xf32> -> vector<16x72xf32>
    %c0_210 = arith.constant 0 : index
    %c0_211 = arith.constant 0 : index
    %181 = vector.load %arg26[%c0_210, %c0_211] : memref<48x72xf32, #tpu.memory_space<vmem>>, vector<48x72xf32>
    %cst_212 = arith.constant dense<0.000000e+00> : vector<16x72xf32>
    %182 = tpu.matmul %178, %181, %cst_212 {dimension_numbers = #tpu.dot_dimension_numbers<[1], [0], [0], [1], [0, 0, 1, 1], [], []>} : vector<16x48xf32>, vector<48x72xf32>, vector<16x72xf32> -> vector<16x72xf32>
    %183 = arith.maximumf %180, %182 : vector<16x72xf32>
    %c0_213 = arith.constant 0 : index
    %c0_214 = arith.constant 0 : index
    %184 = vector.load %arg27[%c0_213, %c0_214] : memref<16x16xf32, #tpu.memory_space<vmem>>, vector<16x16xf32>
    %cst_215 = arith.constant dense<0.000000e+00> : vector<16x72xf32>
    %185 = tpu.matmul %184, %183, %cst_215 {dimension_numbers = #tpu.dot_dimension_numbers<[1], [0], [0], [1], [0, 0, 1, 1], [], []>} : vector<16x16xf32>, vector<16x72xf32>, vector<16x72xf32> -> vector<16x72xf32>
    %c0_216 = arith.constant 0 : index
    %c0_217 = arith.constant 0 : index
    %186 = vector.load %arg28[%c0_216, %c0_217] : memref<16x16xf32, #tpu.memory_space<vmem>>, vector<16x16xf32>
    %cst_218 = arith.constant dense<0.000000e+00> : vector<16x72xf32>
    %187 = tpu.matmul %186, %183, %cst_218 {dimension_numbers = #tpu.dot_dimension_numbers<[1], [0], [0], [1], [0, 0, 1, 1], [], []>} : vector<16x16xf32>, vector<16x72xf32>, vector<16x72xf32> -> vector<16x72xf32>
    %188 = arith.maximumf %185, %187 : vector<16x72xf32>
    %cst_219 = arith.constant 0.000000e+00 : f32
    %189 = vector.broadcast %cst_219 : f32 to vector<16x72xf32>
    %190 = arith.maximumf %188, %189 : vector<16x72xf32>
    %c0_220 = arith.constant 0 : index
    %c0_221 = arith.constant 0 : index
    %191 = vector.load %arg39[%c0_220, %c0_221] : memref<16x72xf32, #tpu.memory_space<vmem>>, vector<16x72xf32>
    tpu.vector_store %arg39[%c0_220, %c0_221], %190 {strides = array<i32>} : memref<16x72xf32, #tpu.memory_space<vmem>>, vector<16x72xf32>,
    %c0_222 = arith.constant 0 : index
    %c0_223 = arith.constant 0 : index
    %192 = vector.load %arg39[%c0_222, %c0_223] : memref<16x72xf32, #tpu.memory_space<vmem>>, vector<16x72xf32>
    %c0_224 = arith.constant 0 : index
    %c0_225 = arith.constant 0 : index
    %c0_226 = arith.constant 0 : index
    %193 = vector.load %arg30[%c0_224, %c0_225, %c0_226] : memref<2x2x16xf32, #tpu.memory_space<vmem>>, vector<1x2x16xf32>
    %194 = vector.shape_cast %193 : vector<1x2x16xf32> to vector<2x16xf32>
    %cst_227 = arith.constant dense<0.000000e+00> : vector<2x72xf32>
    %195 = tpu.matmul %194, %192, %cst_227 {dimension_numbers = #tpu.dot_dimension_numbers<[1], [0], [0], [1], [0, 0, 1, 1], [], []>} : vector<2x16xf32>, vector<16x72xf32>, vector<2x72xf32> -> vector<2x72xf32>
    %c0_228 = arith.constant 0 : index
    %c0_229 = arith.constant 0 : index
    %c0_230 = arith.constant 0 : index
    %196 = vector.load %arg29[%c0_228, %c0_229, %c0_230] : memref<2x72x100xf32, #tpu.memory_space<vmem>>, vector<1x72x100xf32>
    %197 = vector.shape_cast %196 : vector<1x72x100xf32> to vector<72x100xf32>
    %cst_231 = arith.constant dense<0.000000e+00> : vector<2x100xf32>
    %198 = tpu.matmul %195, %197, %cst_231 {dimension_numbers = #tpu.dot_dimension_numbers<[1], [0], [0], [1], [0, 0, 1, 1], [], []>} : vector<2x72xf32>, vector<72x100xf32>, vector<2x100xf32> -> vector<2x100xf32>
    %c1_232 = arith.constant 1 : index
    %c0_233 = arith.constant 0 : index
    %c0_234 = arith.constant 0 : index
    %199 = vector.load %arg30[%c1_232, %c0_233, %c0_234] : memref<2x2x16xf32, #tpu.memory_space<vmem>>, vector<1x2x16xf32>
    %200 = vector.shape_cast %199 : vector<1x2x16xf32> to vector<2x16xf32>
    %cst_235 = arith.constant dense<0.000000e+00> : vector<2x72xf32>
    %201 = tpu.matmul %200, %192, %cst_235 {dimension_numbers = #tpu.dot_dimension_numbers<[1], [0], [0], [1], [0, 0, 1, 1], [], []>} : vector<2x16xf32>, vector<16x72xf32>, vector<2x72xf32> -> vector<2x72xf32>
    %c1_236 = arith.constant 1 : index
    %c0_237 = arith.constant 0 : index
    %c0_238 = arith.constant 0 : index
    %202 = vector.load %arg29[%c1_236, %c0_237, %c0_238] : memref<2x72x100xf32, #tpu.memory_space<vmem>>, vector<1x72x100xf32>
    %203 = vector.shape_cast %202 : vector<1x72x100xf32> to vector<72x100xf32>
    %cst_239 = arith.constant dense<0.000000e+00> : vector<2x100xf32>
    %204 = tpu.matmul %201, %203, %cst_239 {dimension_numbers = #tpu.dot_dimension_numbers<[1], [0], [0], [1], [0, 0, 1, 1], [], []>} : vector<2x72xf32>, vector<72x100xf32>, vector<2x100xf32> -> vector<2x100xf32>
    %205 = arith.addf %198, %204 : vector<2x100xf32>
    %c0_240 = arith.constant 0 : index
    %c0_241 = arith.constant 0 : index
    %206 = vector.load %arg31[%c0_240, %c0_241] : memref<1x100xf32, #tpu.memory_space<vmem>>, vector<1x100xf32>
    %207 = vector.broadcast %206 : vector<1x100xf32> to vector<2x100xf32>
    %208 = arith.addf %205, %207 : vector<2x100xf32>
    %cst_242 = arith.constant 0.000000e+00 : f32
    %209 = vector.broadcast %cst_242 : f32 to vector<2x100xf32>
    %210 = arith.maximumf %208, %209 : vector<2x100xf32>
    %c0_243 = arith.constant 0 : index
    %c0_244 = arith.constant 0 : index
    %211 = vector.load %arg32[%c0_243, %c0_244] : memref<100x10xf32, #tpu.memory_space<vmem>>, vector<100x10xf32>
    %cst_245 = arith.constant dense<0.000000e+00> : vector<2x10xf32>
    %212 = tpu.matmul %210, %211, %cst_245 {dimension_numbers = #tpu.dot_dimension_numbers<[1], [0], [0], [1], [0, 0, 1, 1], [], []>} : vector<2x100xf32>, vector<100x10xf32>, vector<2x10xf32> -> vector<2x10xf32>
    %c0_246 = arith.constant 0 : index
    %c0_247 = arith.constant 0 : index
    %213 = vector.load %arg33[%c0_246, %c0_247] : memref<1x10xf32, #tpu.memory_space<vmem>>, vector<1x10xf32>
    %214 = vector.broadcast %213 : vector<1x10xf32> to vector<2x10xf32>
    %215 = arith.addf %212, %214 : vector<2x10xf32>
    %cst_248 = arith.constant dense<0xFF800000> : vector<2xf32>
    %216 = vector.multi_reduction <maximumf>, %215, %cst_248 [1] : vector<2x10xf32> to vector<2xf32>
    %217 = vector.shape_cast %216 : vector<2xf32> to vector<2x1xf32>
    %218 = vector.broadcast %217 : vector<2x1xf32> to vector<2x10xf32>
    %219 = arith.subf %215, %218 : vector<2x10xf32>
    %220 = math.exp %219 : vector<2x10xf32>
    %cst_249 = arith.constant dense<0.000000e+00> : vector<2xf32>
    %221 = vector.multi_reduction <add>, %220, %cst_249 [1] : vector<2x10xf32> to vector<2xf32>
    %222 = vector.shape_cast %221 : vector<2xf32> to vector<2x1xf32>
    %223 = math.log %222 : vector<2x1xf32>
    %224 = vector.broadcast %223 : vector<2x1xf32> to vector<2x10xf32>
    %225 = arith.subf %219, %224 : vector<2x10xf32>
    %c0_250 = arith.constant 0 : index
    %c0_251 = arith.constant 0 : index
    %226 = vector.load %arg34[%c0_250, %c0_251] : memref<2x10xf32, #tpu.memory_space<vmem>>, vector<2x10xf32>
    tpu.vector_store %arg34[%c0_250, %c0_251], %225 {strides = array<i32>} : memref<2x10xf32, #tpu.memory_space<vmem>>, vector<2x10xf32>,
    return
  }
}

</mosaic_0001>

<bundles_post_ra>
// kernel: forward.1
= control target key start
LH: loop header
LB: loop body
LE: loop exit
PB: predicated region body
PF: predicated region fallthrough
CT: control target
= control target key end

     0   :  { %s4318_s6 = smov 1   ;;  %s4319_s10 = smov 2   ;;  %s5242_s0 = inlined_call_operand.smem [shape: u32[35], index: -1, kind: input, shape index: {}] }
   0x1   :  { %s4385_s5 = sld [smem:[%s5242_s0]]   ;;  %s4320_s14 = smov 3  }
   0x2   :  { %s4390_s9 = sld [smem:[%s5242_s0 + %s4318_s6]]   ;;  %s4321_s18 = smov 4  }
   0x3   :  { %s4395_s13 = sld [smem:[%s5242_s0 + %s4319_s10]]   ;;  %s4322_s22 = smov 5  }
   0x4   :  { %s4400_s17 = sld [smem:[%s5242_s0 + %s4320_s14]]   ;;  %s4323_s26 = smov 6  }
   0x5   :  { %s4405_s21 = sld [smem:[%s5242_s0 + %s4321_s18]]   ;;  %s4324_s30 = smov 7  }
   0x6   :  { %s4410_s25 = sld [smem:[%s5242_s0 + %s4322_s22]]   ;;  %s4325_s4 = smov 8  }
   0x7   :  { %5257 = sst [smem:[#allocation56_spill]] %s4385_s5  ;;  %s4326_s10 = smov 9  }
   0x8   :  { %5258 = sst [smem:[#allocation57_spill]] %s4390_s9  ;;  %s4327_s15 = smov 10  }
   0x9   :  { %s4415_s29 = sld [smem:[%s5242_s0 + %s4323_s26]]   ;;  %s4328_s20 = smov 11  }
   0xa   :  { %s4420_s3 = sld [smem:[%s5242_s0 + %s4324_s30]]   ;;  %s4329_s26 = smov 12  }
   0xb   :  { %s4425_s8 = sld [smem:[%s5242_s0 + %s4325_s4]]   ;;  %s4330_s1 = smov 13  }
   0xc   :  { %s4430_s14 = sld [smem:[%s5242_s0 + %s4326_s10]]   ;;  %s4331_s7 = smov 14  }
   0xd   :  { %s4435_s19 = sld [smem:[%s5242_s0 + %s4327_s15]]   ;;  %s4332_s15 = smov 15  }
   0xe   :  { %s4440_s24 = sld [smem:[%s5242_s0 + %s4328_s20]]   ;;  %s4333_s22 = smov 16  }
   0xf   :  { %s4445_s30 = sld [smem:[%s5242_s0 + %s4329_s26]]   ;;  %s4334_s28 = smov 17  }
  0x10   :  { %s4450_s6 = sld [smem:[%s5242_s0 + %s4330_s1]]  }
  0x11   :  { %s4455_s12 = sld [smem:[%s5242_s0 + %s4331_s7]]   ;;  %s4335_s7 = smov 18  }
  0x12   :  { %s4460_s20 = sld [smem:[%s5242_s0 + %s4332_s15]]   ;;  %s4336_s15 = smov 19  }
  0x13   :  { %5259 = sst [smem:[#allocation58_spill]] %s4435_s19 }
  0x14   :  { %5260 = sst [smem:[#allocation59_spill]] %s4440_s24 }
  0x15   :  { %5261 = sst [smem:[#allocation60_spill]] %s4445_s30 }
  0x16   :  { %s4465_s27 = sld [smem:[%s5242_s0 + %s4333_s22]]   ;;  %s4337_s22 = smov 20  }
  0x17   :  { %5262 = sst [smem:[#allocation61_spill]] %s4455_s12 }
  0x18   :  { %5263 = sst [smem:[#allocation62_spill]] %s4460_s20 }
  0x19   :  { %s4470_s4 = sld [smem:[%s5242_s0 + %s4334_s28]]   ;;  %s4338_s28 = smov 21  }
  0x1a   :  { %s4475_s30 = sld [smem:[%s5242_s0 + %s4335_s7]]   ;;  %s4339_s7 = smov 22  }
  0x1b   :  { %s4480_s12 = sld [smem:[%s5242_s0 + %s4336_s15]]   ;;  %s4340_s15 = smov 23  }
  0x1c   :  { %5264 = sst [smem:[#allocation63_spill]] %s4465_s27 }
  0x1d   :  { %s4485_s27 = sld [smem:[%s5242_s0 + %s4337_s22]]   ;;  %s4341_s22 = smov 24  }
  0x1e   :  { %s4490_s24 = sld [smem:[%s5242_s0 + %s4338_s28]]   ;;  %s4342_s28 = smov 25  }
  0x1f   :  { %s4500_s5 = sld [smem:[%s5242_s0 + %s4340_s15]]   ;;  %s4344_s15 = smov 27  }
  0x20   :  { %5265 = sst [smem:[#allocation64_spill]] %s4475_s30 }
  0x21   :  { %5266 = sst [smem:[#allocation65_spill]] %s4480_s12 }
  0x22   :  { %s4495_s30 = sld [smem:[%s5242_s0 + %s4339_s7]]   ;;  %s4343_s7 = smov 26  }
  0x23   :  { %s4505_s9 = sld [smem:[%s5242_s0 + %s4341_s22]]   ;;  %s4345_s22 = smov 28  }
  0x24   :  { %5267 = sst [smem:[#allocation66_spill]] %s4490_s24 }
  0x25   :  { %5268 = sst [smem:[#allocation67_spill]] %s4500_s5 }
  0x26   :  { %s4510_s24 = sld [smem:[%s5242_s0 + %s4342_s28]]   ;;  %s4346_s28 = smov 29  }
  0x27   :  { %s4515_s12 = sld [smem:[%s5242_s0 + %s4343_s7]]   ;;  %s4347_s7 = smov 30  }
  0x28   :  { %s4520_s5 = sld [smem:[%s5242_s0 + %s4344_s15]]   ;;  %s4348_s15 = smov 31  }
  0x29   :  { %5269 = sst [smem:[#allocation68_spill]] %s4505_s9 }
  0x2a   :  { %s4525_s9 = sld [smem:[%s5242_s0 + %s4345_s22]]   ;;  %s4349_s22 = smov 32  }
  0x2b   :  { %s4530_s20 = sld [smem:[%s5242_s0 + %s4346_s28]]   ;;  %s4350_s28 = smov 33  }
  0x2c   :  { %s4540_s19 = sld [smem:[%s5242_s0 + %s4348_s15]]  }
  0x2d   :  { %5270 = sst [smem:[#allocation69_spill]] %s4515_s12 }
  0x2e   :  { %s4535_s12 = sld [smem:[%s5242_s0 + %s4347_s7]]   ;;  %s4351_s7 = smov 34  }
  0x30   :  { %5271 = sst [smem:[#allocation70_spill]] %s4525_s9 }
  0x31   :  { %5272 = sst [smem:[#allocation71_spill]] %s4530_s20 }
  0x32   :  { %s4545_s9 = sld [smem:[%s5242_s0 + %s4349_s22]]  }
  0x33   :  { %s4550_s20 = sld [smem:[%s5242_s0 + %s4350_s28]]  }
  0x34   :  { %5273 = sst [smem:[#allocation72_spill]] %s4535_s12 }
  0x35   :  { %s4555_s12 = sld [smem:[%s5242_s0 + %s4351_s7]]  }
  0x36   :  { %74 = vsyncpa [#allocation8], 0 }
  0x37   :  { %75 = vsyncpa [#allocation11], 0 }
  0x38   :  { %76 = vsyncpa [#allocation14], 0 }
  0x39   :  { %77 = vsyncpa [#allocation17], 0 }
  0x3a   :  { %78 = vsyncpa [#allocation20], 0 }
  0x3b   :  { %79 = vsyncpa [#allocation23], 0 }
  0x3c   :  { %80 = vsyncpa [#allocation26], 0 }
  0x3d   :  { %81 = vsyncpa [#allocation29], 0 }
  0x3e   :  { %82 = vsyncpa [#allocation32], 0 }
  0x3f   :  { %83 = vsyncpa [#allocation35], 0 }
  0x40   :  { %84 = vsyncpa [#allocation38], 0 }
  0x41   :  { %85 = vsyncpa [#allocation41], 0  ;;  %s106_s15 = sshll.u32 %s4400_s17, 4  ;;  %s107_s15 = int_to_ptr.hbm [resolvable:$true] %s106_s15 }
  0x42   :  { %86 = vsyncpa [#allocation9], 0  ;;  %s4352_s0 = smov [#allocation10]   ;;  %s132_s18 = sshll.u32 %s4410_s25, 4  ;;  %s133_s18 = int_to_ptr.hbm [resolvable:$true] %s132_s18 }
  0x43   :  { %s108_s16 = sshll.u32 %s4352_s0, 4  ;;  %s3740_s22 = sshra.s32 %s107_s15, 4  ;;  %s109_s16 = int_to_ptr.vmem [resolvable:$true] %s108_s16  ;;  %s3741_s22 = int_to_ptr.hbm [resolvable:$true] %s3740_s22 }
  0x44   :  { %s3742_s23 = scalar_lea.hbm %s3741_s22, 128  ;;  %s3744_s26 = scalar_lea.hbm %s4400_s17, 128 }
  0x45   :  { %p3743_p0 = scmp.ne.s32.totalorder %s3741_s22, %s3742_s23  ;;  %p3745_p1 = scmp.lt.s32.totalorder %s3741_s22, %s4400_s17 }
  0x46   :  { %p3746_p2 = scmp.lt.s32.totalorder %s3744_s26, %s3742_s23 }
  0x48   :  { %p3747_p3 = por %p3746_p2, %p3745_p1 }
  0x4a   :  { %p3748_p4 = pnand %p3747_p3, %p3743_p0 }
  0x4c   :  { %3751 = shalt.err (!%p3748_p4)
}
  0x4d   :  { %s4353_s28 = smov 128   ;;  %s4354_s1 = smov 8  }
  0x4e   :  { %114 = dma.hbm_to_vmem [thread:$0]  %s107_s15, 2048, %s109_s16, [#allocation11], %s4353_s28, %s4353_s28, %s4354_s1  }
  0x4f   :  { %s4355_s2 = smov [#allocation13]   ;;  %s158_s10 = sshll.u32 %s4420_s3, 4  ;;  %s4565_s10 = int_to_ptr.hbm [resolvable:$true] %s158_s10 }
  0x50   :  { %s134_s7 = sshll.u32 %s4355_s2, 4  ;;  %s3764_s17 = sshra.s32 %s133_s18, 4  ;;  %s135_s7 = int_to_ptr.vmem [resolvable:$true] %s134_s7  ;;  %s3765_s17 = int_to_ptr.hbm [resolvable:$true] %s3764_s17 }
  0x51   :  { %s3766_s11 = scalar_lea.hbm %s3765_s17, 48  ;;  %s3768_s0 = scalar_lea.hbm %s4410_s25, 48 }
  0x52   :  { %p3767_p5 = scmp.ne.s32.totalorder %s3765_s17, %s3766_s11  ;;  %p3769_p6 = scmp.lt.s32.totalorder %s3765_s17, %s4410_s25 }
  0x53   :  { %p3770_p7 = scmp.lt.s32.totalorder %s3768_s0, %s3766_s11 }
  0x55   :  { %p3771_p8 = por %p3770_p7, %p3769_p6 }
  0x57   :  { %p3772_p9 = pnand %p3771_p8, %p3767_p5 }
  0x59   :  { %3775 = shalt.err (!%p3772_p9)
}
  0x5a   :  { %140 = dma.hbm_to_vmem [thread:$0]  %s133_s18, 768, %s135_s7, [#allocation14], %s4353_s28, %s4353_s28, %s4354_s1  }
  0x5b   :  { %s182_s15 = sshll.u32 %s4430_s14, 4  ;;  %s4356_s16 = smov [#allocation16]   ;;  %s4573_s15 = int_to_ptr.hbm [resolvable:$true] %s182_s15 }
  0x5c   :  { %s160_s22 = sshll.u32 %s4356_s16, 4  ;;  %s3788_s23 = sshra.s32 %s4565_s10, 4  ;;  %s161_s22 = int_to_ptr.vmem [resolvable:$true] %s160_s22  ;;  %s3789_s23 = int_to_ptr.hbm [resolvable:$true] %s3788_s23 }
  0x5d   :  { %s3790_s25 = scalar_lea.hbm %s3789_s23, 400  ;;  %s3792_s26 = scalar_lea.hbm %s4420_s3, 400 }
  0x5e   :  { %p3791_p10 = scmp.ne.s32.totalorder %s3789_s23, %s3790_s25  ;;  %p3793_p11 = scmp.lt.s32.totalorder %s3789_s23, %s4420_s3 }
  0x5f   :  { %p3794_p12 = scmp.lt.s32.totalorder %s3792_s26, %s3790_s25 }
  0x61   :  { %p3795_p13 = por %p3794_p12, %p3793_p11 }
  0x63   :  { %p3796_p0 = pnand %p3795_p13, %p3791_p10 }
  0x65   :  { %3799 = shalt.err (!%p3796_p0)
}
  0x66   :  { %166 = dma.hbm_to_vmem [thread:$0]  %s4565_s10, 6400, %s161_s22, [#allocation17], %s4353_s28, %s4353_s28, %s4354_s1  }
  0x67   :  { %s4357_s18 = smov [#allocation19]   ;;  %s212_s7 = sshll.u32 %s4450_s6, 4  ;;  %s4583_s7 = int_to_ptr.hbm [resolvable:$true] %s212_s7 }
  0x68   :  { %s184_s2 = sshll.u32 %s4357_s18, 4  ;;  %s3812_s3 = sshra.s32 %s4573_s15, 4  ;;  %s185_s2 = int_to_ptr.vmem [resolvable:$true] %s184_s2  ;;  %s3813_s3 = int_to_ptr.hbm [resolvable:$true] %s3812_s3 }
  0x69   :  { %s3814_s17 = scalar_lea.hbm %s3813_s3, 96  ;;  %s3816_s11 = scalar_lea.hbm %s4430_s14, 96 }
  0x6a   :  { %p3815_p1 = scmp.ne.s32.totalorder %s3813_s3, %s3814_s17  ;;  %p3817_p2 = scmp.lt.s32.totalorder %s3813_s3, %s4430_s14 }
  0x6b   :  { %p3818_p3 = scmp.lt.s32.totalorder %s3816_s11, %s3814_s17 }
  0x6d   :  { %p3819_p4 = por %p3818_p3, %p3817_p2 }
  0x6f   :  { %p3820_p5 = pnand %p3819_p4, %p3815_p1 }
  0x71   :  { %3823 = shalt.err (!%p3820_p5)
}
  0x72   :  { %190 = dma.hbm_to_vmem [thread:$0]  %s4573_s15, 1536, %s185_s2, [#allocation20], %s4353_s28, %s4353_s28, %s4354_s1  }
  0x73   :  { %s242_s10 = sshll.u32 %s4470_s4, 4  ;;  %s4358_s0 = smov [#allocation22]   ;;  %s4593_s10 = int_to_ptr.hbm [resolvable:$true] %s242_s10 }
  0x74   :  { %s214_s16 = sshll.u32 %s4358_s0, 4  ;;  %s3836_s14 = sshra.s32 %s4583_s7, 4  ;;  %s215_s16 = int_to_ptr.vmem [resolvable:$true] %s214_s16  ;;  %s3837_s14 = int_to_ptr.hbm [resolvable:$true] %s3836_s14 }
  0x75   :  { %s3838_s22 = scalar_lea.hbm %s3837_s14, 128  ;;  %s3840_s23 = scalar_lea.hbm %s4450_s6, 128 }
  0x76   :  { %p3839_p6 = scmp.ne.s32.totalorder %s3837_s14, %s3838_s22  ;;  %p3841_p7 = scmp.lt.s32.totalorder %s3837_s14, %s4450_s6 }
  0x77   :  { %p3842_p8 = scmp.lt.s32.totalorder %s3840_s23, %s3838_s22 }
  0x79   :  { %p3843_p9 = por %p3842_p8, %p3841_p7 }
  0x7b   :  { %p3844_p10 = pnand %p3843_p9, %p3839_p6 }
  0x7d   :  { %3847 = shalt.err (!%p3844_p10)
}
  0x7e   :  { %220 = dma.hbm_to_vmem [thread:$0]  %s4583_s7, 2048, %s215_s16, [#allocation23], %s4353_s28, %s4353_s28, %s4354_s1  }
  0x7f   :  { %s4359_s15 = smov [#allocation25]   ;;  %s270_s26 = sshll.u32 %s4485_s27, 4  ;;  %s4603_s26 = int_to_ptr.hbm [resolvable:$true] %s270_s26 }
  0x80   :  { %s244_s25 = sshll.u32 %s4359_s15, 4  ;;  %s3860_s6 = sshra.s32 %s4593_s10, 4  ;;  %s245_s25 = int_to_ptr.vmem [resolvable:$true] %s244_s25  ;;  %s3861_s6 = int_to_ptr.hbm [resolvable:$true] %s3860_s6 }
  0x81   :  { %s3862_s18 = scalar_lea.hbm %s3861_s6, 480  ;;  %s3864_s2 = scalar_lea.hbm %s4470_s4, 480 }
  0x82   :  { %p3863_p11 = scmp.ne.s32.totalorder %s3861_s6, %s3862_s18  ;;  %p3865_p12 = scmp.lt.s32.totalorder %s3861_s6, %s4470_s4 }
  0x83   :  { %p3866_p13 = scmp.lt.s32.totalorder %s3864_s2, %s3862_s18 }
  0x85   :  { %p3867_p0 = por %p3866_p13, %p3865_p12 }
  0x87   :  { %p3868_p1 = pnand %p3867_p0, %p3863_p11 }
  0x89   :  { %3871 = shalt.err (!%p3868_p1)
}
  0x8a   :  { %250 = dma.hbm_to_vmem [thread:$0]  %s4593_s10, 7680, %s245_s25, [#allocation26], %s4353_s28, %s4353_s28, %s4354_s1  }
  0x8b   :  { %s296_s7 = sshll.u32 %s4495_s30, 4  ;;  %s4360_s3 = smov [#allocation28]   ;;  %s4613_s7 = int_to_ptr.hbm [resolvable:$true] %s296_s7 }
  0x8c   :  { %s272_s17 = sshll.u32 %s4360_s3, 4  ;;  %s3884_s4 = sshra.s32 %s4603_s26, 4  ;;  %s273_s17 = int_to_ptr.vmem [resolvable:$true] %s272_s17  ;;  %s3885_s4 = int_to_ptr.hbm [resolvable:$true] %s3884_s4 }
  0x8d   :  { %s3886_s11 = scalar_lea.hbm %s3885_s4, 80  ;;  %s3888_s0 = scalar_lea.hbm %s4485_s27, 80 }
  0x8e   :  { %p3887_p2 = scmp.ne.s32.totalorder %s3885_s4, %s3886_s11  ;;  %p3889_p3 = scmp.lt.s32.totalorder %s3885_s4, %s4485_s27 }
  0x8f   :  { %p3890_p4 = scmp.lt.s32.totalorder %s3888_s0, %s3886_s11 }
  0x91   :  { %p3891_p5 = por %p3890_p4, %p3889_p3 }
  0x93   :  { %p3892_p6 = pnand %p3891_p5, %p3887_p2 }
  0x95   :  { %3895 = shalt.err (!%p3892_p6)
}
  0x96   :  { %278 = dma.hbm_to_vmem [thread:$0]  %s4603_s26, 1280, %s273_s17, [#allocation29], %s4353_s28, %s4353_s28, %s4354_s1  }
  0x97   :  { %s4361_s10 = smov [#allocation31]   ;;  %s324_s14 = sshll.u32 %s4510_s24, 4  ;;  %s4623_s14 = int_to_ptr.hbm [resolvable:$true] %s324_s14 }
  0x98   :  { %s298_s16 = sshll.u32 %s4361_s10, 4  ;;  %s3908_s27 = sshra.s32 %s4613_s7, 4  ;;  %s299_s16 = int_to_ptr.vmem [resolvable:$true] %s298_s16  ;;  %s3909_s27 = int_to_ptr.hbm [resolvable:$true] %s3908_s27 }
  0x99   :  { %s3910_s22 = scalar_lea.hbm %s3909_s27, 24  ;;  %s3912_s23 = scalar_lea.hbm %s4495_s30, 24 }
  0x9a   :  { %p3911_p7 = scmp.ne.s32.totalorder %s3909_s27, %s3910_s22  ;;  %p3913_p8 = scmp.lt.s32.totalorder %s3909_s27, %s4495_s30 }
  0x9b   :  { %p3914_p9 = scmp.lt.s32.totalorder %s3912_s23, %s3910_s22 }
  0x9d   :  { %p3915_p10 = por %p3914_p9, %p3913_p8 }
  0x9f   :  { %p3916_p11 = pnand %p3915_p10, %p3911_p7 }
  0xa1   :  { %3919 = shalt.err (!%p3916_p11)
}
  0xa2   :  { %304 = dma.hbm_to_vmem [thread:$0]  %s4613_s7, 384, %s299_s16, [#allocation32], %s4353_s28, %s4353_s28, %s4354_s1  }
  0xa3   :  { %s350_s15 = sshll.u32 %s4520_s5, 4  ;;  %s4362_s25 = smov [#allocation34]   ;;  %s4633_s15 = int_to_ptr.hbm [resolvable:$true] %s350_s15 }
  0xa4   :  { %s326_s26 = sshll.u32 %s4362_s25, 4  ;;  %s3932_s30 = sshra.s32 %s4623_s14, 4  ;;  %s327_s26 = int_to_ptr.vmem [resolvable:$true] %s326_s26  ;;  %s3933_s30 = int_to_ptr.hbm [resolvable:$true] %s3932_s30 }
  0xa5   :  { %s3934_s6 = scalar_lea.hbm %s3933_s30, 48  ;;  %s3936_s18 = scalar_lea.hbm %s4510_s24, 48 }
  0xa6   :  { %p3935_p12 = scmp.ne.s32.totalorder %s3933_s30, %s3934_s6  ;;  %p3937_p13 = scmp.lt.s32.totalorder %s3933_s30, %s4510_s24 }
  0xa7   :  { %p3938_p0 = scmp.lt.s32.totalorder %s3936_s18, %s3934_s6 }
  0xa9   :  { %p3939_p1 = por %p3938_p0, %p3937_p13 }
  0xab   :  { %p3940_p2 = pnand %p3939_p1, %p3935_p12 }
  0xad   :  { %3943 = shalt.err (!%p3940_p2)
}
  0xae   :  { %332 = dma.hbm_to_vmem [thread:$0]  %s4623_s14, 768, %s327_s26, [#allocation35], %s4353_s28, %s4353_s28, %s4354_s1  }
  0xaf   :  { %s4363_s2 = smov [#allocation37]   ;;  %s96_s3 = sshll.u32 %s4395_s13, 4  ;;  %s97_s3 = int_to_ptr.hbm [resolvable:$true] %s96_s3 }
  0xb0   :  { %s352_s7 = sshll.u32 %s4363_s2, 4  ;;  %s3956_s17 = sshra.s32 %s4633_s15, 4  ;;  %s353_s7 = int_to_ptr.vmem [resolvable:$true] %s352_s7  ;;  %s3957_s17 = int_to_ptr.hbm [resolvable:$true] %s3956_s17 }
  0xb1   :  { %s3958_s24 = scalar_lea.hbm %s3957_s17, 16  ;;  %s3960_s4 = scalar_lea.hbm %s4520_s5, 16 }
  0xb2   :  { %p3959_p3 = scmp.ne.s32.totalorder %s3957_s17, %s3958_s24  ;;  %p3961_p4 = scmp.lt.s32.totalorder %s3957_s17, %s4520_s5 }
  0xb3   :  { %p3962_p5 = scmp.lt.s32.totalorder %s3960_s4, %s3958_s24 }
  0xb5   :  { %p3963_p6 = por %p3962_p5, %p3961_p4 }
  0xb7   :  { %p3964_p7 = pnand %p3963_p6, %p3959_p3 }
  0xb9   :  { %3967 = shalt.err (!%p3964_p7)
}
  0xba   :  { %358 = dma.hbm_to_vmem [thread:$0]  %s4633_s15, 256, %s353_s7, [#allocation38], %s4353_s28, %s4353_s28, %s4354_s1  }
  0xbb   :  { %s119_s11 = sshll.u32 %s4405_s21, 4  ;;  %s4364_s0 = smov [#allocation7]   ;;  %s4651_s11 = int_to_ptr.hbm [resolvable:$true] %s119_s11 }
  0xbc   :  { %s98_s10 = sshll.u32 %s4364_s0, 4  ;;  %s3980_s16 = sshra.s32 %s97_s3, 4  ;;  %s99_s10 = int_to_ptr.vmem [resolvable:$true] %s98_s10  ;;  %s3981_s16 = int_to_ptr.hbm [resolvable:$true] %s3980_s16 }
  0xbd   :  { %s3982_s5 = scalar_lea.hbm %s3981_s16, 1  ;;  %s3984_s14 = scalar_lea.hbm %s4395_s13, 1 }
  0xbe   :  { %p3983_p8 = scmp.ne.s32.totalorder %s3981_s16, %s3982_s5  ;;  %p3985_p9 = scmp.lt.s32.totalorder %s3981_s16, %s4395_s13 }
  0xbf   :  { %p3986_p10 = scmp.lt.s32.totalorder %s3984_s14, %s3982_s5 }
  0xc1   :  { %p3987_p11 = por %p3986_p10, %p3985_p9 }
  0xc3   :  { %p3988_p12 = pnand %p3987_p11, %p3983_p8 }
  0xc5   :  { %3991 = shalt.err (!%p3988_p12)
}
  0xc6   :  { %101 = dma.hbm_to_vmem [thread:$0]  %s97_s3, 16, %s99_s10, [#allocation8]  }
  0xc7   :  { %s4365_s27 = smov [#allocation12]   ;;  %s145_s23 = sshll.u32 %s4415_s29, 4  ;;  %s4656_s23 = int_to_ptr.hbm [resolvable:$true] %s145_s23 }
  0xc8   :  { %s121_s22 = sshll.u32 %s4365_s27, 4  ;;  %s4004_s15 = sshra.s32 %s4651_s11, 4  ;;  %s122_s22 = int_to_ptr.vmem [resolvable:$true] %s121_s22  ;;  %s4005_s15 = int_to_ptr.hbm [resolvable:$true] %s4004_s15 }
  0xc9   :  { %s4006_s25 = scalar_lea.hbm %s4005_s15, 128  ;;  %s4008_s13 = scalar_lea.hbm %s4405_s21, 128 }
  0xca   :  { %p4007_p13 = scmp.ne.s32.totalorder %s4005_s15, %s4006_s25  ;;  %p4009_p0 = scmp.lt.s32.totalorder %s4005_s15, %s4405_s21 }
  0xcb   :  { %p4010_p1 = scmp.lt.s32.totalorder %s4008_s13, %s4006_s25 }
  0xcd   :  { %p4011_p2 = por %p4010_p1, %p4009_p0 }
  0xcf   :  { %p4012_p3 = pnand %p4011_p2, %p4007_p13 }
  0xd1   :  { %4015 = shalt.err (!%p4012_p3)
}
  0xd2   :  { %127 = dma.hbm_to_vmem [thread:$0]  %s4651_s11, 2048, %s122_s22, [#allocation11], %s4353_s28, %s4353_s28, %s4354_s1  }
  0xd3   :  { %s172_s26 = sshll.u32 %s4425_s8, 4  ;;  %s4366_s30 = smov [#allocation15]   ;;  %s173_s26 = int_to_ptr.hbm [resolvable:$true] %s172_s26 }
  0xd4   :  { %s147_s6 = sshll.u32 %s4366_s30, 4  ;;  %s4028_s18 = sshra.s32 %s4656_s23, 4  ;;  %s148_s6 = int_to_ptr.vmem [resolvable:$true] %s147_s6  ;;  %s4029_s18 = int_to_ptr.hbm [resolvable:$true] %s4028_s18 }
  0xd5   :  { %s4030_s21 = scalar_lea.hbm %s4029_s18, 48  ;;  %s4032_s2 = scalar_lea.hbm %s4415_s29, 48 }
  0xd6   :  { %p4031_p4 = scmp.ne.s32.totalorder %s4029_s18, %s4030_s21  ;;  %p4033_p5 = scmp.lt.s32.totalorder %s4029_s18, %s4415_s29 }
  0xd7   :  { %p4034_p6 = scmp.lt.s32.totalorder %s4032_s2, %s4030_s21 }
  0xd9   :  { %p4035_p7 = por %p4034_p6, %p4033_p5 }
  0xdb   :  { %p4036_p8 = pnand %p4035_p7, %p4031_p4 }
  0xdd   :  { %4039 = shalt.err (!%p4036_p8)
}
  0xde   :  { %s5274_s7 = sld [smem:[#allocation58_spill]]  ;;  %s4367_s3 = smov [#allocation18]  }
  0xdf   :  { %153 = dma.hbm_to_vmem [thread:$0]  %s4656_s23, 768, %s148_s6, [#allocation14], %s4353_s28, %s4353_s28, %s4354_s1  }
  0xe0   :  { %s174_s17 = sshll.u32 %s4367_s3, 4  ;;  %s4052_s4 = sshra.s32 %s173_s26, 4  ;;  %s175_s17 = int_to_ptr.vmem [resolvable:$true] %s174_s17  ;;  %s4053_s4 = int_to_ptr.hbm [resolvable:$true] %s4052_s4 }
  0xe1   :  { %s4054_s29 = scalar_lea.hbm %s4053_s4, 1  ;;  %s4056_s11 = scalar_lea.hbm %s4425_s8, 1 }
  0xe2   :  { %p4055_p9 = scmp.ne.s32.totalorder %s4053_s4, %s4054_s29  ;;  %p4057_p10 = scmp.lt.s32.totalorder %s4053_s4, %s4425_s8 }
  0xe3   :  { %p4058_p11 = scmp.lt.s32.totalorder %s4056_s11, %s4054_s29 }
  0xe4   :  { %s195_s24 = sshll.u32 %s5274_s7, 4  ;;  %s4674_s24 = int_to_ptr.hbm [resolvable:$true] %s195_s24 }
  0xe5   :  { %p4059_p12 = por %p4058_p11, %p4057_p10 }
  0xe7   :  { %p4060_p13 = pnand %p4059_p12, %p4055_p9 }
  0xe9   :  { %4063 = shalt.err (!%p4060_p13)
}
  0xea   :  { %177 = dma.hbm_to_vmem [thread:$0]  %s173_s26, 16, %s175_s17, [#allocation17]  }
  0xeb   :  { %s5275_s0 = sld [smem:[#allocation62_spill]]  ;;  %s4368_s16 = smov [#allocation21]  }
  0xec   :  { %s197_s5 = sshll.u32 %s4368_s16, 4  ;;  %s4076_s14 = sshra.s32 %s4674_s24, 4  ;;  %s198_s5 = int_to_ptr.vmem [resolvable:$true] %s197_s5  ;;  %s4077_s14 = int_to_ptr.hbm [resolvable:$true] %s4076_s14 }
  0xed   :  { %s4078_s27 = scalar_lea.hbm %s4077_s14, 48  ;;  %s4080_s8 = scalar_lea.hbm %s5274_s7, 48 }
  0xee   :  { %p4079_p0 = scmp.ne.s32.totalorder %s4077_s14, %s4078_s27  ;;  %p4081_p1 = scmp.lt.s32.totalorder %s4077_s14, %s5274_s7 }
  0xef   :  { %p4082_p2 = scmp.lt.s32.totalorder %s4080_s8, %s4078_s27 }
  0xf1   :  { %s227_s10 = sshll.u32 %s5275_s0, 4  ;;  %p4083_p3 = por %p4082_p2, %p4081_p1  ;;  %s4679_s10 = int_to_ptr.hbm [resolvable:$true] %s227_s10 }
  0xf3   :  { %p4084_p4 = pnand %p4083_p3, %p4079_p0 }
  0xf5   :  { %4087 = shalt.err (!%p4084_p4)
}
  0xf6   :  { %s5276_s22 = sld [smem:[#allocation65_spill]]  ;;  %s4369_s23 = smov [#allocation24]  }
  0xf7   :  { %203 = dma.hbm_to_vmem [thread:$0]  %s4674_s24, 768, %s198_s5, [#allocation20], %s4353_s28, %s4353_s28, %s4354_s1  }
  0xf8   :  { %s229_s15 = sshll.u32 %s4369_s23, 4  ;;  %s4100_s13 = sshra.s32 %s4679_s10, 4  ;;  %s230_s15 = int_to_ptr.vmem [resolvable:$true] %s229_s15  ;;  %s4101_s13 = int_to_ptr.hbm [resolvable:$true] %s4100_s13 }
  0xf9   :  { %s4102_s26 = scalar_lea.hbm %s4101_s13, 32  ;;  %s4104_s30 = scalar_lea.hbm %s5275_s0, 32 }
  0xfa   :  { %p4103_p5 = scmp.ne.s32.totalorder %s4101_s13, %s4102_s26  ;;  %p4105_p6 = scmp.lt.s32.totalorder %s4101_s13, %s5275_s0 }
  0xfb   :  { %p4106_p7 = scmp.lt.s32.totalorder %s4104_s30, %s4102_s26 }
  0xfc   :  { %s257_s25 = sshll.u32 %s5276_s22, 4  ;;  %s4689_s25 = int_to_ptr.hbm [resolvable:$true] %s257_s25 }
  0xfd   :  { %p4107_p8 = por %p4106_p7, %p4105_p6 }
  0xff   :  { %p4108_p9 = pnand %p4107_p8, %p4103_p5 }
 0x101   :  { %4111 = shalt.err (!%p4108_p9)
}
 0x102   :  { %s5277_s6 = sld [smem:[#allocation66_spill]]  ;;  %s4370_s21 = smov [#allocation27]  }
 0x103   :  { %235 = dma.hbm_to_vmem [thread:$0]  %s4679_s10, 512, %s230_s15, [#allocation23], %s4353_s28, %s4353_s28, %s4354_s1  }
 0x104   :  { %s259_s2 = sshll.u32 %s4370_s21, 4  ;;  %s4124_s7 = sshra.s32 %s4689_s25, 4  ;;  %s260_s2 = int_to_ptr.vmem [resolvable:$true] %s259_s2  ;;  %s4125_s7 = int_to_ptr.hbm [resolvable:$true] %s4124_s7 }
 0x105   :  { %s4126_s3 = scalar_lea.hbm %s4125_s7, 80  ;;  %s4128_s17 = scalar_lea.hbm %s5276_s22, 80 }
 0x106   :  { %p4127_p10 = scmp.ne.s32.totalorder %s4125_s7, %s4126_s3  ;;  %p4129_p11 = scmp.lt.s32.totalorder %s4125_s7, %s5276_s22 }
 0x107   :  { %p4130_p12 = scmp.lt.s32.totalorder %s4128_s17, %s4126_s3 }
 0x108   :  { %s283_s18 = sshll.u32 %s5277_s6, 4  ;;  %s4699_s18 = int_to_ptr.hbm [resolvable:$true] %s283_s18 }
 0x109   :  { %p4131_p13 = por %p4130_p12, %p4129_p11 }
 0x10b   :  { %p4132_p0 = pnand %p4131_p13, %p4127_p10 }
 0x10d   :  { %4135 = shalt.err (!%p4132_p0)
}
 0x10e   :  { %s5278_s24 = sld [smem:[#allocation67_spill]]  ;;  %s4371_s4 = smov [#allocation30]  }
 0x10f   :  { %265 = dma.hbm_to_vmem [thread:$0]  %s4689_s25, 1280, %s260_s2, [#allocation26], %s4353_s28, %s4353_s28, %s4354_s1  }
 0x110   :  { %s285_s29 = sshll.u32 %s4371_s4, 4  ;;  %s4148_s0 = sshra.s32 %s4699_s18, 4  ;;  %s286_s29 = int_to_ptr.vmem [resolvable:$true] %s285_s29  ;;  %s4149_s0 = int_to_ptr.hbm [resolvable:$true] %s4148_s0 }
 0x111   :  { %s4150_s10 = scalar_lea.hbm %s4149_s0, 24  ;;  %s4152_s16 = scalar_lea.hbm %s5277_s6, 24 }
 0x112   :  { %p4151_p1 = scmp.ne.s32.totalorder %s4149_s0, %s4150_s10  ;;  %p4153_p2 = scmp.lt.s32.totalorder %s4149_s0, %s5277_s6 }
 0x113   :  { %p4154_p3 = scmp.lt.s32.totalorder %s4152_s16, %s4150_s10 }
 0x114   :  { %s309_s11 = sshll.u32 %s5278_s24, 4  ;;  %s4709_s11 = int_to_ptr.hbm [resolvable:$true] %s309_s11 }
 0x115   :  { %p4155_p4 = por %p4154_p3, %p4153_p2 }
 0x117   :  { %p4156_p5 = pnand %p4155_p4, %p4151_p1 }
 0x119   :  { %4159 = shalt.err (!%p4156_p5)
}
 0x11a   :  { %s5279_s5 = sld [smem:[#allocation69_spill]]  ;;  %s4372_s27 = smov [#allocation33]  }
 0x11b   :  { %291 = dma.hbm_to_vmem [thread:$0]  %s4699_s18, 384, %s286_s29, [#allocation29], %s4353_s28, %s4353_s28, %s4354_s1  }
 0x11c   :  { %s311_s8 = sshll.u32 %s4372_s27, 4  ;;  %s4172_s22 = sshra.s32 %s4709_s11, 4  ;;  %s312_s8 = int_to_ptr.vmem [resolvable:$true] %s311_s8  ;;  %s4173_s22 = int_to_ptr.hbm [resolvable:$true] %s4172_s22 }
 0x11d   :  { %s4174_s23 = scalar_lea.hbm %s4173_s22, 400  ;;  %s4176_s15 = scalar_lea.hbm %s5278_s24, 400 }
 0x11e   :  { %p4175_p6 = scmp.ne.s32.totalorder %s4173_s22, %s4174_s23  ;;  %p4177_p7 = scmp.lt.s32.totalorder %s4173_s22, %s5278_s24 }
 0x11f   :  { %p4178_p8 = scmp.lt.s32.totalorder %s4176_s15, %s4174_s23 }
 0x120   :  { %s337_s14 = sshll.u32 %s5279_s5, 4  ;;  %s4719_s14 = int_to_ptr.hbm [resolvable:$true] %s337_s14 }
 0x121   :  { %p4179_p9 = por %p4178_p8, %p4177_p7 }
 0x123   :  { %p4180_p10 = pnand %p4179_p9, %p4175_p6 }
 0x125   :  { %4183 = shalt.err (!%p4180_p10)
}
 0x126   :  { %s5280_s25 = sld [smem:[#allocation70_spill]]  ;;  %s4373_s13 = smov [#allocation36]  }
 0x127   :  { %317 = dma.hbm_to_vmem [thread:$0]  %s4709_s11, 6400, %s312_s8, [#allocation32], %s4353_s28, %s4353_s28, %s4354_s1  }
 0x128   :  { %s339_s26 = sshll.u32 %s4373_s13, 4  ;;  %s4196_s6 = sshra.s32 %s4719_s14, 4  ;;  %s340_s26 = int_to_ptr.vmem [resolvable:$true] %s339_s26  ;;  %s4197_s6 = int_to_ptr.hbm [resolvable:$true] %s4196_s6 }
 0x129   :  { %s4198_s18 = scalar_lea.hbm %s4197_s6, 48  ;;  %s4200_s21 = scalar_lea.hbm %s5279_s5, 48 }
 0x12a   :  { %p4199_p11 = scmp.ne.s32.totalorder %s4197_s6, %s4198_s18  ;;  %p4201_p12 = scmp.lt.s32.totalorder %s4197_s6, %s5279_s5 }
 0x12b   :  { %p4202_p13 = scmp.lt.s32.totalorder %s4200_s21, %s4198_s18 }
 0x12c   :  { %s363_s30 = sshll.u32 %s5280_s25, 4  ;;  %s4729_s30 = int_to_ptr.hbm [resolvable:$true] %s363_s30 }
 0x12d   :  { %p4203_p0 = por %p4202_p13, %p4201_p12 }
 0x12f   :  { %p4204_p1 = pnand %p4203_p0, %p4199_p11 }
 0x131   :  { %4207 = shalt.err (!%p4204_p1)
}
 0x132   :  { %345 = dma.hbm_to_vmem [thread:$0]  %s4719_s14, 768, %s340_s26, [#allocation35], %s4353_s28, %s4353_s28, %s4354_s1  }
 0x133   :  { %s382_s2 = sshll.u32 %s4545_s9, 4  ;;  %s4374_s7 = smov [#allocation39]   ;;  %s4739_s2 = int_to_ptr.hbm [resolvable:$true] %s382_s2 }
 0x134   :  { %s365_s3 = sshll.u32 %s4374_s7, 4  ;;  %s4220_s17 = sshra.s32 %s4729_s30, 4  ;;  %s366_s3 = int_to_ptr.vmem [resolvable:$true] %s365_s3  ;;  %s4221_s17 = int_to_ptr.hbm [resolvable:$true] %s4220_s17 }
 0x135   :  { %s4222_s24 = scalar_lea.hbm %s4221_s17, 16  ;;  %s4224_s4 = scalar_lea.hbm %s5280_s25, 16 }
 0x136   :  { %p4223_p2 = scmp.ne.s32.totalorder %s4221_s17, %s4222_s24  ;;  %p4225_p3 = scmp.lt.s32.totalorder %s4221_s17, %s5280_s25 }
 0x137   :  { %p4226_p4 = scmp.lt.s32.totalorder %s4224_s4, %s4222_s24 }
 0x139   :  { %p4227_p5 = por %p4226_p4, %p4225_p3 }
 0x13b   :  { %p4228_p6 = pnand %p4227_p5, %p4223_p2 }
 0x13d   :  { %4231 = shalt.err (!%p4228_p6)
}
 0x13e   :  { %371 = dma.hbm_to_vmem [thread:$0]  %s4729_s30, 256, %s366_s3, [#allocation38], %s4353_s28, %s4353_s28, %s4354_s1  }
 0x13f   :  { %s4375_s29 = smov [#allocation40]   ;;  %s4244_s0 = sshra.s32 %s4739_s2, 4  ;;  %s4245_s0 = int_to_ptr.hbm [resolvable:$true] %s4244_s0 }
 0x140   :  { %s384_s11 = sshll.u32 %s4375_s29, 4  ;;  %s4246_s10 = scalar_lea.hbm %s4245_s0, 104  ;;  %s385_s11 = int_to_ptr.vmem [resolvable:$true] %s384_s11 }
 0x141   :  { %p4247_p7 = scmp.ne.s32.totalorder %s4245_s0, %s4246_s10  ;;  %s4248_s16 = scalar_lea.hbm %s4545_s9, 104 }
 0x142   :  { %p4249_p8 = scmp.lt.s32.totalorder %s4245_s0, %s4545_s9  ;;  %p4250_p9 = scmp.lt.s32.totalorder %s4248_s16, %s4246_s10 }
 0x144   :  { %p4251_p10 = por %p4250_p9, %p4249_p8 }
 0x146   :  { %p4252_p11 = pnand %p4251_p10, %p4247_p7 }
 0x148   :  { %4255 = shalt.err (!%p4252_p11)
}
 0x149   :  { %390 = dma.hbm_to_vmem [thread:$0]  %s4739_s2, 1664, %s385_s11, [#allocation41], %s4353_s28, %s4353_s28, %s4354_s1  }
 0x14a   :  { %4292 = dma.done.wait [#allocation8], 16  }
 0x14b   :  { %4293 = vsyncadd [#allocation8], 4294967280 }
 0x14c   :  { %4294 = dma.done.wait [#allocation11], 4096  }
 0x14d   :  { %4295 = vsyncadd [#allocation11], 4294963200 }
 0x14e   :  { %4296 = dma.done.wait [#allocation14], 1536  }
 0x14f   :  { %4297 = vsyncadd [#allocation14], 4294965760 }
 0x150   :  { %4298 = dma.done.wait [#allocation17], 6416  }
 0x151   :  { %4299 = vsyncadd [#allocation17], 4294960880 }
 0x152   :  { %4300 = dma.done.wait [#allocation20], 2304  }
 0x153   :  { %4301 = vsyncadd [#allocation20], 4294964992 }
 0x154   :  { %4302 = dma.done.wait [#allocation23], 2560  }
 0x155   :  { %4303 = vsyncadd [#allocation23], 4294964736 }
 0x156   :  { %4304 = dma.done.wait [#allocation26], 8960  }
 0x157   :  { %4305 = vsyncadd [#allocation26], 4294958336 }
 0x158   :  { %4306 = dma.done.wait [#allocation29], 1664  }
 0x159   :  { %4307 = vsyncadd [#allocation29], 4294965632 }
 0x15a   :  { %4308 = dma.done.wait [#allocation32], 6784  }
 0x15b   :  { %4309 = vsyncadd [#allocation32], 4294960512 }
 0x15c   :  { %4310 = dma.done.wait [#allocation35], 1536  }
 0x15d   :  { %4311 = vsyncadd [#allocation35], 4294965760 }
 0x15e   :  { %4312 = dma.done.wait [#allocation38], 512  }
 0x15f   :  { %4313 = vsyncadd [#allocation38], 4294966784 }
 0x160   :  { %4314 = dma.done.wait [#allocation41], 1664  }
 0x161   :  { %4315 = vsyncadd [#allocation41], 4294965632  ;;  %s5281_s9 = sld [smem:[#allocation57_spill]]  ;;  %vm556_vm0 = vcmask 1043456   ;;  %vm528_vm1 = vcmask 883712   ;;  %vm1147_vm2 = vcmask 588800  }
 0x162   :  { %s5282_s28 = sld [smem:[#allocation56_spill]]  ;;  %vm1272_vm3 = vcmask 654336   ;;  %vm1278_vm4 = vcmask 650240   ;;  %vm1636_vm5 = vcmask 785408   ;;  %vm1684_vm6 = vcmask 326656   ;;  %s3297_s25 = sshll.u32 %s4555_s12, 4  ;;  %s3298_s25 = int_to_ptr.hbm [resolvable:$true] %s3297_s25 }
 0x163   :  { %s5283_s1 = sld [smem:[#allocation59_spill]]  ;;  %vm1738_vm7 = vcmask 982016   ;;  %vm1744_vm8 = vcmask 977920   ;;  %vm2311_vm9 = vcmask 781312   ;;  %vm2670_vm10 = vcmask 195584   ;;  %s4280_s13 = sshra.s32 %s3298_s25, 4  ;;  %s4281_s13 = int_to_ptr.hbm [resolvable:$true] %s4280_s13 }
 0x164   :  { %s5284_s5 = sld [smem:[#allocation61_spill]]  ;;  %vm2980_vm11 = vcmask 392192   ;;  %vm3043_vm12 = vcmask 130048   ;;  %vm3249_vm13 = vcmask 818176   ;;  %vm3276_vm14 = vcmask 74752   ;;  %s4282_s26 = scalar_lea.hbm %s4281_s13, 2 }
 0x165   :  { %s5285_s14 = sld [smem:[#allocation60_spill]]  ;;  %p4283_p12 = scmp.ne.s32.totalorder %s4281_s13, %s4282_s26 }
 0x166   :  { %s5286_s27 = sld [smem:[#allocation63_spill]]  ;;  %s4284_s30 = scalar_lea.hbm %s4555_s12, 2 }
 0x167   :  { %v3365_v0 = vld [vmem:[%s5281_s9 + $0xd8] sm:$0xf]  ;;  %v503_v1 = vld [vmem:[%s5281_s9 + $0x68] sm:$0xf]  ;;  %v3364_v3 = vld [vmem:[%s5281_s9 + $0xd0] sm:$0xff]  ;;  %s5287_s8 = sld [smem:[#allocation64_spill]]  ;;  %p4285_p13 = scmp.lt.s32.totalorder %s4281_s13, %s4555_s12 }
 0x168   :  { %v3399_v2 = vld [vmem:[%s5281_s9 + $0x148] sm:$0xf]  ;;  %3366 = vmatpush.msk.msra.mxu0 %vm556_vm0, %v3365_v0  ;;  %3376 = vmatpush.msk.msra.mxu1 %vm556_vm0, %v503_v1  ;;  %v502_v4 = vld [vmem:[%s5281_s9 + $0x60] sm:$0xff]  ;;  %v3423_v6 = vld [vmem:[%s5281_s9 + $0x1b8] sm:$0xf]  ;;  %s5288_s22 = sld [smem:[#allocation68_spill]]  ;;  %p4286_p0 = scmp.lt.s32.totalorder %s4284_s30, %s4282_s26 }
 0x169   :  { %v3398_v5 = vld [vmem:[%s5281_s9 + $0x140] sm:$0xff]  ;;  %3400 = vmatpush.msk.msra.mxu2 %vm556_vm0, %v3399_v2  ;;  %v3363_v7 = vld [vmem:[%s5281_s9 + $0xc8] sm:$0xff]  ;;  %v501_v8 = vld [vmem:[%s5281_s9 + $0x58] sm:$0xff]  ;;  %3424 = vmatpush.msk.msra.mxu3 %vm556_vm0, %v3423_v6  ;;  %s5289_s23 = sld [smem:[#allocation71_spill]] }
 0x16a   :  { %563 = vmatpush.msra.mxu0 %v3364_v3  ;;  %637 = vmatpush.msra.mxu1 %v502_v4  ;;  %v3397_v9 = vld [vmem:[%s5281_s9 + $0x138] sm:$0xff]  ;;  %v3422_v10 = vld [vmem:[%s5281_s9 + $0x1b0] sm:$0xff]  ;;  %v3362_v11 = vld [vmem:[%s5281_s9 + $0xc0] sm:$0xff]  ;;  %s5290_s15 = sld [smem:[#allocation72_spill]]  ;;  %p4287_p1 = por %p4286_p0, %p4285_p13 }
 0x16b   :  { %735 = vmatpush.msra.mxu2 %v3398_v5  ;;  %v500_v12 = vld [vmem:[%s5281_s9 + $0x50] sm:$0xff]  ;;  %v3421_v14 = vld [vmem:[%s5281_s9 + $0x1a8] sm:$0xff]  ;;  %842 = vmatpush.msra.mxu3 %v3422_v10  ;;  %v3361_v15 = vld [vmem:[%s5281_s9 + $0xb8] sm:$0xff] }
 0x16c   :  { %564 = vmatpush.msra.mxu0 %v3363_v7  ;;  %638 = vmatpush.msra.mxu1 %v501_v8  ;;  %v3396_v13 = vld [vmem:[%s5281_s9 + $0x130] sm:$0xff]  ;;  %v499_v16 = vld [vmem:[%s5281_s9 + $0x48] sm:$0xff]  ;;  %v3420_v18 = vld [vmem:[%s5281_s9 + $0x1a0] sm:$0xff]  ;;  %p4288_p2 = pnand %p4287_p1, %p4283_p12 }
 0x16d   :  { %736 = vmatpush.msra.mxu2 %v3397_v9  ;;  %v3395_v17 = vld [vmem:[%s5281_s9 + $0x128] sm:$0xff]  ;;  %843 = vmatpush.msra.mxu3 %v3421_v14  ;;  %v3360_v19 = vld [vmem:[%s5281_s9 + $0xb0] sm:$0xff]  ;;  %v498_v20 = vld [vmem:[%s5281_s9 + $0x40] sm:$0xff] }
 0x16e   :  { %565 = vmatpush.msra.mxu0 %v3362_v11  ;;  %639 = vmatpush.msra.mxu1 %v500_v12  ;;  %v3394_v21 = vld [vmem:[%s5281_s9 + $0x120] sm:$0xff]  ;;  %v3419_v22 = vld [vmem:[%s5281_s9 + $0x198] sm:$0xff]  ;;  %v3359_v23 = vld [vmem:[%s5281_s9 + $0xa8] sm:$0xff] }
 0x16f   :  { %737 = vmatpush.msra.mxu2 %v3396_v13  ;;  %844 = vmatpush.msra.mxu3 %v3420_v18  ;;  %v497_v24 = vld [vmem:[%s5281_s9 + $0x38] sm:$0xff]  ;;  %v3418_v26 = vld [vmem:[%s5281_s9 + $0x190] sm:$0xff]  ;;  %v3358_v27 = vld [vmem:[%s5281_s9 + $0xa0] sm:$0xff] }
 0x170   :  { %566 = vmatpush.msra.mxu0 %v3361_v15  ;;  %640 = vmatpush.msra.mxu1 %v499_v16  ;;  %v3393_v25 = vld [vmem:[%s5281_s9 + $0x118] sm:$0xff]  ;;  %v496_v28 = vld [vmem:[%s5281_s9 + $0x30] sm:$0xff]  ;;  %v3417_v30 = vld [vmem:[%s5281_s9 + $0x188] sm:$0xff] }
 0x171   :  { %738 = vmatpush.msra.mxu2 %v3395_v17  ;;  %845 = vmatpush.msra.mxu3 %v3419_v22  ;;  %v3392_v29 = vld [vmem:[%s5281_s9 + $0x110] sm:$0xff]  ;;  %v3357_v31 = vld [vmem:[%s5281_s9 + $0x98] sm:$0xff]  ;;  %v495_v32 = vld [vmem:[%s5281_s9 + $0x28] sm:$0xff] }
 0x172   :  { %567 = vmatpush.msra.mxu0 %v3360_v19  ;;  %641 = vmatpush.msra.mxu1 %v498_v20  ;;  %v3391_v33 = vld [vmem:[%s5281_s9 + $0x108] sm:$0xff]  ;;  %v3416_v34 = vld [vmem:[%s5281_s9 + $0x180] sm:$0xff]  ;;  %v3356_v35 = vld [vmem:[%s5281_s9 + $0x90] sm:$0xff] }
 0x173   :  { %739 = vmatpush.msra.mxu2 %v3394_v21  ;;  %846 = vmatpush.msra.mxu3 %v3418_v26  ;;  %v494_v36 = vld [vmem:[%s5281_s9 + $0x20] sm:$0xff]  ;;  %v3415_v38 = vld [vmem:[%s5281_s9 + $0x178] sm:$0xff]  ;;  %v3355_v39 = vld [vmem:[%s5281_s9 + $0x88] sm:$0xff] }
 0x174   :  { %568 = vmatpush.msra.mxu0 %v3359_v23  ;;  %642 = vmatpush.msra.mxu1 %v497_v24  ;;  %v3390_v37 = vld [vmem:[%s5281_s9 + $0x100] sm:$0xff]  ;;  %v493_v40 = vld [vmem:[%s5281_s9 + $0x18] sm:$0xff]  ;;  %v3414_v42 = vld [vmem:[%s5281_s9 + $0x170] sm:$0xff] }
 0x175   :  { %740 = vmatpush.msra.mxu2 %v3393_v25  ;;  %847 = vmatpush.msra.mxu3 %v3417_v30  ;;  %v3389_v41 = vld [vmem:[%s5281_s9 + $0xf8] sm:$0xff]  ;;  %v3354_v43 = vld [vmem:[%s5281_s9 + $0x80] sm:$0xff]  ;;  %v492_v44 = vld [vmem:[%s5281_s9 + $0x10] sm:$0xff] }
 0x176   :  { %569 = vmatpush.msra.mxu0 %v3358_v27  ;;  %643 = vmatpush.msra.mxu1 %v496_v28  ;;  %v3388_v45 = vld [vmem:[%s5281_s9 + $0xf0] sm:$0xff]  ;;  %v3413_v46 = vld [vmem:[%s5281_s9 + $0x168] sm:$0xff]  ;;  %v3353_v47 = vld [vmem:[%s5281_s9 + $0x78] sm:$0xff] }
 0x177   :  { %741 = vmatpush.msra.mxu2 %v3392_v29  ;;  %848 = vmatpush.msra.mxu3 %v3416_v34  ;;  %v491_v48 = vld [vmem:[%s5281_s9 + $0x8] sm:$0xff]  ;;  %v3412_v50 = vld [vmem:[%s5281_s9 + $0x160] sm:$0xff]  ;;  %v3352_v51 = vld [vmem:[%s5281_s9 + $0x70] sm:$0xff] }
 0x178   :  { %570 = vmatpush.msra.mxu0 %v3357_v31  ;;  %644 = vmatpush.msra.mxu1 %v495_v32  ;;  %v3387_v49 = vld [vmem:[%s5281_s9 + $0xe8] sm:$0xff]  ;;  %v490_v52 = vld [vmem:[%s5281_s9] sm:$0xff]  ;;  %v3411_v54 = vld [vmem:[%s5281_s9 + $0x158] sm:$0xff] }
 0x179   :  { %742 = vmatpush.msra.mxu2 %v3391_v33  ;;  %849 = vmatpush.msra.mxu3 %v3415_v38  ;;  %v3386_v53 = vld [vmem:[%s5281_s9 + $0xe0] sm:$0xff]  ;;  %v3410_v58 = vld [vmem:[%s5281_s9 + $0x150] sm:$0xff]  ;;  %v482_v61 = vld [vmem:[%s5282_s28 + $0x8] sm:$0xff] }
 0x17a   :  { %571 = vmatpush.msra.mxu0 %v3356_v35  ;;  %645 = vmatpush.msra.mxu1 %v494_v36  ;;  %v504_v55 = vld [vmem:[%s5282_s28 + $0x1] sm:$0xff]  ;;  %v505_v60 = vld [vmem:[%s5282_s28 + $0x9] sm:$0xff]  ;;  %v506_v2 = vld [vmem:[%s5282_s28 + $0x11] sm:$0xff] }
 0x17b   :  { %743 = vmatpush.msra.mxu2 %v3390_v37  ;;  %850 = vmatpush.msra.mxu3 %v3414_v42  ;;  %v481_v56 = vld [vmem:[%s5282_s28] sm:$0xff]  ;;  %v679_v62 = vld [vmem:[%s5282_s28 + $0xa] sm:$0xff]  ;;  %v680_v4 = vld [vmem:[%s5282_s28 + $0x12] sm:$0xff] }
 0x17c   :  { %572 = vmatpush.msra.mxu0 %v3355_v39  ;;  %646 = vmatpush.msra.mxu1 %v493_v40  ;;  %v678_v57 = vld [vmem:[%s5282_s28 + $0x2] sm:$0xff]  ;;  %v786_v63 = vld [vmem:[%s5282_s28 + $0xb] sm:$0xff]  ;;  %v787_v5 = vld [vmem:[%s5282_s28 + $0x13] sm:$0xff] }
 0x17d   :  { %744 = vmatpush.msra.mxu2 %v3389_v41  ;;  %851 = vmatpush.msra.mxu3 %v3413_v46  ;;  %v785_v59 = vld [vmem:[%s5282_s28 + $0x3] sm:$0xff]  ;;  %v483_v3 = vld [vmem:[%s5282_s28 + $0x10] sm:$0xff]  ;;  %v3445_v6 = vld [vmem:[%s5281_s9 + $0x218] sm:$0xff] }
 0x17e   :  { %573 = vmatpush.msra.mxu0 %v3354_v43  ;;  %647 = vmatpush.msra.mxu1 %v492_v44  ;;  %v3447_v0 = vld [vmem:[%s5281_s9 + $0x228] sm:$0xf]  ;;  %v3446_v1 = vld [vmem:[%s5281_s9 + $0x220] sm:$0xff]  ;;  %v3444_v7 = vld [vmem:[%s5281_s9 + $0x210] sm:$0xff] }
 0x17f   :  { %745 = vmatpush.msra.mxu2 %v3388_v45  ;;  %852 = vmatpush.msra.mxu3 %v3412_v50  ;;  %v3443_v8 = vld [vmem:[%s5281_s9 + $0x208] sm:$0xff]  ;;  %v507_v9 = vld [vmem:[%s5282_s28 + $0x19] sm:$0xff]  ;;  %v3440_v15 = vld [vmem:[%s5281_s9 + $0x1f0] sm:$0xff] }
 0x180   :  { %574 = vmatpush.msra.mxu0 %v3353_v47  ;;  %648 = vmatpush.msra.mxu1 %v491_v48  ;;  %v484_v10 = vld [vmem:[%s5282_s28 + $0x18] sm:$0xff]  ;;  %v3442_v12 = vld [vmem:[%s5281_s9 + $0x200] sm:$0xff]  ;;  %v3439_v16 = vld [vmem:[%s5281_s9 + $0x1e8] sm:$0xff] }
 0x181   :  { %746 = vmatpush.msra.mxu2 %v3387_v49  ;;  %853 = vmatpush.msra.mxu3 %v3411_v54  ;;  %v681_v11 = vld [vmem:[%s5282_s28 + $0x1a] sm:$0xff]  ;;  %v682_v19 = vld [vmem:[%s5282_s28 + $0x22] sm:$0xff]  ;;  %v3436_v23 = vld [vmem:[%s5281_s9 + $0x1d0] sm:$0xff] }
 0x182   :  { %575 = vmatpush.msra.mxu0 %v3352_v51  ;;  %649 = vmatpush.msra.mxu1 %v490_v52  ;;  %v788_v13 = vld [vmem:[%s5282_s28 + $0x1b] sm:$0xff]  ;;  %v789_v21 = vld [vmem:[%s5282_s28 + $0x23] sm:$0xff]  ;;  %v790_v29 = vld [vmem:[%s5282_s28 + $0x2b] sm:$0xff] }
 0x183   :  { %747 = vmatpush.msra.mxu2 %v3386_v53  ;;  %3367 = vmatmul.msk.f32.vlgmr.msra.gmra.mxu0 %vm528_vm1, %v504_v55  ;;  %v3441_v14 = vld [vmem:[%s5281_s9 + $0x1f8] sm:$0xff]  ;;  %v508_v17 = vld [vmem:[%s5282_s28 + $0x21] sm:$0xff]  ;;  %v509_v25 = vld [vmem:[%s5282_s28 + $0x29] sm:$0xff] }
 0x184   :  { %3377 = vmatmul.msk.f32.vlgmr.msra.gmra.mxu1 %vm528_vm1, %v481_v56  ;;  %3401 = vmatmul.msk.f32.vlgmr.msra.gmra.mxu2 %vm528_vm1, %v678_v57  ;;  %v485_v18 = vld [vmem:[%s5282_s28 + $0x20] sm:$0xff]  ;;  %v3437_v22 = vld [vmem:[%s5281_s9 + $0x1d8] sm:$0xff]  ;;  %v3435_v24 = vld [vmem:[%s5281_s9 + $0x1c8] sm:$0xff] }
 0x185   :  { %854 = vmatpush.msra.mxu3 %v3410_v58  ;;  %3448 = vmatpush.msk.msrb.mxu0 %vm556_vm0, %v3447_v0  ;;  %v3438_v20 = vld [vmem:[%s5281_s9 + $0x1e0] sm:$0xff]  ;;  %v486_v26 = vld [vmem:[%s5282_s28 + $0x28] sm:$0xff]  ;;  %v510_v30 = vld [vmem:[%s5282_s28 + $0x31] sm:$0xff] }
 0x186   :  { %3425 = vmatmul.msk.f32.vlgmr.msra.gmra.mxu3 %vm528_vm1, %v785_v59  ;;  %v683_v27 = vld [vmem:[%s5282_s28 + $0x2a] sm:$0xff]  ;;  %v3434_v28 = vld [vmem:[%s5281_s9 + $0x1c0] sm:$0xff]  ;;  %v684_v32 = vld [vmem:[%s5282_s28 + $0x32] sm:$0xff] }
 0x187   :  { %949 = vmatpush.msrb.mxu0 %v3446_v1  ;;  %v487_v31 = vld [vmem:[%s5282_s28 + $0x30] sm:$0xff]  ;;  %v511_v34 = vld [vmem:[%s5282_s28 + $0x39] sm:$0xff]  ;;  %v512_v38 = vld [vmem:[%s5282_s28 + $0x41] sm:$0xff] }
 0x188   :  { %v791_v33 = vld [vmem:[%s5282_s28 + $0x33] sm:$0xff]  ;;  %v792_v37 = vld [vmem:[%s5282_s28 + $0x3b] sm:$0xff]  ;;  %v793_v41 = vld [vmem:[%s5282_s28 + $0x43] sm:$0xff] }
 0x189   :  { %950 = vmatpush.msrb.mxu0 %v3445_v6  ;;  %v488_v35 = vld [vmem:[%s5282_s28 + $0x38] sm:$0xff]  ;;  %v489_v39 = vld [vmem:[%s5282_s28 + $0x40] sm:$0xff]  ;;  %v893_v43 = vld [vmem:[%s5282_s28 + $0xc] sm:$0xff] }
 0x18a   :  { %v685_v36 = vld [vmem:[%s5282_s28 + $0x3a] sm:$0xff]  ;;  %v686_v40 = vld [vmem:[%s5282_s28 + $0x42] sm:$0xff]  ;;  %v897_v47 = vld [vmem:[%s5282_s28 + $0x2c] sm:$0xff] }
 0x18b   :  { %3368 = vmatmul.msk.f32.gmra.mxu0 %vm528_vm1, %v505_v60  ;;  %v892_v42 = vld [vmem:[%s5282_s28 + $0x4] sm:$0xff]  ;;  %v894_v44 = vld [vmem:[%s5282_s28 + $0x14] sm:$0xff]  ;;  %v895_v45 = vld [vmem:[%s5282_s28 + $0x1c] sm:$0xff] }
 0x18c   :  { %3378 = vmatmul.msk.f32.gmra.mxu1 %vm528_vm1, %v482_v61  ;;  %3402 = vmatmul.msk.f32.gmra.mxu2 %vm528_vm1, %v679_v62  ;;  %v896_v46 = vld [vmem:[%s5282_s28 + $0x24] sm:$0xff]  ;;  %v898_v48 = vld [vmem:[%s5282_s28 + $0x34] sm:$0xff]  ;;  %v899_v50 = vld [vmem:[%s5282_s28 + $0x3c] sm:$0xff] }
 0x18d   :  { %951 = vmatpush.msrb.mxu0 %v3444_v7  ;;  %v900_v52 = vld [vmem:[%s5282_s28 + $0x44] sm:$0xff]  ;;  %v1026_v56 = vld [vmem:[#allocation10 + $0x70] sm:$0xff]  ;;  %v1025_v58 = vld [vmem:[#allocation10 + $0x68] sm:$0xff] }
 0x18e   :  { %3426 = vmatmul.msk.f32.gmra.mxu3 %vm528_vm1, %v786_v63  ;;  %v1027_v53 = vld [vmem:[#allocation10 + $0x78] sm:$0xff]  ;;  %v1086_v57 = vld [vmem:[#allocation12 + $0x70] sm:$0xff]  ;;  %v1085_v59 = vld [vmem:[#allocation12 + $0x68] sm:$0xff] }
 0x18f   :  { %952 = vmatpush.msrb.mxu0 %v3443_v8  ;;  %v1087_v54 = vld [vmem:[#allocation12 + $0x78] sm:$0xff]  ;;  %1028 = vmatpush.msrb.mxu1 %v1027_v53  ;;  %v1024_v60 = vld [vmem:[#allocation10 + $0x60] sm:$0xff]  ;;  %v1022_v1 = vld [vmem:[#allocation10 + $0x50] sm:$0xff] }
 0x190   :  { %1088 = vmatpush.msrb.mxu2 %v1087_v54  ;;  %v1084_v61 = vld [vmem:[#allocation12 + $0x60] sm:$0xff]  ;;  %v1023_v62 = vld [vmem:[#allocation10 + $0x58] sm:$0xff] }
 0x191   :  { %953 = vmatpush.msrb.mxu0 %v3442_v12  ;;  %1029 = vmatpush.msrb.mxu1 %v1026_v56  ;;  %v1083_v63 = vld [vmem:[#allocation12 + $0x58] sm:$0xff]  ;;  %v1080_v6 = vld [vmem:[#allocation12 + $0x40] sm:$0xff]  ;;  %v1017_v12 = vld [vmem:[#allocation10 + $0x28] sm:$0xff] }
 0x192   :  { %1089 = vmatpush.msrb.mxu2 %v1086_v57  ;;  %v1019_v7 = vld [vmem:[#allocation10 + $0x38] sm:$0xff] }
 0x193   :  { %3369 = vmatmul.msk.f32.gmra.mxu0 %vm528_vm1, %v506_v2  ;;  %1030 = vmatpush.msrb.mxu1 %v1025_v58  ;;  %v1082_v2 = vld [vmem:[#allocation12 + $0x50] sm:$0xff]  ;;  %v1079_v8 = vld [vmem:[#allocation12 + $0x38] sm:$0xff] }
 0x194   :  { %3379 = vmatmul.msk.f32.gmra.mxu1 %vm528_vm1, %v483_v3  ;;  %3403 = vmatmul.msk.f32.gmra.mxu2 %vm528_vm1, %v680_v4  ;;  %v1021_v3 = vld [vmem:[#allocation10 + $0x48] sm:$0xff] }
 0x195   :  { %954 = vmatpush.msrb.mxu0 %v3441_v14  ;;  %1090 = vmatpush.msrb.mxu2 %v1085_v59  ;;  %v1081_v4 = vld [vmem:[#allocation12 + $0x48] sm:$0xff]  ;;  %v1016_v14 = vld [vmem:[#allocation10 + $0x20] sm:$0xff] }
 0x196   :  { %3427 = vmatmul.msk.f32.gmra.mxu3 %vm528_vm1, %v787_v5  ;;  %1031 = vmatpush.msrb.mxu1 %v1024_v60  ;;  %v1020_v5 = vld [vmem:[#allocation10 + $0x40] sm:$0xff] }
 0x197   :  { %955 = vmatpush.msrb.mxu0 %v3440_v15  ;;  %1091 = vmatpush.msrb.mxu2 %v1084_v61  ;;  %v1076_v15 = vld [vmem:[#allocation12 + $0x20] sm:$0xff] }
 0x198   :  { %1032 = vmatpush.msrb.mxu1 %v1023_v62 }
 0x199   :  { %956 = vmatpush.msrb.mxu0 %v3439_v16  ;;  %1092 = vmatpush.msrb.mxu2 %v1083_v63  ;;  %v1015_v16 = vld [vmem:[#allocation10 + $0x18] sm:$0xff] }
 0x19a   :  { %1033 = vmatpush.msrb.mxu1 %v1022_v1 }
 0x19b   :  { %3370 = vmatmul.msk.f32.gmra.mxu0 %vm528_vm1, %v507_v9  ;;  %1093 = vmatpush.msrb.mxu2 %v1082_v2 }
 0x19c   :  { %3380 = vmatmul.msk.f32.gmra.mxu1 %vm528_vm1, %v484_v10  ;;  %3404 = vmatmul.msk.f32.gmra.mxu2 %vm528_vm1, %v681_v11  ;;  %v1018_v10 = vld [vmem:[#allocation10 + $0x30] sm:$0xff] }
 0x19d   :  { %957 = vmatpush.msrb.mxu0 %v3438_v20  ;;  %1034 = vmatpush.msrb.mxu1 %v1021_v3  ;;  %v1078_v11 = vld [vmem:[#allocation12 + $0x30] sm:$0xff] }
 0x19e   :  { %3428 = vmatmul.msk.f32.gmra.mxu3 %vm528_vm1, %v788_v13  ;;  %1094 = vmatpush.msrb.mxu2 %v1081_v4  ;;  %v1077_v13 = vld [vmem:[#allocation12 + $0x28] sm:$0xff]  ;;  %v1074_v20 = vld [vmem:[#allocation12 + $0x10] sm:$0xff] }
 0x19f   :  { %958 = vmatpush.msrb.mxu0 %v3437_v22  ;;  %1035 = vmatpush.msrb.mxu1 %v1020_v5  ;;  %v1073_v22 = vld [vmem:[#allocation12 + $0x8] sm:$0xff] }
 0x1a0   :  { %1095 = vmatpush.msrb.mxu2 %v1080_v6 }
 0x1a1   :  { %959 = vmatpush.msrb.mxu0 %v3436_v23  ;;  %1036 = vmatpush.msrb.mxu1 %v1019_v7  ;;  %v1012_v23 = vld [vmem:[#allocation10] sm:$0xff] }
 0x1a2   :  { %1096 = vmatpush.msrb.mxu2 %v1079_v8 }
 0x1a3   :  { %3371 = vmatmul.msk.f32.gmra.mxu0 %vm528_vm1, %v508_v17  ;;  %1037 = vmatpush.msrb.mxu1 %v1018_v10  ;;  %v1075_v17 = vld [vmem:[#allocation12 + $0x18] sm:$0xff] }
 0x1a4   :  { %3381 = vmatmul.msk.f32.gmra.mxu1 %vm528_vm1, %v485_v18  ;;  %3405 = vmatmul.msk.f32.gmra.mxu2 %vm528_vm1, %v682_v19  ;;  %v1014_v19 = vld [vmem:[#allocation10 + $0x10] sm:$0xff] }
 0x1a5   :  { %960 = vmatpush.msrb.mxu0 %v3435_v24  ;;  %1097 = vmatpush.msrb.mxu2 %v1078_v11  ;;  %v1072_v24 = vld [vmem:[#allocation12] sm:$0xff] }
 0x1a6   :  { %3429 = vmatmul.msk.f32.gmra.mxu3 %vm528_vm1, %v789_v21  ;;  %1038 = vmatpush.msrb.mxu1 %v1017_v12  ;;  %v1013_v21 = vld [vmem:[#allocation10 + $0x8] sm:$0xff] }
 0x1a7   :  { %961 = vmatpush.msrb.mxu0 %v3434_v28  ;;  %1098 = vmatpush.msrb.mxu2 %v1077_v13 }
 0x1a8   :  { %1039 = vmatpush.msrb.mxu1 %v1016_v14 }
 0x1a9   :  { %1099 = vmatpush.msrb.mxu2 %v1076_v15 }
 0x1aa   :  { %1040 = vmatpush.msrb.mxu1 %v1015_v16 }
 0x1ab   :  { %3372 = vmatmul.msk.f32.gmra.mxu0 %vm528_vm1, %v509_v25  ;;  %1100 = vmatpush.msrb.mxu2 %v1075_v17 }
 0x1ac   :  { %3382 = vmatmul.msk.f32.gmra.mxu1 %vm528_vm1, %v486_v26  ;;  %3406 = vmatmul.msk.f32.gmra.mxu2 %vm528_vm1, %v683_v27 }
 0x1ad   :  { %1041 = vmatpush.msrb.mxu1 %v1014_v19  ;;  %1101 = vmatpush.msrb.mxu2 %v1074_v20 }
 0x1ae   :  { %3430 = vmatmul.msk.f32.gmra.mxu3 %vm528_vm1, %v790_v29 }
 0x1af   :  { %1042 = vmatpush.msrb.mxu1 %v1013_v21  ;;  %1102 = vmatpush.msrb.mxu2 %v1073_v22 }
 0x1b1   :  { %1043 = vmatpush.msrb.mxu1 %v1012_v23  ;;  %1103 = vmatpush.msrb.mxu2 %v1072_v24 }
 0x1b3   :  { %3373 = vmatmul.msk.f32.gmra.mxu0 %vm528_vm1, %v510_v30 }
 0x1b4   :  { %3383 = vmatmul.msk.f32.gmra.mxu1 %vm528_vm1, %v487_v31  ;;  %3407 = vmatmul.msk.f32.gmra.mxu2 %vm528_vm1, %v684_v32 }
 0x1b6   :  { %3431 = vmatmul.msk.f32.gmra.mxu3 %vm528_vm1, %v791_v33 }
 0x1bb   :  { %3374 = vmatmul.msk.f32.gmra.mxu0 %vm528_vm1, %v511_v34 }
 0x1bc   :  { %3384 = vmatmul.msk.f32.gmra.mxu1 %vm528_vm1, %v488_v35  ;;  %3408 = vmatmul.msk.f32.gmra.mxu2 %vm528_vm1, %v685_v36 }
 0x1be   :  { %3432 = vmatmul.msk.f32.gmra.mxu3 %vm528_vm1, %v792_v37 }
 0x1c3   :  { %3375 = vmatmul.msk.f32.gmra.mxu0 %vm528_vm1, %v512_v38 }
 0x1c4   :  { %3385 = vmatmul.msk.f32.gmra.mxu1 %vm528_vm1, %v489_v39  ;;  %3409 = vmatmul.msk.f32.gmra.mxu2 %vm528_vm1, %v686_v40  ;;  %v4939_v39 = vld [vmem:[#allocation7] ss:$0 sm:$0xff] }
 0x1c6   :  { %3433 = vmatmul.msk.f32.gmra.mxu3 %vm528_vm1, %v793_v41 }
 0x1cb   :  { %3449 = vmatmul.msk.f32.vlgmr.msrb.gmra.mxu0 %vm528_vm1, %v892_v42 }
 0x1d3   :  { %3450 = vmatmul.msk.f32.gmra.mxu0 %vm528_vm1, %v893_v43 }
 0x1db   :  { %3451 = vmatmul.msk.f32.gmra.mxu0 %vm528_vm1, %v894_v44 }
 0x1e3   :  { %3452 = vmatmul.msk.f32.gmra.mxu0 %vm528_vm1, %v895_v45 }
 0x1eb   :  { %3453 = vmatmul.msk.f32.gmra.mxu0 %vm528_vm1, %v896_v46 }
 0x1f3   :  { %3454 = vmatmul.msk.f32.gmra.mxu0 %vm528_vm1, %v897_v47 }
 0x1fb   :  { %3455 = vmatmul.msk.f32.gmra.mxu0 %vm528_vm1, %v898_v48 }
 0x200   :  { %v4916_v49 = vpop.f32.mrf.mxu0 }
 0x201   :  { %v651_v25 = vpop.f32.mrf.mxu1 }
 0x202   :  { %v652_v34 = vadd.f32 %v651_v25, %v4916_v49 }
 0x203   :  { %3456 = vmatmul.msk.f32.gmra.mxu0 %vm528_vm1, %v899_v50 }
 0x207   :  { %v749_v26 = vpop.f32.mrf.mxu2 }
 0x208   :  { %v4920_v51 = vpop.f32.mrf.mxu0  ;;  %v776_v36 = vadd.f32 %v749_v26, %v652_v34 }
 0x209   :  { %v856_v28 = vpop.f32.mrf.mxu3  ;;  %v654_v29 = vpop.f32.mrf.mxu1 }
 0x20a   :  { %v883_v38 = vadd.f32 %v856_v28, %v776_v36  ;;  %v655_v42 = vadd.f32 %v654_v29, %v4920_v51 }
 0x20b   :  { %3457 = vmatmul.msk.f32.gmra.mxu0 %vm528_vm1, %v900_v52 }
 0x20f   :  { %v752_v31 = vpop.f32.mrf.mxu2 }
 0x210   :  { %v4924_v55 = vpop.f32.mrf.mxu0  ;;  %v777_v44 = vadd.f32 %v752_v31, %v655_v42 }
 0x211   :  { %v859_v32 = vpop.f32.mrf.mxu3  ;;  %v657_v35 = vpop.f32.mrf.mxu1 }
 0x212   :  { %v884_v48 = vadd.f32 %v859_v32, %v777_v44  ;;  %v658_v50 = vadd.f32 %v657_v35, %v4924_v55 }
 0x217   :  { %v755_v37 = vpop.f32.mrf.mxu2 }
 0x218   :  { %v4926_v0 = vpop.f32.mrf.mxu0  ;;  %v778_v54 = vadd.f32 %v755_v37, %v658_v50 }
 0x219   :  { %v862_v40 = vpop.f32.mrf.mxu3  ;;  %v660_v46 = vpop.f32.mrf.mxu1 }
 0x21a   :  { %v885_v57 = vadd.f32 %v862_v40, %v778_v54  ;;  %v661_v60 = vadd.f32 %v660_v46, %v4926_v0 }
 0x21f   :  { %v758_v47 = vpop.f32.mrf.mxu2 }
 0x220   :  { %v4928_v9 = vpop.f32.mrf.mxu0  ;;  %v779_v62 = vadd.f32 %v758_v47, %v661_v60 }
 0x221   :  { %v865_v53 = vpop.f32.mrf.mxu3  ;;  %v663_v51 = vpop.f32.mrf.mxu1 }
 0x222   :  { %v886_v55 = vadd.f32 %v865_v53, %v779_v62  ;;  %v664_v4 = vadd.f32 %v663_v51, %v4928_v9 }
 0x227   :  { %v761_v58 = vpop.f32.mrf.mxu2 }
 0x228   :  { %v4930_v18 = vpop.f32.mrf.mxu0  ;;  %v780_v7 = vadd.f32 %v761_v58, %v664_v4 }
 0x229   :  { %v868_v1 = vpop.f32.mrf.mxu3  ;;  %v666_v2 = vpop.f32.mrf.mxu1 }
 0x22a   :  { %v887_v10 = vadd.f32 %v868_v1, %v780_v7  ;;  %v667_v12 = vadd.f32 %v666_v2, %v4930_v18 }
 0x22f   :  { %v764_v6 = vpop.f32.mrf.mxu2 }
 0x230   :  { %v4932_v27 = vpop.f32.mrf.mxu0  ;;  %v781_v15 = vadd.f32 %v764_v6, %v667_v12  ;;  %v1143_v12 = vld [vmem:[#allocation13 + $0x10] sm:$0xff] }
 0x231   :  { %v871_v0 = vpop.f32.mrf.mxu3  ;;  %v669_v14 = vpop.f32.mrf.mxu1 }
 0x232   :  { %v888_v9 = vadd.f32 %v871_v0, %v781_v15  ;;  %v670_v21 = vadd.f32 %v669_v14, %v4932_v27  ;;  %v1145_v14 = vld [vmem:[#allocation13 + $0x20] sm:$0xff]  ;;  %v1146_v15 = vld [vmem:[#allocation13 + $0x28] sm:$0xf] }
 0x237   :  { %v767_v17 = vpop.f32.mrf.mxu2 }
 0x238   :  { %v4934_v30 = vpop.f32.mrf.mxu0  ;;  %v782_v23 = vadd.f32 %v767_v17, %v670_v21  ;;  %v1202_v17 = vld [vmem:[#allocation15 + $0x8] sm:$0xff] }
 0x239   :  { %v874_v19 = vpop.f32.mrf.mxu3  ;;  %v672_v25 = vpop.f32.mrf.mxu1  ;;  %v1206_v21 = vld [vmem:[#allocation15 + $0x28] sm:$0xf] }
 0x23a   :  { %v889_v26 = vadd.f32 %v874_v19, %v782_v23  ;;  %v673_v29 = vadd.f32 %v672_v25, %v4934_v30  ;;  %v1204_v19 = vld [vmem:[#allocation15 + $0x18] sm:$0xff]  ;;  %v1293_v25 = vld [vmem:[#allocation16 + $0x40] sm:$0xff] }
 0x23f   :  { %v770_v18 = vpop.f32.mrf.mxu2 }
 0x240   :  { %v4936_v33 = vpop.f32.mrf.mxu0  ;;  %v783_v34 = vadd.f32 %v770_v18, %v673_v29  ;;  %v1292_v18 = vld [vmem:[#allocation16 + $0x38] sm:$0xff] }
 0x241   :  { %v877_v32 = vpop.f32.mrf.mxu3  ;;  %v675_v27 = vpop.f32.mrf.mxu1  ;;  %v1310_v29 = vld [vmem:[#allocation16 + $0x98] sm:$0xff] }
 0x242   :  { %v890_v36 = vadd.f32 %v877_v32, %v783_v34  ;;  %v676_v40 = vadd.f32 %v675_v27, %v4936_v33  ;;  %v1420_v32 = vld [vmem:[#allocation16 + $0xe8] sm:$0xff]  ;;  %1332 = vmatpush.msra.mxu0 %v1310_v29  ;;  %v1488_v34 = vld [vmem:[#allocation16 + $0x138] sm:$0xff]  ;;  %v1289_v27 = vld [vmem:[#allocation16 + $0x20] sm:$0xff] }
 0x243   :  { %1442 = vmatpush.msra.mxu2 %v1420_v32  ;;  %v1548_v29 = vld [vmem:[#allocation16 + $0x148] sm:$0xff] }
 0x247   :  { %v773_v37 = vpop.f32.mrf.mxu2 }
 0x248   :  { %v963_v41 = vpop.f32.mrf.mxu0  ;;  %v784_v42 = vadd.f32 %v773_v37, %v676_v40  ;;  %v1487_v37 = vld [vmem:[#allocation16 + $0x130] sm:$0xff]  ;;  %v1288_v40 = vld [vmem:[#allocation16 + $0x18] sm:$0xff] }
 0x249   :  { %v990_v43 = vadd.f32 %v963_v41, %v883_v38  ;;  %v880_v44 = vpop.f32.mrf.mxu3 }
 0x24a   :  { %v891_v30 = vadd.f32 %v880_v44, %v784_v42  ;;  %v1486_v42 = vld [vmem:[#allocation16 + $0x128] sm:$0xff]  ;;  %v1307_v44 = vld [vmem:[#allocation16 + $0x80] sm:$0xff] }
 0x24b   :  { %v1003_v45 = vadd.f32 %v4939_v39, %v990_v43 }
 0x24d   :  { %1044 = vmatmul.f32.vlgmr.msrb.gmra.mxu1 %v1003_v45  ;;  %1104 = vmatmul.f32.vlgmr.msrb.gmra.mxu2 %v1003_v45 }
 0x250   :  { %v966_v49 = vpop.f32.mrf.mxu0 }
 0x251   :  { %v991_v52 = vadd.f32 %v966_v49, %v884_v48 }
 0x253   :  { %v1004_v56 = vadd.f32 %v4939_v39, %v991_v52 }
 0x255   :  { %1047 = vmatmul.f32.gmra.mxu1 %v1004_v56  ;;  %1107 = vmatmul.f32.gmra.mxu2 %v1004_v56 }
 0x258   :  { %v969_v59 = vpop.f32.mrf.mxu0 }
 0x259   :  { %v992_v61 = vadd.f32 %v969_v59, %v885_v57 }
 0x25b   :  { %v1005_v63 = vadd.f32 %v4939_v39, %v992_v61 }
 0x25d   :  { %1050 = vmatmul.f32.gmra.mxu1 %v1005_v63  ;;  %1110 = vmatmul.f32.gmra.mxu2 %v1005_v63 }
 0x260   :  { %v972_v3 = vpop.f32.mrf.mxu0 }
 0x261   :  { %v993_v5 = vadd.f32 %v972_v3, %v886_v55 }
 0x263   :  { %v1006_v8 = vadd.f32 %v4939_v39, %v993_v5 }
 0x265   :  { %1053 = vmatmul.f32.gmra.mxu1 %v1006_v8  ;;  %1113 = vmatmul.f32.gmra.mxu2 %v1006_v8 }
 0x268   :  { %v975_v11 = vpop.f32.mrf.mxu0 }
 0x269   :  { %v994_v13 = vadd.f32 %v975_v11, %v887_v10  ;;  %v1141_v10 = vld [vmem:[#allocation13] sm:$0xff]  ;;  %v1142_v11 = vld [vmem:[#allocation13 + $0x8] sm:$0xff] }
 0x26b   :  { %v1007_v16 = vadd.f32 %v4939_v39, %v994_v13  ;;  %v1144_v13 = vld [vmem:[#allocation13 + $0x18] sm:$0xff] }
 0x26d   :  { %1056 = vmatmul.f32.gmra.mxu1 %v1007_v16  ;;  %1116 = vmatmul.f32.gmra.mxu2 %v1007_v16  ;;  %v1201_v16 = vld [vmem:[#allocation15] sm:$0xff] }
 0x270   :  { %v978_v20 = vpop.f32.mrf.mxu0 }
 0x271   :  { %v995_v22 = vadd.f32 %v978_v20, %v888_v9  ;;  %v1203_v9 = vld [vmem:[#allocation15 + $0x10] sm:$0xff]  ;;  %v1205_v20 = vld [vmem:[#allocation15 + $0x20] sm:$0xff] }
 0x273   :  { %v1008_v24 = vadd.f32 %v4939_v39, %v995_v22 }
 0x275   :  { %1059 = vmatmul.f32.gmra.mxu1 %v1008_v24  ;;  %1119 = vmatmul.f32.gmra.mxu2 %v1008_v24  ;;  %v1294_v24 = vld [vmem:[#allocation16 + $0x48] sm:$0xff] }
 0x276   :  { %1379 = vmatpush.msra.mxu1 %v1294_v24  ;;  %v1550_v24 = vld [vmem:[#allocation16 + $0x158] sm:$0xff] }
 0x278   :  { %v981_v28 = vpop.f32.mrf.mxu0  ;;  %1380 = vmatpush.msra.mxu1 %v1293_v25 }
 0x279   :  { %v996_v31 = vadd.f32 %v981_v28, %v889_v26  ;;  %v1291_v28 = vld [vmem:[#allocation16 + $0x30] sm:$0xff] }
 0x27a   :  { %1381 = vmatpush.msra.mxu1 %v1292_v18  ;;  %v1549_v18 = vld [vmem:[#allocation16 + $0x150] sm:$0xff] }
 0x27b   :  { %v1009_v35 = vadd.f32 %v4939_v39, %v996_v31  ;;  %v1290_v31 = vld [vmem:[#allocation16 + $0x28] sm:$0xff] }
 0x27c   :  { %1382 = vmatpush.msra.mxu1 %v1291_v28 }
 0x27d   :  { %1062 = vmatmul.f32.gmra.mxu1 %v1009_v35  ;;  %1122 = vmatmul.f32.gmra.mxu2 %v1009_v35  ;;  %v1309_v35 = vld [vmem:[#allocation16 + $0x90] sm:$0xff] }
 0x27e   :  { %1383 = vmatpush.msra.mxu1 %v1290_v31  ;;  %1333 = vmatpush.msra.mxu0 %v1309_v35 }
 0x280   :  { %v984_v38 = vpop.f32.mrf.mxu0  ;;  %1384 = vmatpush.msra.mxu1 %v1289_v27  ;;  %v1547_v27 = vld [vmem:[#allocation16 + $0x140] sm:$0xff] }
 0x281   :  { %v997_v41 = vadd.f32 %v984_v38, %v890_v36  ;;  %v1419_v36 = vld [vmem:[#allocation16 + $0xe0] sm:$0xff]  ;;  %v1308_v38 = vld [vmem:[#allocation16 + $0x88] sm:$0xff] }
 0x282   :  { %1443 = vmatpush.msra.mxu2 %v1419_v36  ;;  %1334 = vmatpush.msra.mxu0 %v1308_v38 }
 0x283   :  { %v1010_v43 = vadd.f32 %v4939_v39, %v997_v41  ;;  %v1418_v41 = vld [vmem:[#allocation16 + $0xd8] sm:$0xff]  ;;  %1385 = vmatpush.msra.mxu1 %v1288_v40 }
 0x284   :  { %1444 = vmatpush.msra.mxu2 %v1418_v41  ;;  %1335 = vmatpush.msra.mxu0 %v1307_v44 }
 0x285   :  { %1065 = vmatmul.f32.gmra.mxu1 %v1010_v43  ;;  %1125 = vmatmul.f32.gmra.mxu2 %v1010_v43 }
 0x288   :  { %v987_v45 = vpop.f32.mrf.mxu0 }
 0x289   :  { %v998_v46 = vadd.f32 %v987_v45, %v891_v30  ;;  %v1287_v30 = vld [vmem:[#allocation16 + $0x10] sm:$0xff] }
 0x28a   :  { %v1417_v45 = vld [vmem:[#allocation16 + $0xd0] sm:$0xff]  ;;  %1386 = vmatpush.msra.mxu1 %v1287_v30 }
 0x28b   :  { %v1011_v47 = vadd.f32 %v4939_v39, %v998_v46  ;;  %v1485_v46 = vld [vmem:[#allocation16 + $0x120] sm:$0xff]  ;;  %1445 = vmatpush.msra.mxu2 %v1417_v45 }
 0x28d   :  { %1068 = vmatmul.f32.gmra.mxu1 %v1011_v47  ;;  %1128 = vmatmul.f32.gmra.mxu2 %v1011_v47  ;;  %v1306_v47 = vld [vmem:[#allocation16 + $0x78] sm:$0xff] }
 0x28e   :  { %1336 = vmatpush.msra.mxu0 %v1306_v47 }
 0x2ca   :  { %v1045_v48 = vpop.f32.mrf.mxu1 }
 0x2d0   :  { %v1105_v49 = vpop.f32.mrf.mxu2 }
 0x2d1   :  { %v1132_v0 = vmax.f32 %v1045_v48, %v1105_v49  ;;  %v1286_v48 = vld [vmem:[#allocation16 + $0x8] sm:$0xff] }
 0x2d2   :  { %v1048_v50 = vpop.f32.mrf.mxu1  ;;  %v1416_v49 = vld [vmem:[#allocation16 + $0xc8] sm:$0xff]  ;;  %1387 = vmatpush.msra.mxu1 %v1286_v48 }
 0x2d3   :  { %1446 = vmatpush.msra.mxu2 %v1416_v49 }
 0x2d8   :  { %v1108_v52 = vpop.f32.mrf.mxu2 }
 0x2d9   :  { %v1133_v8 = vmax.f32 %v1048_v50, %v1108_v52  ;;  %v1484_v50 = vld [vmem:[#allocation16 + $0x118] sm:$0xff]  ;;  %v1305_v52 = vld [vmem:[#allocation16 + $0x70] sm:$0xff] }
 0x2da   :  { %v1051_v53 = vpop.f32.mrf.mxu1  ;;  %1337 = vmatpush.msra.mxu0 %v1305_v52 }
 0x2e0   :  { %v1111_v33 = vpop.f32.mrf.mxu2 }
 0x2e1   :  { %v1134_v7 = vmax.f32 %v1051_v53, %v1111_v33  ;;  %v1285_v53 = vld [vmem:[#allocation16] sm:$0xff] }
 0x2e2   :  { %v1054_v54 = vpop.f32.mrf.mxu1  ;;  %v1415_v33 = vld [vmem:[#allocation16 + $0xc0] sm:$0xff]  ;;  %1388 = vmatpush.msra.mxu1 %v1285_v53 }
 0x2e3   :  { %1447 = vmatpush.msra.mxu2 %v1415_v33 }
 0x2e8   :  { %v1114_v56 = vpop.f32.mrf.mxu2 }
 0x2e9   :  { %v1135_v6 = vmax.f32 %v1054_v54, %v1114_v56  ;;  %v1483_v54 = vld [vmem:[#allocation16 + $0x110] sm:$0xff]  ;;  %v1304_v56 = vld [vmem:[#allocation16 + $0x68] sm:$0xff] }
 0x2ea   :  { %v1057_v51 = vpop.f32.mrf.mxu1  ;;  %1338 = vmatpush.msra.mxu0 %v1304_v56 }
 0x2f0   :  { %v1117_v57 = vpop.f32.mrf.mxu2 }
 0x2f1   :  { %v1136_v5 = vmax.f32 %v1057_v51, %v1117_v57  ;;  %v1414_v51 = vld [vmem:[#allocation16 + $0xb8] sm:$0xff]  ;;  %v1482_v57 = vld [vmem:[#allocation16 + $0x108] sm:$0xff] }
 0x2f2   :  { %v1060_v58 = vpop.f32.mrf.mxu1  ;;  %1448 = vmatpush.msra.mxu2 %v1414_v51 }
 0x2f8   :  { %v1120_v59 = vpop.f32.mrf.mxu2 }
 0x2f9   :  { %v1137_v4 = vmax.f32 %v1060_v58, %v1120_v59  ;;  %v1303_v59 = vld [vmem:[#allocation16 + $0x60] sm:$0xff] }
 0x2fa   :  { %v1063_v60 = vpop.f32.mrf.mxu1  ;;  %1339 = vmatpush.msra.mxu0 %v1303_v59  ;;  %v1634_v59 = vld [vmem:[#allocation19 + $0x50] sm:$0xff] }
 0x300   :  { %v1123_v61 = vpop.f32.mrf.mxu2 }
 0x301   :  { %v1138_v3 = vmax.f32 %v1063_v60, %v1123_v61  ;;  %v1413_v60 = vld [vmem:[#allocation16 + $0xb0] sm:$0xff]  ;;  %v1481_v61 = vld [vmem:[#allocation16 + $0x100] sm:$0xff] }
 0x302   :  { %v1066_v62 = vpop.f32.mrf.mxu1  ;;  %1449 = vmatpush.msra.mxu2 %v1413_v60  ;;  %v1633_v60 = vld [vmem:[#allocation19 + $0x48] sm:$0xff] }
 0x308   :  { %v1126_v63 = vpop.f32.mrf.mxu2 }
 0x309   :  { %v1139_v2 = vmax.f32 %v1066_v62, %v1126_v63  ;;  %v1302_v62 = vld [vmem:[#allocation16 + $0x58] sm:$0xff]  ;;  %v1412_v63 = vld [vmem:[#allocation16 + $0xa8] sm:$0xff] }
 0x30a   :  { %v1069_v1 = vpop.f32.mrf.mxu1  ;;  %1340 = vmatpush.msra.mxu0 %v1302_v62  ;;  %1450 = vmatpush.msra.mxu2 %v1412_v63  ;;  %v1631_v62 = vld [vmem:[#allocation19 + $0x38] sm:$0xff] }
 0x310   :  { %v1129_v39 = vpop.f32.mrf.mxu2 }
 0x311   :  { %v1140_v55 = vmax.f32 %v1069_v1, %v1129_v39  ;;  %v1480_v1 = vld [vmem:[#allocation16 + $0xf8] sm:$0xff]  ;;  %v1301_v39 = vld [vmem:[#allocation16 + $0x50] sm:$0xff] }
 0x312   :  { %1341 = vmatpush.msra.mxu0 %v1301_v39  ;;  %v1629_v39 = vld [vmem:[#allocation19 + $0x28] sm:$0xff] }
 0x313   :  { %1173 = vmatpush.msrb.mxu3 %v1140_v55 }
 0x315   :  { %1174 = vmatpush.msrb.mxu3 %v1139_v2 }
 0x317   :  { %1175 = vmatpush.msrb.mxu3 %v1138_v3 }
 0x319   :  { %1176 = vmatpush.msrb.mxu3 %v1137_v4 }
 0x31b   :  { %1177 = vmatpush.msrb.mxu3 %v1136_v5 }
 0x31d   :  { %1178 = vmatpush.msrb.mxu3 %v1135_v6 }
 0x31f   :  { %1179 = vmatpush.msrb.mxu3 %v1134_v7 }
 0x321   :  { %1180 = vmatpush.msrb.mxu3 %v1133_v8 }
 0x323   :  { %1181 = vmatpush.msrb.mxu3 %v1132_v0 }
 0x324   :  { %3458 = vmatmul.msk.f32.vlgmr.msrb.gmra.mxu3 %vm1147_vm2, %v1141_v10 }
 0x325   :  { %1232 = vmatpush.msra.mxu3 %v1140_v55  ;;  %v1411_v55 = vld [vmem:[#allocation16 + $0xa0] sm:$0xff] }
 0x326   :  { %1451 = vmatpush.msra.mxu2 %v1411_v55  ;;  %v1628_v55 = vld [vmem:[#allocation19 + $0x20] sm:$0xff] }
 0x327   :  { %1233 = vmatpush.msra.mxu3 %v1139_v2  ;;  %v1479_v2 = vld [vmem:[#allocation16 + $0xf0] sm:$0xff] }
 0x329   :  { %1234 = vmatpush.msra.mxu3 %v1138_v3 }
 0x32b   :  { %1235 = vmatpush.msra.mxu3 %v1137_v4 }
 0x32c   :  { %3459 = vmatmul.msk.f32.gmra.mxu3 %vm1147_vm2, %v1142_v11 }
 0x32d   :  { %1236 = vmatpush.msra.mxu3 %v1136_v5 }
 0x32f   :  { %1237 = vmatpush.msra.mxu3 %v1135_v6 }
 0x331   :  { %1238 = vmatpush.msra.mxu3 %v1134_v7 }
 0x333   :  { %1239 = vmatpush.msra.mxu3 %v1133_v8 }
 0x334   :  { %3460 = vmatmul.msk.f32.gmra.mxu3 %vm1147_vm2, %v1143_v12  ;;  %v1555_v12 = vld [vmem:[#allocation16 + $0x180] sm:$0xff] }
 0x335   :  { %1240 = vmatpush.msra.mxu3 %v1132_v0  ;;  %v1556_v0 = vld [vmem:[#allocation16 + $0x188] sm:$0xff] }
 0x336   :  { %1578 = vmatpush.msrb.mxu0 %v1556_v0 }
 0x337   :  { %1510 = vmatpush.msrb.mxu3 %v1488_v34 }
 0x338   :  { %1579 = vmatpush.msrb.mxu0 %v1555_v12 }
 0x339   :  { %1511 = vmatpush.msrb.mxu3 %v1487_v37 }
 0x33b   :  { %1512 = vmatpush.msrb.mxu3 %v1486_v42 }
 0x33c   :  { %3461 = vmatmul.msk.f32.gmra.mxu3 %vm1147_vm2, %v1144_v13  ;;  %v1554_v13 = vld [vmem:[#allocation16 + $0x178] sm:$0xff] }
 0x33d   :  { %1513 = vmatpush.msrb.mxu3 %v1485_v46  ;;  %1580 = vmatpush.msrb.mxu0 %v1554_v13 }
 0x33f   :  { %1514 = vmatpush.msrb.mxu3 %v1484_v50 }
 0x341   :  { %1515 = vmatpush.msrb.mxu3 %v1483_v54 }
 0x343   :  { %1516 = vmatpush.msrb.mxu3 %v1482_v57 }
 0x344   :  { %3462 = vmatmul.msk.f32.gmra.mxu3 %vm1147_vm2, %v1145_v14  ;;  %v1553_v14 = vld [vmem:[#allocation16 + $0x170] sm:$0xff] }
 0x345   :  { %1517 = vmatpush.msrb.mxu3 %v1481_v61  ;;  %1581 = vmatpush.msrb.mxu0 %v1553_v14  ;;  %v1632_v61 = vld [vmem:[#allocation19 + $0x40] sm:$0xff] }
 0x347   :  { %1518 = vmatpush.msrb.mxu3 %v1480_v1  ;;  %v1630_v1 = vld [vmem:[#allocation19 + $0x30] sm:$0xff] }
 0x349   :  { %1519 = vmatpush.msrb.mxu3 %v1479_v2  ;;  %v1627_v2 = vld [vmem:[#allocation19 + $0x18] sm:$0xff] }
 0x34c   :  { %3463 = vmatmul.msk.f32.gmra.mxu3 %vm1147_vm2, %v1146_v15 }
 0x354   :  { %3464 = vmatmul.msk.f32.vlgmr.msra.gmra.mxu3 %vm1147_vm2, %v1201_v16  ;;  %v1552_v16 = vld [vmem:[#allocation16 + $0x168] sm:$0xff] }
 0x355   :  { %1582 = vmatpush.msrb.mxu0 %v1552_v16 }
 0x35c   :  { %3465 = vmatmul.msk.f32.gmra.mxu3 %vm1147_vm2, %v1202_v17 }
 0x364   :  { %3466 = vmatmul.msk.f32.gmra.mxu3 %vm1147_vm2, %v1203_v9 }
 0x36c   :  { %3467 = vmatmul.msk.f32.gmra.mxu3 %vm1147_vm2, %v1204_v19  ;;  %v1551_v19 = vld [vmem:[#allocation16 + $0x160] sm:$0xff] }
 0x36d   :  { %1583 = vmatpush.msrb.mxu0 %v1551_v19 }
 0x36f   :  { %1584 = vmatpush.msrb.mxu0 %v1550_v24 }
 0x371   :  { %1585 = vmatpush.msrb.mxu0 %v1549_v18 }
 0x373   :  { %1586 = vmatpush.msrb.mxu0 %v1548_v29 }
 0x374   :  { %3468 = vmatmul.msk.f32.gmra.mxu3 %vm1147_vm2, %v1205_v20 }
 0x375   :  { %1587 = vmatpush.msrb.mxu0 %v1547_v27 }
 0x37c   :  { %3469 = vmatmul.msk.f32.gmra.mxu3 %vm1147_vm2, %v1206_v21 }
 0x3a7   :  { %v4970_v22 = vpop.f32.mrf.mxu3 }
 0x3af   :  { %v4972_v23 = vpop.f32.mrf.mxu3 }
 0x3b7   :  { %v4974_v26 = vpop.f32.mrf.mxu3 }
 0x3bf   :  { %v4976_v43 = vpop.f32.mrf.mxu3 }
 0x3c7   :  { %v4978_v58 = vpop.f32.mrf.mxu3 }
 0x3cf   :  { %v4980_v3 = vpop.f32.mrf.mxu3 }
 0x3d7   :  { %v1242_v4 = vpop.f32.mrf.mxu3 }
 0x3d8   :  { %v1260_v5 = vmax.f32 %v4970_v22, %v1242_v4  ;;  %v1626_v4 = vld [vmem:[#allocation19 + $0x10] sm:$0xff] }
 0x3da   :  { %v1266_v6 = vmax.f32 %v1260_v5, 0.0  ;;  %v1625_v5 = vld [vmem:[#allocation19 + $0x8] sm:$0xff] }
 0x3dc   :  { %1273 = vst.msk [vmem:[#allocation2] sm:$0xff] %vm1272_vm3, %v1266_v6  ;;  %v1624_v6 = vld [vmem:[#allocation19] sm:$0xff] }
 0x3df   :  { %v1245_v7 = vpop.f32.mrf.mxu3 }
 0x3e0   :  { %v1261_v8 = vmax.f32 %v4972_v23, %v1245_v7 }
 0x3e2   :  { %v1267_v10 = vmax.f32 %v1261_v8, 0.0 }
 0x3e3   :  { %v1280_v11 = vld [vmem:[#allocation2] sm:$0xff] }
 0x3e4   :  { %1274 = vst.msk [vmem:[#allocation2 + $0x8] sm:$0xff] %vm1272_vm3, %v1267_v10  ;;  %3475 = vmatmul.msk.f32.vlgmr.msra.gmra.mxu1 %vm1272_vm3, %v1280_v11 }
 0x3e7   :  { %v1248_v15 = vpop.f32.mrf.mxu3 }
 0x3e8   :  { %v1262_v17 = vmax.f32 %v4974_v26, %v1248_v15 }
 0x3ea   :  { %v1268_v9 = vmax.f32 %v1262_v17, 0.0 }
 0x3eb   :  { %v1295_v20 = vld [vmem:[#allocation2 + $0x1] sm:$0xff] }
 0x3ec   :  { %v1281_v21 = vld [vmem:[#allocation2 + $0x8] sm:$0xff]  ;;  %1275 = vst.msk [vmem:[#allocation2 + $0x10] sm:$0xff] %vm1272_vm3, %v1268_v9  ;;  %3470 = vmatmul.msk.f32.vlgmr.msra.gmra.mxu0 %vm1272_vm3, %v1295_v20  ;;  %v3730_v9 = vld [vmem:[#allocation18] ss:$0 sm:$0xff] }
 0x3ed   :  { %v1405_v22 = vld [vmem:[#allocation2 + $0x2] sm:$0xff]  ;;  %3476 = vmatmul.msk.f32.gmra.mxu1 %vm1272_vm3, %v1281_v21 }
 0x3ee   :  { %v1473_v23 = vld [vmem:[#allocation2 + $0x3] sm:$0xff]  ;;  %3480 = vmatmul.msk.f32.vlgmr.msra.gmra.mxu2 %vm1272_vm3, %v1405_v22 }
 0x3ef   :  { %3485 = vmatmul.msk.f32.vlgmr.msrb.gmra.mxu3 %vm1272_vm3, %v1473_v23  ;;  %v1251_v25 = vpop.f32.mrf.mxu3  ;;  %v1541_v33 = vld [vmem:[#allocation2 + $0x4] sm:$0xff] }
 0x3f0   :  { %v1263_v26 = vmax.f32 %v4976_v43, %v1251_v25 }
 0x3f2   :  { %v1269_v28 = vmax.f32 %v1263_v26, 0.0 }
 0x3f3   :  { %v1296_v31 = vld [vmem:[#allocation2 + $0x9] sm:$0xff] }
 0x3f4   :  { %v1282_v32 = vld [vmem:[#allocation2 + $0x10] sm:$0xff]  ;;  %1276 = vst.msk [vmem:[#allocation2 + $0x18] sm:$0xff] %vm1272_vm3, %v1269_v28  ;;  %3471 = vmatmul.msk.f32.gmra.mxu0 %vm1272_vm3, %v1296_v31 }
 0x3f5   :  { %v1406_v34 = vld [vmem:[#allocation2 + $0xa] sm:$0xff]  ;;  %3477 = vmatmul.msk.f32.gmra.mxu1 %vm1272_vm3, %v1282_v32 }
 0x3f6   :  { %v1474_v35 = vld [vmem:[#allocation2 + $0xb] sm:$0xff]  ;;  %3481 = vmatmul.msk.f32.gmra.mxu2 %vm1272_vm3, %v1406_v34 }
 0x3f7   :  { %3486 = vmatmul.msk.f32.gmra.mxu3 %vm1272_vm3, %v1474_v35  ;;  %v1254_v36 = vpop.f32.mrf.mxu3  ;;  %v1542_v54 = vld [vmem:[#allocation2 + $0xc] sm:$0xff] }
 0x3f8   :  { %v1264_v37 = vmax.f32 %v4978_v58, %v1254_v36  ;;  %v1635_v58 = vld [vmem:[#allocation19 + $0x58] sm:$0xff] }
 0x3f9   :  { %1656 = vmatpush.msrb.mxu1 %v1635_v58 }
 0x3fa   :  { %v1270_v38 = vmax.f32 %v1264_v37, 0.0 }
 0x3fb   :  { %v1297_v40 = vld [vmem:[#allocation2 + $0x11] sm:$0xff]  ;;  %1657 = vmatpush.msrb.mxu1 %v1634_v59 }
 0x3fc   :  { %v1283_v41 = vld [vmem:[#allocation2 + $0x18] sm:$0xff]  ;;  %1277 = vst.msk [vmem:[#allocation2 + $0x20] sm:$0xff] %vm1272_vm3, %v1270_v38  ;;  %3472 = vmatmul.msk.f32.gmra.mxu0 %vm1272_vm3, %v1297_v40 }
 0x3fd   :  { %v1407_v42 = vld [vmem:[#allocation2 + $0x12] sm:$0xff]  ;;  %3478 = vmatmul.msk.f32.gmra.mxu1 %vm1272_vm3, %v1283_v41 }
 0x3fe   :  { %v1475_v43 = vld [vmem:[#allocation2 + $0x13] sm:$0xff]  ;;  %3482 = vmatmul.msk.f32.gmra.mxu2 %vm1272_vm3, %v1407_v42  ;;  %1658 = vmatpush.msrb.mxu1 %v1633_v60 }
 0x3ff   :  { %3487 = vmatmul.msk.f32.gmra.mxu3 %vm1272_vm3, %v1475_v43  ;;  %v1257_v44 = vpop.f32.mrf.mxu3  ;;  %v1543_v56 = vld [vmem:[#allocation2 + $0x14] sm:$0xff] }
 0x400   :  { %v1265_v30 = vmax.f32 %v4980_v3, %v1257_v44  ;;  %1659 = vmatpush.msrb.mxu1 %v1632_v61 }
 0x402   :  { %v1271_v45 = vmax.f32 %v1265_v30, 0.0  ;;  %1660 = vmatpush.msrb.mxu1 %v1631_v62  ;;  %v1618_v62 = vld [vmem:[#allocation21] sm:$0xff] }
 0x403   :  { %v1298_v46 = vld [vmem:[#allocation2 + $0x19] sm:$0xff] }
 0x404   :  { %v1284_v47 = vld [vmem:[#allocation2 + $0x20] sm:$0xff]  ;;  %1279 = vst.msk [vmem:[#allocation2 + $0x28] sm:$0xf] %vm1278_vm4, %v1271_v45  ;;  %3473 = vmatmul.msk.f32.gmra.mxu0 %vm1272_vm3, %v1298_v46  ;;  %1661 = vmatpush.msrb.mxu1 %v1630_v1  ;;  %v3520_v1 = vld [vmem:[%s5283_s1 + $0xe8] sm:$0xff] }
 0x405   :  { %v1408_v48 = vld [vmem:[#allocation2 + $0x1a] sm:$0xff]  ;;  %3479 = vmatmul.msk.f32.gmra.mxu1 %vm1272_vm3, %v1284_v47  ;;  %1803 = vmatpush.msra.mxu3 %v3520_v1  ;;  %v3585_v1 = vld [vmem:[%s5283_s1 + $0x250] sm:$0xff] }
 0x406   :  { %v1476_v49 = vld [vmem:[#allocation2 + $0x1b] sm:$0xff]  ;;  %3483 = vmatmul.msk.f32.gmra.mxu2 %vm1272_vm3, %v1408_v48  ;;  %1662 = vmatpush.msrb.mxu1 %v1629_v39 }
 0x407   :  { %3488 = vmatmul.msk.f32.gmra.mxu3 %vm1272_vm3, %v1476_v49  ;;  %v1544_v51 = vld [vmem:[#allocation2 + $0x1c] sm:$0xff] }
 0x408   :  { %1663 = vmatpush.msrb.mxu1 %v1628_v55  ;;  %v3519_v39 = vld [vmem:[%s5283_s1 + $0xe0] sm:$0xff]  ;;  %v3518_v55 = vld [vmem:[%s5283_s1 + $0xd8] sm:$0xff] }
 0x409   :  { %1804 = vmatpush.msra.mxu3 %v3519_v39  ;;  %v3584_v39 = vld [vmem:[%s5283_s1 + $0x248] sm:$0xff] }
 0x40a   :  { %1664 = vmatpush.msrb.mxu1 %v1627_v2  ;;  %v3517_v2 = vld [vmem:[%s5283_s1 + $0xd0] sm:$0xff] }
 0x40b   :  { %v1299_v50 = vld [vmem:[#allocation2 + $0x21] sm:$0xff]  ;;  %1805 = vmatpush.msra.mxu3 %v3518_v55 }
 0x40c   :  { %v1409_v52 = vld [vmem:[#allocation2 + $0x22] sm:$0xff]  ;;  %3474 = vmatmul.msk.f32.gmra.mxu0 %vm1272_vm3, %v1299_v50  ;;  %1665 = vmatpush.msrb.mxu1 %v1626_v4 }
 0x40d   :  { %v1477_v53 = vld [vmem:[#allocation2 + $0x23] sm:$0xff]  ;;  %1806 = vmatpush.msra.mxu3 %v3517_v2 }
 0x40e   :  { %3484 = vmatmul.msk.f32.gmra.mxu2 %vm1272_vm3, %v1409_v52  ;;  %v1545_v57 = vld [vmem:[#allocation2 + $0x24] sm:$0xff]  ;;  %1666 = vmatpush.msrb.mxu1 %v1625_v5 }
 0x40f   :  { %3489 = vmatmul.msk.f32.gmra.mxu3 %vm1272_vm3, %v1477_v53  ;;  %v3516_v4 = vld [vmem:[%s5283_s1 + $0xc8] sm:$0xff]  ;;  %v3515_v5 = vld [vmem:[%s5283_s1 + $0xc0] sm:$0xff] }
 0x410   :  { %1667 = vmatpush.msrb.mxu1 %v1624_v6  ;;  %1807 = vmatpush.msra.mxu3 %v3516_v4  ;;  %v1621_v6 = vld [vmem:[#allocation21 + $0x18] sm:$0xff]  ;;  %v3583_v2 = vld [vmem:[%s5283_s1 + $0x240] sm:$0xff] }
 0x411   :  { %v3581_v4 = vld [vmem:[%s5283_s1 + $0x230] sm:$0xff] }
 0x412   :  { %1808 = vmatpush.msra.mxu3 %v3515_v5  ;;  %v3580_v5 = vld [vmem:[%s5283_s1 + $0x228] sm:$0xff] }
 0x414   :  { %3490 = vmatmul.msk.f32.vlgmr.msrb.gmra.mxu0 %vm1272_vm3, %v1541_v33 }
 0x41c   :  { %3491 = vmatmul.msk.f32.gmra.mxu0 %vm1272_vm3, %v1542_v54 }
 0x424   :  { %3492 = vmatmul.msk.f32.gmra.mxu0 %vm1272_vm3, %v1543_v56 }
 0x42c   :  { %3493 = vmatmul.msk.f32.gmra.mxu0 %vm1272_vm3, %v1544_v51 }
 0x434   :  { %3494 = vmatmul.msk.f32.gmra.mxu0 %vm1272_vm3, %v1545_v57 }
 0x461   :  { %v1390_v8 = vpop.f32.mrf.mxu1 }
 0x469   :  { %v1343_v63 = vpop.f32.mrf.mxu0 }
 0x46a   :  { %v1391_v13 = vadd.f32 %v1390_v8, %v1343_v63  ;;  %v1393_v14 = vpop.f32.mrf.mxu1  ;;  %v1619_v63 = vld [vmem:[#allocation21 + $0x8] sm:$0xff] }
 0x46b   :  { %v1623_v8 = vld [vmem:[#allocation21 + $0x28] sm:$0xf] }
 0x471   :  { %v1346_v3 = vpop.f32.mrf.mxu0  ;;  %v1453_v0 = vpop.f32.mrf.mxu2 }
 0x472   :  { %v1521_v11 = vpop.f32.mrf.mxu3  ;;  %v1468_v16 = vadd.f32 %v1453_v0, %v1391_v13  ;;  %v1394_v21 = vadd.f32 %v1393_v14, %v1346_v3  ;;  %v1396_v23 = vpop.f32.mrf.mxu1  ;;  %v1620_v3 = vld [vmem:[#allocation21 + $0x10] sm:$0xff]  ;;  %v3565_v13 = vld [vmem:[%s5283_s1 + $0x1d8] sm:$0xff]  ;;  %v3545_v14 = vld [vmem:[%s5283_s1 + $0x160] sm:$0xff] }
 0x473   :  { %v1765_v0 = vld [vmem:[%s5283_s1 + $0x70] sm:$0xff]  ;;  %1918 = vmatpush.msra.mxu1 %v3545_v14 }
 0x474   :  { %v1536_v17 = vadd.f32 %v1521_v11, %v1468_v16  ;;  %1850 = vmatpush.msra.mxu0 %v1765_v0  ;;  %v1763_v11 = vld [vmem:[%s5283_s1 + $0x60] sm:$0xff]  ;;  %v3564_v16 = vld [vmem:[%s5283_s1 + $0x1d0] sm:$0xff]  ;;  %v3578_v0 = vld [vmem:[%s5283_s1 + $0x218] sm:$0xff] }
 0x479   :  { %v1349_v7 = vpop.f32.mrf.mxu0  ;;  %v1456_v15 = vpop.f32.mrf.mxu2 }
 0x47a   :  { %v1524_v19 = vpop.f32.mrf.mxu3  ;;  %v1469_v24 = vadd.f32 %v1456_v15, %v1394_v21  ;;  %v1397_v29 = vadd.f32 %v1396_v23, %v1349_v7  ;;  %v1399_v27 = vpop.f32.mrf.mxu1  ;;  %v1622_v7 = vld [vmem:[#allocation21 + $0x20] sm:$0xff]  ;;  %v1761_v15 = vld [vmem:[%s5283_s1 + $0x50] sm:$0xff]  ;;  %v3542_v23 = vld [vmem:[%s5283_s1 + $0x148] sm:$0xff] }
 0x47b   :  { %v1759_v21 = vld [vmem:[%s5283_s1 + $0x40] sm:$0xff] }
 0x47c   :  { %v1537_v26 = vadd.f32 %v1524_v19, %v1469_v24  ;;  %v3563_v19 = vld [vmem:[%s5283_s1 + $0x1c8] sm:$0xff]  ;;  %v1758_v24 = vld [vmem:[%s5283_s1 + $0x38] sm:$0xff] }
 0x481   :  { %v1352_v10 = vpop.f32.mrf.mxu0  ;;  %v1459_v18 = vpop.f32.mrf.mxu2 }
 0x482   :  { %v1527_v32 = vpop.f32.mrf.mxu3  ;;  %v1470_v34 = vadd.f32 %v1459_v18, %v1397_v29  ;;  %v1400_v40 = vadd.f32 %v1399_v27, %v1352_v10  ;;  %v1402_v30 = vpop.f32.mrf.mxu1  ;;  %v1764_v10 = vld [vmem:[%s5283_s1 + $0x68] sm:$0xff]  ;;  %v3541_v18 = vld [vmem:[%s5283_s1 + $0x140] sm:$0xff]  ;;  %v3540_v29 = vld [vmem:[%s5283_s1 + $0x138] sm:$0xff] }
 0x483   :  { %1851 = vmatpush.msra.mxu0 %v1764_v10  ;;  %v3513_v27 = vld [vmem:[%s5283_s1 + $0xb0] sm:$0xff] }
 0x484   :  { %v1538_v37 = vadd.f32 %v1527_v32, %v1470_v34  ;;  %v3514_v32 = vld [vmem:[%s5283_s1 + $0xb8] sm:$0xff]  ;;  %v3559_v34 = vld [vmem:[%s5283_s1 + $0x1a8] sm:$0xff]  ;;  %v3577_v10 = vld [vmem:[%s5283_s1 + $0x210] sm:$0xff] }
 0x485   :  { %1852 = vmatpush.msra.mxu0 %v1763_v11  ;;  %1809 = vmatpush.msra.mxu3 %v3514_v32  ;;  %v3576_v11 = vld [vmem:[%s5283_s1 + $0x208] sm:$0xff] }
 0x487   :  { %1810 = vmatpush.msra.mxu3 %v3513_v27 }
 0x489   :  { %v1355_v12 = vpop.f32.mrf.mxu0  ;;  %v1462_v36 = vpop.f32.mrf.mxu2 }
 0x48a   :  { %v1471_v42 = vadd.f32 %v1462_v36, %v1400_v40  ;;  %v1530_v44 = vpop.f32.mrf.mxu3  ;;  %v1403_v48 = vadd.f32 %v1402_v30, %v1355_v12  ;;  %v1762_v12 = vld [vmem:[%s5283_s1 + $0x58] sm:$0xff]  ;;  %v3512_v36 = vld [vmem:[%s5283_s1 + $0xa8] sm:$0xff]  ;;  %v1755_v40 = vld [vmem:[%s5283_s1 + $0x20] sm:$0xff] }
 0x48b   :  { %1853 = vmatpush.msra.mxu0 %v1762_v12  ;;  %1811 = vmatpush.msra.mxu3 %v3512_v36  ;;  %v1753_v30 = vld [vmem:[%s5283_s1 + $0x10] sm:$0xff]  ;;  %v3575_v12 = vld [vmem:[%s5283_s1 + $0x200] sm:$0xff] }
 0x48c   :  { %v1539_v45 = vadd.f32 %v1530_v44, %v1471_v42  ;;  %v3511_v42 = vld [vmem:[%s5283_s1 + $0xa0] sm:$0xff] }
 0x48d   :  { %1854 = vmatpush.msra.mxu0 %v1761_v15  ;;  %v3537_v44 = vld [vmem:[%s5283_s1 + $0x120] sm:$0xff]  ;;  %1812 = vmatpush.msra.mxu3 %v3511_v42 }
 0x491   :  { %v1589_v20 = vpop.f32.mrf.mxu0  ;;  %v1465_v46 = vpop.f32.mrf.mxu2 }
 0x492   :  { %v1604_v22 = vadd.f32 %v1589_v20, %v1536_v17  ;;  %v1472_v50 = vadd.f32 %v1465_v46, %v1403_v48  ;;  %v1533_v53 = vpop.f32.mrf.mxu3  ;;  %v3544_v17 = vld [vmem:[%s5283_s1 + $0x158] sm:$0xff]  ;;  %v3543_v20 = vld [vmem:[%s5283_s1 + $0x150] sm:$0xff] }
 0x493   :  { %1919 = vmatpush.msra.mxu1 %v3544_v17  ;;  %v3536_v46 = vld [vmem:[%s5283_s1 + $0x118] sm:$0xff] }
 0x494   :  { %v1613_v25 = vadd.f32 %v3730_v9, %v1604_v22  ;;  %v1540_v33 = vadd.f32 %v1533_v53, %v1472_v50  ;;  %v3562_v22 = vld [vmem:[%s5283_s1 + $0x1c0] sm:$0xff]  ;;  %v3510_v48 = vld [vmem:[%s5283_s1 + $0x98] sm:$0xff]  ;;  %v3535_v50 = vld [vmem:[%s5283_s1 + $0x110] sm:$0xff] }
 0x495   :  { %1920 = vmatpush.msra.mxu1 %v3543_v20  ;;  %1813 = vmatpush.msra.mxu3 %v3510_v48  ;;  %v3508_v53 = vld [vmem:[%s5283_s1 + $0x88] sm:$0xff]  ;;  %v2123_v48 = vld [vmem:[#allocation22 + $0x70] sm:$0xff] }
 0x496   :  { %3495 = vmatmul.msk.f32.vlgmr.msrb.gmra.mxu1 %vm1636_vm5, %v1613_v25  ;;  %v3561_v25 = vld [vmem:[%s5283_s1 + $0x1b8] sm:$0xff]  ;;  %v3572_v20 = vld [vmem:[%s5283_s1 + $0x1e8] sm:$0xff] }
 0x497   :  { %1921 = vmatpush.msra.mxu1 %v3542_v23 }
 0x499   :  { %v1592_v28 = vpop.f32.mrf.mxu0  ;;  %1922 = vmatpush.msra.mxu1 %v3541_v18  ;;  %v3571_v18 = vld [vmem:[%s5283_s1 + $0x1e0] sm:$0xff] }
 0x49a   :  { %v1605_v31 = vadd.f32 %v1592_v28, %v1537_v26  ;;  %v1757_v26 = vld [vmem:[%s5283_s1 + $0x30] sm:$0xff] }
 0x49b   :  { %v3560_v28 = vld [vmem:[%s5283_s1 + $0x1b0] sm:$0xff]  ;;  %1923 = vmatpush.msra.mxu1 %v3540_v29 }
 0x49c   :  { %v1614_v35 = vadd.f32 %v3730_v9, %v1605_v31  ;;  %v1756_v31 = vld [vmem:[%s5283_s1 + $0x28] sm:$0xff] }
 0x49e   :  { %3496 = vmatmul.msk.f32.gmra.mxu1 %vm1636_vm5, %v1614_v35  ;;  %v3539_v35 = vld [vmem:[%s5283_s1 + $0x130] sm:$0xff] }
 0x49f   :  { %1924 = vmatpush.msra.mxu1 %v3539_v35 }
 0x4a1   :  { %v1595_v38 = vpop.f32.mrf.mxu0 }
 0x4a2   :  { %v1606_v41 = vadd.f32 %v1595_v38, %v1538_v37  ;;  %v3558_v37 = vld [vmem:[%s5283_s1 + $0x1a0] sm:$0xff]  ;;  %v3538_v38 = vld [vmem:[%s5283_s1 + $0x128] sm:$0xff] }
 0x4a3   :  { %1925 = vmatpush.msra.mxu1 %v3538_v38 }
 0x4a4   :  { %v1615_v43 = vadd.f32 %v3730_v9, %v1606_v41  ;;  %v1754_v41 = vld [vmem:[%s5283_s1 + $0x18] sm:$0xff] }
 0x4a5   :  { %1926 = vmatpush.msra.mxu1 %v3537_v44 }
 0x4a6   :  { %3497 = vmatmul.msk.f32.gmra.mxu1 %vm1636_vm5, %v1615_v43  ;;  %v3557_v43 = vld [vmem:[%s5283_s1 + $0x198] sm:$0xff] }
 0x4a7   :  { %1927 = vmatpush.msra.mxu1 %v3536_v46  ;;  %v2124_v46 = vld [vmem:[#allocation22 + $0x78] sm:$0xff] }
 0x4a9   :  { %v1598_v47 = vpop.f32.mrf.mxu0  ;;  %1928 = vmatpush.msra.mxu1 %v3535_v50  ;;  %v2122_v50 = vld [vmem:[#allocation22 + $0x68] sm:$0xff] }
 0x4aa   :  { %v1607_v49 = vadd.f32 %v1598_v47, %v1539_v45  ;;  %v3556_v45 = vld [vmem:[%s5283_s1 + $0x190] sm:$0xff]  ;;  %v1752_v47 = vld [vmem:[%s5283_s1 + $0x8] sm:$0xff] }
 0x4ac   :  { %v1616_v52 = vadd.f32 %v3730_v9, %v1607_v49  ;;  %v3555_v49 = vld [vmem:[%s5283_s1 + $0x188] sm:$0xff] }
 0x4ae   :  { %3498 = vmatmul.msk.f32.gmra.mxu1 %vm1636_vm5, %v1616_v52  ;;  %v3509_v52 = vld [vmem:[%s5283_s1 + $0x90] sm:$0xff] }
 0x4af   :  { %1814 = vmatpush.msra.mxu3 %v3509_v52  ;;  %v2170_v52 = vld [vmem:[%s5284_s5 + $0x68] sm:$0xff] }
 0x4b1   :  { %v1601_v54 = vpop.f32.mrf.mxu0  ;;  %1815 = vmatpush.msra.mxu3 %v3508_v53  ;;  %v2121_v53 = vld [vmem:[#allocation22 + $0x60] sm:$0xff] }
 0x4b2   :  { %v1608_v56 = vadd.f32 %v1601_v54, %v1540_v33  ;;  %v3554_v33 = vld [vmem:[%s5283_s1 + $0x180] sm:$0xff]  ;;  %v3534_v54 = vld [vmem:[%s5283_s1 + $0x108] sm:$0xff] }
 0x4b3   :  { %1929 = vmatpush.msra.mxu1 %v3534_v54  ;;  %v2120_v54 = vld [vmem:[#allocation22 + $0x58] sm:$0xff] }
 0x4b4   :  { %v1617_v51 = vadd.f32 %v3730_v9, %v1608_v56  ;;  %v1760_v9 = vld [vmem:[%s5283_s1 + $0x48] sm:$0xff]  ;;  %v1751_v56 = vld [vmem:[%s5283_s1] sm:$0xff] }
 0x4b5   :  { %1855 = vmatpush.msra.mxu0 %v1760_v9  ;;  %v3574_v9 = vld [vmem:[%s5283_s1 + $0x1f8] sm:$0xff] }
 0x4b6   :  { %3499 = vmatmul.msk.f32.gmra.mxu1 %vm1636_vm5, %v1617_v51  ;;  %v3507_v51 = vld [vmem:[%s5283_s1 + $0x80] sm:$0xff] }
 0x4b7   :  { %1856 = vmatpush.msra.mxu0 %v1759_v21  ;;  %1816 = vmatpush.msra.mxu3 %v3507_v51  ;;  %v2119_v51 = vld [vmem:[#allocation22 + $0x50] sm:$0xff] }
 0x4b9   :  { %1857 = vmatpush.msra.mxu0 %v1758_v24 }
 0x4bb   :  { %1858 = vmatpush.msra.mxu0 %v1757_v26 }
 0x4bd   :  { %1859 = vmatpush.msra.mxu0 %v1756_v31 }
 0x4bf   :  { %1860 = vmatpush.msra.mxu0 %v1755_v40 }
 0x4c1   :  { %1861 = vmatpush.msra.mxu0 %v1754_v41 }
 0x4c3   :  { %1862 = vmatpush.msra.mxu0 %v1753_v30 }
 0x4c5   :  { %1863 = vmatpush.msra.mxu0 %v1752_v47  ;;  %v2172_v47 = vld [vmem:[%s5284_s5 + $0x78] sm:$0xff] }
 0x4c7   :  { %1864 = vmatpush.msra.mxu0 %v1751_v56  ;;  %v2168_v56 = vld [vmem:[%s5284_s5 + $0x58] sm:$0xff] }
 0x4c9   :  { %2125 = vmatpush.msrb.mxu0 %v2124_v46 }
 0x4cb   :  { %2126 = vmatpush.msrb.mxu0 %v2123_v48 }
 0x4cd   :  { %2127 = vmatpush.msrb.mxu0 %v2122_v50 }
 0x4cf   :  { %2128 = vmatpush.msrb.mxu0 %v2121_v53 }
 0x4d1   :  { %2129 = vmatpush.msrb.mxu0 %v2120_v54 }
 0x4d3   :  { %2130 = vmatpush.msrb.mxu0 %v2119_v51 }
 0x513   :  { %v1669_v57 = vpop.f32.mrf.mxu1 }
 0x51b   :  { %v1672_v58 = vpop.f32.mrf.mxu1 }
 0x523   :  { %v1675_v59 = vpop.f32.mrf.mxu1 }
 0x52b   :  { %v1678_v60 = vpop.f32.mrf.mxu1 }
 0x533   :  { %v1681_v61 = vpop.f32.mrf.mxu1 }
 0x534   :  { %1714 = vmatpush.msrb.mxu2 %v1681_v61  ;;  %v3506_v61 = vld [vmem:[%s5283_s1 + $0x78] sm:$0xff] }
 0x535   :  { %1817 = vmatpush.msra.mxu3 %v3506_v61  ;;  %v2165_v61 = vld [vmem:[%s5284_s5 + $0x40] sm:$0xff] }
 0x536   :  { %1715 = vmatpush.msrb.mxu2 %v1678_v60  ;;  %v3532_v60 = vld [vmem:[%s5283_s1 + $0xf8] sm:$0xff] }
 0x537   :  { %2064 = vmatpush.msrb.mxu3 %v3585_v1 }
 0x538   :  { %1716 = vmatpush.msrb.mxu2 %v1675_v59  ;;  %v3552_v59 = vld [vmem:[%s5283_s1 + $0x170] sm:$0xff] }
 0x539   :  { %2065 = vmatpush.msrb.mxu3 %v3584_v39  ;;  %v2115_v39 = vld [vmem:[#allocation22 + $0x30] sm:$0xff] }
 0x53a   :  { %1717 = vmatpush.msrb.mxu2 %v1672_v58  ;;  %v3533_v58 = vld [vmem:[%s5283_s1 + $0x100] sm:$0xff] }
 0x53b   :  { %1930 = vmatpush.msra.mxu1 %v3533_v58  ;;  %2066 = vmatpush.msrb.mxu3 %v3583_v2  ;;  %v2118_v58 = vld [vmem:[#allocation22 + $0x48] sm:$0xff] }
 0x53c   :  { %1718 = vmatpush.msrb.mxu2 %v1669_v57  ;;  %v3553_v57 = vld [vmem:[%s5283_s1 + $0x178] sm:$0xff]  ;;  %2131 = vmatpush.msrb.mxu0 %v2118_v58 }
 0x53d   :  { %3500 = vmatmul.msk.f32.vlgmr.msrb.gmra.mxu2 %vm1684_vm6, %v1618_v62  ;;  %v3551_v62 = vld [vmem:[%s5283_s1 + $0x168] sm:$0xff]  ;;  %1931 = vmatpush.msra.mxu1 %v3532_v60  ;;  %v2114_v2 = vld [vmem:[#allocation22 + $0x28] sm:$0xff] }
 0x53e   :  { %1991 = vmatpush.msra.mxu2 %v3565_v13  ;;  %v2117_v60 = vld [vmem:[#allocation22 + $0x40] sm:$0xff] }
 0x53f   :  { %2132 = vmatpush.msrb.mxu0 %v2117_v60 }
 0x540   :  { %1992 = vmatpush.msra.mxu2 %v3564_v16 }
 0x542   :  { %1993 = vmatpush.msra.mxu2 %v3563_v19  ;;  %v3573_v19 = vld [vmem:[%s5283_s1 + $0x1f0] sm:$0xff] }
 0x544   :  { %1994 = vmatpush.msra.mxu2 %v3562_v22 }
 0x545   :  { %3501 = vmatmul.msk.f32.gmra.mxu2 %vm1684_vm6, %v1619_v63  ;;  %v3531_v63 = vld [vmem:[%s5283_s1 + $0xf0] sm:$0xff] }
 0x546   :  { %1995 = vmatpush.msra.mxu2 %v3561_v25  ;;  %1932 = vmatpush.msra.mxu1 %v3531_v63  ;;  %v2164_v63 = vld [vmem:[%s5284_s5 + $0x38] sm:$0xff] }
 0x548   :  { %1996 = vmatpush.msra.mxu2 %v3560_v28  ;;  %2173 = vmatpush.msrb.mxu1 %v2172_v47 }
 0x54a   :  { %1997 = vmatpush.msra.mxu2 %v3559_v34 }
 0x54c   :  { %1998 = vmatpush.msra.mxu2 %v3558_v37 }
 0x54d   :  { %3502 = vmatmul.msk.f32.gmra.mxu2 %vm1684_vm6, %v1620_v3  ;;  %v3582_v3 = vld [vmem:[%s5283_s1 + $0x238] sm:$0xff] }
 0x54e   :  { %1999 = vmatpush.msra.mxu2 %v3557_v43  ;;  %2067 = vmatpush.msrb.mxu3 %v3582_v3  ;;  %v2162_v3 = vld [vmem:[%s5284_s5 + $0x28] sm:$0xff] }
 0x550   :  { %2000 = vmatpush.msra.mxu2 %v3556_v45  ;;  %2068 = vmatpush.msrb.mxu3 %v3581_v4  ;;  %v2113_v4 = vld [vmem:[#allocation22 + $0x20] sm:$0xff] }
 0x552   :  { %2001 = vmatpush.msra.mxu2 %v3555_v49  ;;  %2069 = vmatpush.msrb.mxu3 %v3580_v5  ;;  %v2171_v49 = vld [vmem:[%s5284_s5 + $0x70] sm:$0xff]  ;;  %v2161_v5 = vld [vmem:[%s5284_s5 + $0x20] sm:$0xff] }
 0x553   :  { %2174 = vmatpush.msrb.mxu1 %v2171_v49 }
 0x554   :  { %2002 = vmatpush.msra.mxu2 %v3554_v33  ;;  %v2169_v33 = vld [vmem:[%s5284_s5 + $0x60] sm:$0xff] }
 0x555   :  { %3503 = vmatmul.msk.f32.gmra.mxu2 %vm1684_vm6, %v1621_v6  ;;  %2175 = vmatpush.msrb.mxu1 %v2170_v52 }
 0x556   :  { %2003 = vmatpush.msra.mxu2 %v3553_v57  ;;  %v2167_v57 = vld [vmem:[%s5284_s5 + $0x50] sm:$0xff] }
 0x557   :  { %2176 = vmatpush.msrb.mxu1 %v2169_v33 }
 0x558   :  { %2004 = vmatpush.msra.mxu2 %v3552_v59  ;;  %v2166_v59 = vld [vmem:[%s5284_s5 + $0x48] sm:$0xff] }
 0x559   :  { %2177 = vmatpush.msrb.mxu1 %v2168_v56 }
 0x55a   :  { %2005 = vmatpush.msra.mxu2 %v3551_v62  ;;  %v2116_v62 = vld [vmem:[#allocation22 + $0x38] sm:$0xff] }
 0x55b   :  { %2178 = vmatpush.msrb.mxu1 %v2167_v57  ;;  %2133 = vmatpush.msrb.mxu0 %v2116_v62 }
 0x55d   :  { %3504 = vmatmul.msk.f32.gmra.mxu2 %vm1684_vm6, %v1622_v7  ;;  %2179 = vmatpush.msrb.mxu1 %v2166_v59 }
 0x55e   :  { %2134 = vmatpush.msrb.mxu0 %v2115_v39 }
 0x55f   :  { %2180 = vmatpush.msrb.mxu1 %v2165_v61 }
 0x560   :  { %2135 = vmatpush.msrb.mxu0 %v2114_v2 }
 0x561   :  { %2181 = vmatpush.msrb.mxu1 %v2164_v63 }
 0x562   :  { %2136 = vmatpush.msrb.mxu0 %v2113_v4 }
 0x565   :  { %3505 = vmatmul.msk.f32.gmra.mxu2 %vm1684_vm6, %v1623_v8  ;;  %v3579_v8 = vld [vmem:[%s5283_s1 + $0x220] sm:$0xff] }
 0x566   :  { %2070 = vmatpush.msrb.mxu3 %v3579_v8 }
 0x568   :  { %2071 = vmatpush.msrb.mxu3 %v3578_v0  ;;  %v2111_v0 = vld [vmem:[#allocation22 + $0x10] sm:$0xff] }
 0x56a   :  { %2072 = vmatpush.msrb.mxu3 %v3577_v10  ;;  %v2159_v10 = vld [vmem:[%s5284_s5 + $0x10] sm:$0xff] }
 0x56c   :  { %2073 = vmatpush.msrb.mxu3 %v3576_v11  ;;  %v2110_v11 = vld [vmem:[#allocation22 + $0x8] sm:$0xff] }
 0x56e   :  { %2074 = vmatpush.msrb.mxu3 %v3575_v12  ;;  %v2158_v12 = vld [vmem:[%s5284_s5 + $0x8] sm:$0xff] }
 0x570   :  { %2075 = vmatpush.msrb.mxu3 %v3574_v9 }
 0x572   :  { %2076 = vmatpush.msrb.mxu3 %v3573_v19 }
 0x574   :  { %2077 = vmatpush.msrb.mxu3 %v3572_v20 }
 0x576   :  { %2078 = vmatpush.msrb.mxu3 %v3571_v18 }
 0x5c0   :  { %v1720_v55 = vpop.f32.mrf.mxu2 }
 0x5c1   :  { %1739 = vst.msk [vmem:[#allocation3] sm:$0xff] %vm1738_vm7, %v1720_v55  ;;  %v2163_v55 = vld [vmem:[%s5284_s5 + $0x30] sm:$0xff] }
 0x5c2   :  { %2182 = vmatpush.msrb.mxu1 %v2163_v55 }
 0x5c4   :  { %2183 = vmatpush.msrb.mxu1 %v2162_v3 }
 0x5c6   :  { %2184 = vmatpush.msrb.mxu1 %v2161_v5 }
 0x5c8   :  { %v1723_v6 = vpop.f32.mrf.mxu2  ;;  %v1746_v7 = vld [vmem:[#allocation3] sm:$0xff] }
 0x5c9   :  { %1740 = vst.msk [vmem:[#allocation3 + $0x8] sm:$0xff] %vm1738_vm7, %v1723_v6  ;;  %3526 = vmatmul.msk.f32.vlgmr.msra.gmra.mxu0 %vm1738_vm7, %v1746_v7  ;;  %v2112_v6 = vld [vmem:[#allocation22 + $0x18] sm:$0xff]  ;;  %v2160_v7 = vld [vmem:[%s5284_s5 + $0x18] sm:$0xff] }
 0x5ca   :  { %2137 = vmatpush.msrb.mxu0 %v2112_v6  ;;  %2185 = vmatpush.msrb.mxu1 %v2160_v7 }
 0x5cc   :  { %2138 = vmatpush.msrb.mxu0 %v2111_v0  ;;  %2186 = vmatpush.msrb.mxu1 %v2159_v10 }
 0x5ce   :  { %2139 = vmatpush.msrb.mxu0 %v2110_v11  ;;  %2187 = vmatpush.msrb.mxu1 %v2158_v12  ;;  %v2343_v12 = vld [vmem:[#allocation25 + $0xb8] sm:$0xff] }
 0x5d0   :  { %v1726_v13 = vpop.f32.mrf.mxu2  ;;  %v1766_v14 = vld [vmem:[#allocation3 + $0x1] sm:$0xff] }
 0x5d1   :  { %v1954_v15 = vld [vmem:[#allocation3 + $0x3] sm:$0xff]  ;;  %1741 = vst.msk [vmem:[#allocation3 + $0x10] sm:$0xff] %vm1738_vm7, %v1726_v13  ;;  %3521 = vmatmul.msk.f32.vlgmr.msra.gmra.mxu3 %vm1738_vm7, %v1766_v14  ;;  %v2157_v14 = vld [vmem:[%s5284_s5] sm:$0xff] }
 0x5d2   :  { %v1881_v16 = vld [vmem:[#allocation3 + $0x2] sm:$0xff]  ;;  %3566 = vmatmul.msk.f32.vlgmr.msra.gmra.mxu2 %vm1738_vm7, %v1954_v15  ;;  %2188 = vmatpush.msrb.mxu1 %v2157_v14 }
 0x5d3   :  { %v1747_v17 = vld [vmem:[#allocation3 + $0x8] sm:$0xff]  ;;  %3546 = vmatmul.msk.f32.vlgmr.msra.gmra.mxu1 %vm1738_vm7, %v1881_v16  ;;  %v2109_v13 = vld [vmem:[#allocation22] sm:$0xff] }
 0x5d4   :  { %3527 = vmatmul.msk.f32.gmra.mxu0 %vm1738_vm7, %v1747_v17  ;;  %v2027_v42 = vld [vmem:[#allocation3 + $0x4] sm:$0xff] }
 0x5d5   :  { %2140 = vmatpush.msrb.mxu0 %v2109_v13 }
 0x5d7   :  { %2357 = vmatpush.msra.mxu0 %v2343_v12  ;;  %v2532_v12 = vld [vmem:[#allocation25 + $0x1b0] sm:$0xff] }
 0x5d8   :  { %v1729_v21 = vpop.f32.mrf.mxu2  ;;  %v1767_v22 = vld [vmem:[#allocation3 + $0x9] sm:$0xff] }
 0x5d9   :  { %v1955_v23 = vld [vmem:[#allocation3 + $0xb] sm:$0xff]  ;;  %1742 = vst.msk [vmem:[#allocation3 + $0x18] sm:$0xff] %vm1738_vm7, %v1729_v21  ;;  %3522 = vmatmul.msk.f32.gmra.mxu3 %vm1738_vm7, %v1767_v22 }
 0x5da   :  { %v1882_v24 = vld [vmem:[#allocation3 + $0xa] sm:$0xff]  ;;  %3567 = vmatmul.msk.f32.gmra.mxu2 %vm1738_vm7, %v1955_v23 }
 0x5db   :  { %v1748_v25 = vld [vmem:[#allocation3 + $0x10] sm:$0xff]  ;;  %3547 = vmatmul.msk.f32.gmra.mxu1 %vm1738_vm7, %v1882_v24 }
 0x5dc   :  { %3528 = vmatmul.msk.f32.gmra.mxu0 %vm1738_vm7, %v1748_v25  ;;  %v2028_v43 = vld [vmem:[#allocation3 + $0xc] sm:$0xff] }
 0x5e0   :  { %v1732_v26 = vpop.f32.mrf.mxu2  ;;  %v1768_v28 = vld [vmem:[#allocation3 + $0x11] sm:$0xff] }
 0x5e1   :  { %v1956_v29 = vld [vmem:[#allocation3 + $0x13] sm:$0xff]  ;;  %1743 = vst.msk [vmem:[#allocation3 + $0x20] sm:$0xff] %vm1738_vm7, %v1732_v26  ;;  %3523 = vmatmul.msk.f32.gmra.mxu3 %vm1738_vm7, %v1768_v28  ;;  %v3731_v26 = vld [vmem:[%s5285_s14] ss:$0 sm:$0xff] }
 0x5e2   :  { %v1883_v31 = vld [vmem:[#allocation3 + $0x12] sm:$0xff]  ;;  %3568 = vmatmul.msk.f32.gmra.mxu2 %vm1738_vm7, %v1956_v29 }
 0x5e3   :  { %v1749_v32 = vld [vmem:[#allocation3 + $0x18] sm:$0xff]  ;;  %3548 = vmatmul.msk.f32.gmra.mxu1 %vm1738_vm7, %v1883_v31 }
 0x5e4   :  { %3529 = vmatmul.msk.f32.gmra.mxu0 %vm1738_vm7, %v1749_v32  ;;  %v2029_v44 = vld [vmem:[#allocation3 + $0x14] sm:$0xff] }
 0x5e8   :  { %v1735_v34 = vpop.f32.mrf.mxu2  ;;  %v1769_v35 = vld [vmem:[#allocation3 + $0x19] sm:$0xff] }
 0x5e9   :  { %v1957_v27 = vld [vmem:[#allocation3 + $0x1b] sm:$0xff]  ;;  %1745 = vst.msk [vmem:[#allocation3 + $0x28] sm:$0xf] %vm1744_vm8, %v1735_v34  ;;  %3524 = vmatmul.msk.f32.gmra.mxu3 %vm1738_vm7, %v1769_v35 }
 0x5ea   :  { %v1884_v36 = vld [vmem:[#allocation3 + $0x1a] sm:$0xff]  ;;  %3569 = vmatmul.msk.f32.gmra.mxu2 %vm1738_vm7, %v1957_v27 }
 0x5eb   :  { %v1750_v37 = vld [vmem:[#allocation3 + $0x20] sm:$0xff]  ;;  %3549 = vmatmul.msk.f32.gmra.mxu1 %vm1738_vm7, %v1884_v36 }
 0x5ec   :  { %3530 = vmatmul.msk.f32.gmra.mxu0 %vm1738_vm7, %v1750_v37  ;;  %v2030_v30 = vld [vmem:[#allocation3 + $0x1c] sm:$0xff] }
 0x5f0   :  { %v1770_v38 = vld [vmem:[#allocation3 + $0x21] sm:$0xff] }
 0x5f1   :  { %v1958_v40 = vld [vmem:[#allocation3 + $0x23] sm:$0xff]  ;;  %3525 = vmatmul.msk.f32.gmra.mxu3 %vm1738_vm7, %v1770_v38 }
 0x5f2   :  { %v1885_v41 = vld [vmem:[#allocation3 + $0x22] sm:$0xff]  ;;  %3570 = vmatmul.msk.f32.gmra.mxu2 %vm1738_vm7, %v1958_v40 }
 0x5f3   :  { %3550 = vmatmul.msk.f32.gmra.mxu1 %vm1738_vm7, %v1885_v41  ;;  %v2031_v45 = vld [vmem:[#allocation3 + $0x24] sm:$0xff] }
 0x5f9   :  { %3586 = vmatmul.msk.f32.vlgmr.msrb.gmra.mxu3 %vm1738_vm7, %v2027_v42 }
 0x601   :  { %3587 = vmatmul.msk.f32.gmra.mxu3 %vm1738_vm7, %v2028_v43 }
 0x609   :  { %3588 = vmatmul.msk.f32.gmra.mxu3 %vm1738_vm7, %v2029_v44 }
 0x611   :  { %3589 = vmatmul.msk.f32.gmra.mxu3 %vm1738_vm7, %v2030_v30 }
 0x619   :  { %3590 = vmatmul.msk.f32.gmra.mxu3 %vm1738_vm7, %v2031_v45 }
 0x646   :  { %v1866_v16 = vpop.f32.mrf.mxu0 }
 0x650   :  { %v1934_v9 = vpop.f32.mrf.mxu1 }
 0x651   :  { %v1869_v21 = vpop.f32.mrf.mxu0 }
 0x654   :  { %v1819_v1 = vpop.f32.mrf.mxu3 }
 0x655   :  { %v2007_v19 = vpop.f32.mrf.mxu2  ;;  %v1867_v20 = vadd.f32 %v1866_v16, %v1819_v1  ;;  %v2210_v16 = vld [vmem:[#allocation24] sm:$0xff] }
 0x657   :  { %v1949_v23 = vadd.f32 %v1934_v9, %v1867_v20  ;;  %v2211_v9 = vld [vmem:[#allocation24 + $0x8] sm:$0xff]  ;;  %v2212_v20 = vld [vmem:[#allocation24 + $0x10] sm:$0xff] }
 0x658   :  { %v1937_v24 = vpop.f32.mrf.mxu1 }
 0x659   :  { %v2022_v25 = vadd.f32 %v2007_v19, %v1949_v23  ;;  %v1872_v32 = vpop.f32.mrf.mxu0  ;;  %v2256_v19 = vld [vmem:[%s5286_s27 + $0x8] sm:$0xff]  ;;  %v2258_v23 = vld [vmem:[%s5286_s27 + $0x18] sm:$0xf] }
 0x65c   :  { %v1822_v8 = vpop.f32.mrf.mxu3 }
 0x65d   :  { %v1870_v18 = vadd.f32 %v1869_v21, %v1822_v8  ;;  %v2010_v28 = vpop.f32.mrf.mxu2  ;;  %v2257_v21 = vld [vmem:[%s5286_s27 + $0x10] sm:$0xff] }
 0x65f   :  { %v1950_v34 = vadd.f32 %v1937_v24, %v1870_v18  ;;  %v2327_v24 = vld [vmem:[#allocation25 + $0x58] sm:$0xff]  ;;  %v2325_v18 = vld [vmem:[#allocation25 + $0x48] sm:$0xff] }
 0x660   :  { %v1940_v27 = vpop.f32.mrf.mxu1  ;;  %2392 = vmatpush.msra.mxu1 %v2327_v24  ;;  %v2527_v24 = vld [vmem:[#allocation25 + $0x188] sm:$0xff] }
 0x661   :  { %v2023_v36 = vadd.f32 %v2010_v28, %v1950_v34  ;;  %v1875_v44 = vpop.f32.mrf.mxu0  ;;  %v2429_v28 = vld [vmem:[#allocation25 + $0x118] sm:$0xff]  ;;  %v2428_v34 = vld [vmem:[#allocation25 + $0x110] sm:$0xff] }
 0x664   :  { %v1825_v15 = vpop.f32.mrf.mxu3 }
 0x665   :  { %v1873_v37 = vadd.f32 %v1872_v32, %v1825_v15  ;;  %v2013_v41 = vpop.f32.mrf.mxu2  ;;  %v2342_v32 = vld [vmem:[#allocation25 + $0xb0] sm:$0xff] }
 0x666   :  { %2358 = vmatpush.msra.mxu0 %v2342_v32 }
 0x667   :  { %v1951_v42 = vadd.f32 %v1940_v27, %v1873_v37  ;;  %v2322_v27 = vld [vmem:[#allocation25 + $0x30] sm:$0xff]  ;;  %v2427_v37 = vld [vmem:[#allocation25 + $0x108] sm:$0xff] }
 0x668   :  { %v1943_v46 = vpop.f32.mrf.mxu1 }
 0x669   :  { %v2024_v30 = vadd.f32 %v2013_v41, %v1951_v42  ;;  %v1878_v53 = vpop.f32.mrf.mxu0  ;;  %v2340_v41 = vld [vmem:[#allocation25 + $0xa0] sm:$0xff]  ;;  %v2339_v42 = vld [vmem:[#allocation25 + $0x98] sm:$0xff] }
 0x66c   :  { %v1828_v17 = vpop.f32.mrf.mxu3 }
 0x66d   :  { %v1876_v45 = vadd.f32 %v1875_v44, %v1828_v17  ;;  %v2016_v52 = vpop.f32.mrf.mxu2  ;;  %v2255_v17 = vld [vmem:[%s5286_s27] sm:$0xff]  ;;  %v2480_v44 = vld [vmem:[#allocation25 + $0x160] sm:$0xff] }
 0x66f   :  { %v1952_v49 = vadd.f32 %v1943_v46, %v1876_v45  ;;  %v2425_v45 = vld [vmem:[#allocation25 + $0xf8] sm:$0xff] }
 0x670   :  { %v1946_v57 = vpop.f32.mrf.mxu1  ;;  %v2479_v46 = vld [vmem:[#allocation25 + $0x158] sm:$0xff] }
 0x671   :  { %v2025_v33 = vadd.f32 %v2016_v52, %v1952_v49  ;;  %v2424_v49 = vld [vmem:[#allocation25 + $0xf0] sm:$0xff] }
 0x672   :  { %v2318_v52 = vld [vmem:[#allocation25 + $0x10] sm:$0xff] }
 0x674   :  { %v1831_v22 = vpop.f32.mrf.mxu3 }
 0x675   :  { %v1879_v54 = vadd.f32 %v1878_v53, %v1831_v22  ;;  %v2019_v60 = vpop.f32.mrf.mxu2  ;;  %v2213_v22 = vld [vmem:[#allocation24 + $0x18] sm:$0xf]  ;;  %v2337_v53 = vld [vmem:[#allocation25 + $0x88] sm:$0xff] }
 0x677   :  { %v1953_v58 = vadd.f32 %v1946_v57, %v1879_v54  ;;  %v2477_v54 = vld [vmem:[#allocation25 + $0x148] sm:$0xff]  ;;  %v2335_v57 = vld [vmem:[#allocation25 + $0x78] sm:$0xff] }
 0x679   :  { %v2026_v61 = vadd.f32 %v2019_v60, %v1953_v58  ;;  %v2422_v58 = vld [vmem:[#allocation25 + $0xe0] sm:$0xff] }
 0x67a   :  { %v2316_v60 = vld [vmem:[#allocation25] sm:$0xff] }
 0x67c   :  { %v2080_v29 = vpop.f32.mrf.mxu3 }
 0x67d   :  { %v2095_v31 = vadd.f32 %v2080_v29, %v2022_v25  ;;  %v2326_v25 = vld [vmem:[#allocation25 + $0x50] sm:$0xff]  ;;  %v2483_v29 = vld [vmem:[#allocation25 + $0x178] sm:$0xff] }
 0x67e   :  { %2393 = vmatpush.msra.mxu1 %v2326_v25 }
 0x67f   :  { %v2104_v35 = vadd.f32 %v3731_v26, %v2095_v31  ;;  %v2323_v31 = vld [vmem:[#allocation25 + $0x38] sm:$0xff] }
 0x680   :  { %2394 = vmatpush.msra.mxu1 %v2325_v18  ;;  %v2526_v18 = vld [vmem:[#allocation25 + $0x180] sm:$0xff] }
 0x681   :  { %2141 = vmatmul.f32.vlgmr.msrb.gmra.mxu0 %v2104_v35  ;;  %2189 = vmatmul.f32.vlgmr.msrb.gmra.mxu1 %v2104_v35  ;;  %v2482_v35 = vld [vmem:[#allocation25 + $0x170] sm:$0xff] }
 0x684   :  { %v2083_v38 = vpop.f32.mrf.mxu3 }
 0x685   :  { %v2096_v40 = vadd.f32 %v2083_v38, %v2023_v36  ;;  %v2341_v36 = vld [vmem:[#allocation25 + $0xa8] sm:$0xff] }
 0x686   :  { %v2481_v38 = vld [vmem:[#allocation25 + $0x168] sm:$0xff]  ;;  %2359 = vmatpush.msra.mxu0 %v2341_v36 }
 0x687   :  { %v2105_v43 = vadd.f32 %v3731_v26, %v2096_v40  ;;  %v2321_v40 = vld [vmem:[#allocation25 + $0x28] sm:$0xff] }
 0x688   :  { %2360 = vmatpush.msra.mxu0 %v2340_v41 }
 0x689   :  { %2144 = vmatmul.f32.gmra.mxu0 %v2105_v43  ;;  %2192 = vmatmul.f32.gmra.mxu1 %v2105_v43  ;;  %v2426_v43 = vld [vmem:[#allocation25 + $0x100] sm:$0xff] }
 0x68a   :  { %2361 = vmatpush.msra.mxu0 %v2339_v42 }
 0x68c   :  { %v2086_v47 = vpop.f32.mrf.mxu3 }
 0x68d   :  { %v2097_v48 = vadd.f32 %v2086_v47, %v2024_v30  ;;  %v2320_v30 = vld [vmem:[#allocation25 + $0x20] sm:$0xff]  ;;  %v2319_v47 = vld [vmem:[#allocation25 + $0x18] sm:$0xff] }
 0x68f   :  { %v2106_v50 = vadd.f32 %v3731_v26, %v2097_v48  ;;  %v2338_v48 = vld [vmem:[#allocation25 + $0x90] sm:$0xff] }
 0x690   :  { %2362 = vmatpush.msra.mxu0 %v2338_v48 }
 0x691   :  { %2147 = vmatmul.f32.gmra.mxu0 %v2106_v50  ;;  %2195 = vmatmul.f32.gmra.mxu1 %v2106_v50  ;;  %v2478_v50 = vld [vmem:[#allocation25 + $0x150] sm:$0xff] }
 0x692   :  { %2363 = vmatpush.msra.mxu0 %v2337_v53  ;;  %v2636_v53 = vld [vmem:[#allocation28 + $0x40] sm:$0xff] }
 0x694   :  { %v2089_v56 = vpop.f32.mrf.mxu3 }
 0x695   :  { %v2098_v51 = vadd.f32 %v2089_v56, %v2025_v33  ;;  %v2423_v33 = vld [vmem:[#allocation25 + $0xe8] sm:$0xff] }
 0x696   :  { %v2317_v56 = vld [vmem:[#allocation25 + $0x8] sm:$0xff] }
 0x697   :  { %v2107_v59 = vadd.f32 %v3731_v26, %v2098_v51  ;;  %v2336_v51 = vld [vmem:[#allocation25 + $0x80] sm:$0xff] }
 0x698   :  { %2364 = vmatpush.msra.mxu0 %v2336_v51  ;;  %v2590_v51 = vld [vmem:[#allocation27 + $0x38] sm:$0xff] }
 0x699   :  { %2150 = vmatmul.f32.gmra.mxu0 %v2107_v59  ;;  %2198 = vmatmul.f32.gmra.mxu1 %v2107_v59  ;;  %v2476_v59 = vld [vmem:[#allocation25 + $0x140] sm:$0xff] }
 0x69a   :  { %2365 = vmatpush.msra.mxu0 %v2335_v57  ;;  %v2634_v57 = vld [vmem:[#allocation28 + $0x30] sm:$0xff] }
 0x69c   :  { %v2092_v62 = vpop.f32.mrf.mxu3 }
 0x69d   :  { %v2099_v63 = vadd.f32 %v2092_v62, %v2026_v61  ;;  %v2421_v61 = vld [vmem:[#allocation25 + $0xd8] sm:$0xff] }
 0x69e   :  { %v2475_v62 = vld [vmem:[#allocation25 + $0x138] sm:$0xff] }
 0x69f   :  { %v2108_v1 = vadd.f32 %v3731_v26, %v2099_v63  ;;  %v2324_v26 = vld [vmem:[#allocation25 + $0x40] sm:$0xff]  ;;  %v2334_v63 = vld [vmem:[#allocation25 + $0x70] sm:$0xff] }
 0x6a0   :  { %2395 = vmatpush.msra.mxu1 %v2324_v26  ;;  %2366 = vmatpush.msra.mxu0 %v2334_v63  ;;  %v2587_v63 = vld [vmem:[#allocation27 + $0x20] sm:$0xff] }
 0x6a1   :  { %2153 = vmatmul.f32.gmra.mxu0 %v2108_v1  ;;  %2201 = vmatmul.f32.gmra.mxu1 %v2108_v1  ;;  %v2420_v1 = vld [vmem:[#allocation25 + $0xd0] sm:$0xff] }
 0x6a2   :  { %2396 = vmatpush.msra.mxu1 %v2323_v31 }
 0x6a4   :  { %2397 = vmatpush.msra.mxu1 %v2322_v27 }
 0x6a6   :  { %2398 = vmatpush.msra.mxu1 %v2321_v40 }
 0x6a8   :  { %2399 = vmatpush.msra.mxu1 %v2320_v30 }
 0x6aa   :  { %2400 = vmatpush.msra.mxu1 %v2319_v47 }
 0x6ac   :  { %2401 = vmatpush.msra.mxu1 %v2318_v52  ;;  %v2637_v52 = vld [vmem:[#allocation28 + $0x48] sm:$0xff] }
 0x6ae   :  { %2402 = vmatpush.msra.mxu1 %v2317_v56  ;;  %v2591_v56 = vld [vmem:[#allocation27 + $0x40] sm:$0xff] }
 0x6b0   :  { %2403 = vmatpush.msra.mxu1 %v2316_v60  ;;  %v2588_v60 = vld [vmem:[#allocation27 + $0x28] sm:$0xff] }
 0x6fe   :  { %v2142_v39 = vpop.f32.mrf.mxu0  ;;  %v2190_v55 = vpop.f32.mrf.mxu1 }
 0x6ff   :  { %v2205_v15 = vmax.f32 %v2142_v39, %v2190_v55  ;;  %v2474_v39 = vld [vmem:[#allocation25 + $0x130] sm:$0xff]  ;;  %v2333_v55 = vld [vmem:[#allocation25 + $0x68] sm:$0xff] }
 0x700   :  { %2367 = vmatpush.msra.mxu0 %v2333_v55  ;;  %v2585_v55 = vld [vmem:[#allocation27 + $0x10] sm:$0xff] }
 0x706   :  { %v2145_v2 = vpop.f32.mrf.mxu0  ;;  %v2193_v3 = vpop.f32.mrf.mxu1 }
 0x707   :  { %v2206_v14 = vmax.f32 %v2145_v2, %v2193_v3  ;;  %v2419_v2 = vld [vmem:[#allocation25 + $0xc8] sm:$0xff] }
 0x708   :  { %v2473_v3 = vld [vmem:[#allocation25 + $0x128] sm:$0xff] }
 0x70e   :  { %v2148_v4 = vpop.f32.mrf.mxu0  ;;  %v2196_v5 = vpop.f32.mrf.mxu1 }
 0x70f   :  { %v2207_v13 = vmax.f32 %v2148_v4, %v2196_v5  ;;  %v2332_v4 = vld [vmem:[#allocation25 + $0x60] sm:$0xff]  ;;  %v2537_v5 = vld [vmem:[#allocation25 + $0x1d8] sm:$0xff] }
 0x710   :  { %2368 = vmatpush.msra.mxu0 %v2332_v4  ;;  %v2584_v4 = vld [vmem:[#allocation27 + $0x8] sm:$0xff] }
 0x712   :  { %2551 = vmatpush.msrb.mxu0 %v2537_v5  ;;  %v2583_v5 = vld [vmem:[#allocation27] sm:$0xff] }
 0x716   :  { %v2151_v6 = vpop.f32.mrf.mxu0  ;;  %v2199_v7 = vpop.f32.mrf.mxu1 }
 0x717   :  { %v2208_v11 = vmax.f32 %v2151_v6, %v2199_v7  ;;  %v2418_v6 = vld [vmem:[#allocation25 + $0xc0] sm:$0xff] }
 0x718   :  { %v2472_v7 = vld [vmem:[#allocation25 + $0x120] sm:$0xff] }
 0x71e   :  { %v2154_v8 = vpop.f32.mrf.mxu0  ;;  %v2202_v0 = vpop.f32.mrf.mxu1 }
 0x71f   :  { %v2209_v10 = vmax.f32 %v2154_v8, %v2202_v0  ;;  %v2536_v8 = vld [vmem:[#allocation25 + $0x1d0] sm:$0xff]  ;;  %v2535_v0 = vld [vmem:[#allocation25 + $0x1c8] sm:$0xff] }
 0x720   :  { %2552 = vmatpush.msrb.mxu0 %v2536_v8 }
 0x721   :  { %2237 = vmatpush.msrb.mxu2 %v2209_v10  ;;  %2282 = vmatpush.msra.mxu3 %v2209_v10  ;;  %v2534_v10 = vld [vmem:[#allocation25 + $0x1c0] sm:$0xff] }
 0x722   :  { %2553 = vmatpush.msrb.mxu0 %v2535_v0 }
 0x723   :  { %2238 = vmatpush.msrb.mxu2 %v2208_v11  ;;  %2283 = vmatpush.msra.mxu3 %v2208_v11  ;;  %v2533_v11 = vld [vmem:[#allocation25 + $0x1b8] sm:$0xff] }
 0x724   :  { %2554 = vmatpush.msrb.mxu0 %v2534_v10 }
 0x725   :  { %2239 = vmatpush.msrb.mxu2 %v2207_v13  ;;  %2284 = vmatpush.msra.mxu3 %v2207_v13 }
 0x726   :  { %2555 = vmatpush.msrb.mxu0 %v2533_v11 }
 0x727   :  { %2240 = vmatpush.msrb.mxu2 %v2206_v14  ;;  %2285 = vmatpush.msra.mxu3 %v2206_v14 }
 0x728   :  { %2556 = vmatpush.msrb.mxu0 %v2532_v12 }
 0x729   :  { %2241 = vmatpush.msrb.mxu2 %v2205_v15  ;;  %2286 = vmatpush.msra.mxu3 %v2205_v15 }
 0x72a   :  { %3591 = vmatmul.msk.f32.vlgmr.msrb.gmra.mxu2 %vm1684_vm6, %v2210_v16  ;;  %3595 = vmatmul.msk.f32.vlgmr.msra.gmra.mxu3 %vm1684_vm6, %v2255_v17  ;;  %v2531_v16 = vld [vmem:[#allocation25 + $0x1a8] sm:$0xff] }
 0x72b   :  { %2443 = vmatpush.msra.mxu2 %v2429_v28  ;;  %2497 = vmatpush.msrb.mxu3 %v2483_v29 }
 0x72c   :  { %2557 = vmatpush.msrb.mxu0 %v2531_v16 }
 0x72d   :  { %2444 = vmatpush.msra.mxu2 %v2428_v34  ;;  %2498 = vmatpush.msrb.mxu3 %v2482_v35 }
 0x72f   :  { %2445 = vmatpush.msra.mxu2 %v2427_v37  ;;  %2499 = vmatpush.msrb.mxu3 %v2481_v38 }
 0x731   :  { %2446 = vmatpush.msra.mxu2 %v2426_v43  ;;  %2500 = vmatpush.msrb.mxu3 %v2480_v44 }
 0x732   :  { %3592 = vmatmul.msk.f32.gmra.mxu2 %vm1684_vm6, %v2211_v9  ;;  %3596 = vmatmul.msk.f32.gmra.mxu3 %vm1684_vm6, %v2256_v19  ;;  %v2530_v9 = vld [vmem:[#allocation25 + $0x1a0] sm:$0xff]  ;;  %v2529_v19 = vld [vmem:[#allocation25 + $0x198] sm:$0xff] }
 0x733   :  { %2447 = vmatpush.msra.mxu2 %v2425_v45  ;;  %2501 = vmatpush.msrb.mxu3 %v2479_v46 }
 0x734   :  { %2558 = vmatpush.msrb.mxu0 %v2530_v9 }
 0x735   :  { %2448 = vmatpush.msra.mxu2 %v2424_v49  ;;  %2502 = vmatpush.msrb.mxu3 %v2478_v50 }
 0x736   :  { %2559 = vmatpush.msrb.mxu0 %v2529_v19 }
 0x737   :  { %2449 = vmatpush.msra.mxu2 %v2423_v33  ;;  %2503 = vmatpush.msrb.mxu3 %v2477_v54  ;;  %v2592_v33 = vld [vmem:[#allocation27 + $0x48] sm:$0xff] }
 0x738   :  { %2608 = vmatpush.msrb.mxu1 %v2592_v33  ;;  %v2635_v54 = vld [vmem:[#allocation28 + $0x38] sm:$0xff] }
 0x739   :  { %2450 = vmatpush.msra.mxu2 %v2422_v58  ;;  %2504 = vmatpush.msrb.mxu3 %v2476_v59  ;;  %v2633_v58 = vld [vmem:[#allocation28 + $0x28] sm:$0xff]  ;;  %v2589_v59 = vld [vmem:[#allocation27 + $0x30] sm:$0xff]  ;;  %v2708_v33 = vld [vmem:[#allocation31 + $0x10] sm:$0xf] }
 0x73a   :  { %3593 = vmatmul.msk.f32.gmra.mxu2 %vm1684_vm6, %v2212_v20  ;;  %3597 = vmatmul.msk.f32.gmra.mxu3 %vm1684_vm6, %v2257_v21  ;;  %v2528_v20 = vld [vmem:[#allocation25 + $0x190] sm:$0xff] }
 0x73b   :  { %2451 = vmatpush.msra.mxu2 %v2421_v61  ;;  %2505 = vmatpush.msrb.mxu3 %v2475_v62  ;;  %v2632_v61 = vld [vmem:[#allocation28 + $0x20] sm:$0xff]  ;;  %v2631_v62 = vld [vmem:[#allocation28 + $0x18] sm:$0xff] }
 0x73c   :  { %2560 = vmatpush.msrb.mxu0 %v2528_v20  ;;  %2609 = vmatpush.msrb.mxu1 %v2591_v56  ;;  %v2763_v56 = vld [vmem:[#allocation33 + $0x40] sm:$0xff] }
 0x73d   :  { %2452 = vmatpush.msra.mxu2 %v2420_v1  ;;  %2506 = vmatpush.msrb.mxu3 %v2474_v39  ;;  %v2586_v1 = vld [vmem:[#allocation27 + $0x18] sm:$0xff]  ;;  %v2630_v39 = vld [vmem:[#allocation28 + $0x10] sm:$0xff] }
 0x73e   :  { %2561 = vmatpush.msrb.mxu0 %v2527_v24  ;;  %2610 = vmatpush.msrb.mxu1 %v2590_v51  ;;  %v2762_v51 = vld [vmem:[#allocation33 + $0x38] sm:$0xff] }
 0x73f   :  { %2453 = vmatpush.msra.mxu2 %v2419_v2  ;;  %2507 = vmatpush.msrb.mxu3 %v2473_v3  ;;  %v2629_v2 = vld [vmem:[#allocation28 + $0x8] sm:$0xff]  ;;  %v2628_v3 = vld [vmem:[#allocation28] sm:$0xff] }
 0x740   :  { %2562 = vmatpush.msrb.mxu0 %v2526_v18  ;;  %2611 = vmatpush.msrb.mxu1 %v2589_v59  ;;  %v2776_v59 = vld [vmem:[#allocation33 + $0x90] sm:$0xff] }
 0x741   :  { %2454 = vmatpush.msra.mxu2 %v2418_v6  ;;  %2508 = vmatpush.msrb.mxu3 %v2472_v7 }
 0x742   :  { %3594 = vmatmul.msk.f32.gmra.mxu2 %vm1684_vm6, %v2213_v22  ;;  %3598 = vmatmul.msk.f32.gmra.mxu3 %vm1684_vm6, %v2258_v23 }
 0x743   :  { %2644 = vmatpush.msrb.mxu2 %v2637_v52  ;;  %2612 = vmatpush.msrb.mxu1 %v2588_v60  ;;  %v2707_v52 = vld [vmem:[#allocation31 + $0x8] sm:$0xff]  ;;  %v2759_v60 = vld [vmem:[#allocation33 + $0x20] sm:$0xff] }
 0x745   :  { %2645 = vmatpush.msrb.mxu2 %v2636_v53  ;;  %2613 = vmatpush.msrb.mxu1 %v2587_v63  ;;  %v2669_v53 = vld [vmem:[#allocation30 + $0x10] sm:$0xf]  ;;  %v2775_v63 = vld [vmem:[#allocation33 + $0x88] sm:$0xff] }
 0x747   :  { %2646 = vmatpush.msrb.mxu2 %v2635_v54  ;;  %2614 = vmatpush.msrb.mxu1 %v2586_v1  ;;  %v2764_v54 = vld [vmem:[#allocation33 + $0x48] sm:$0xff]  ;;  %v2758_v1 = vld [vmem:[#allocation33 + $0x18] sm:$0xff] }
 0x749   :  { %2647 = vmatpush.msrb.mxu2 %v2634_v57  ;;  %2615 = vmatpush.msrb.mxu1 %v2585_v55  ;;  %v2761_v57 = vld [vmem:[#allocation33 + $0x30] sm:$0xff]  ;;  %v2847_v55 = vld [vmem:[#allocation33 + $0xe0] sm:$0xff] }
 0x74b   :  { %2648 = vmatpush.msrb.mxu2 %v2633_v58  ;;  %2616 = vmatpush.msrb.mxu1 %v2584_v4  ;;  %v2760_v58 = vld [vmem:[#allocation33 + $0x28] sm:$0xff]  ;;  %v2935_v4 = vld [vmem:[#allocation33 + $0x180] sm:$0xff] }
 0x74d   :  { %2649 = vmatpush.msrb.mxu2 %v2632_v61  ;;  %2617 = vmatpush.msrb.mxu1 %v2583_v5  ;;  %v2848_v61 = vld [vmem:[#allocation33 + $0xe8] sm:$0xff]  ;;  %v2846_v5 = vld [vmem:[#allocation33 + $0xd8] sm:$0xff] }
 0x74f   :  { %2650 = vmatpush.msrb.mxu2 %v2631_v62  ;;  %v2936_v62 = vld [vmem:[#allocation33 + $0x188] sm:$0xff] }
 0x751   :  { %2651 = vmatpush.msrb.mxu2 %v2630_v39  ;;  %v2774_v39 = vld [vmem:[#allocation33 + $0x80] sm:$0xff] }
 0x753   :  { %2652 = vmatpush.msrb.mxu2 %v2629_v2  ;;  %v2773_v2 = vld [vmem:[#allocation33 + $0x78] sm:$0xff] }
 0x755   :  { %2653 = vmatpush.msrb.mxu2 %v2628_v3  ;;  %v2757_v3 = vld [vmem:[#allocation33 + $0x10] sm:$0xff] }
 0x7ad   :  { %v2243_v13 = vpop.f32.mrf.mxu2  ;;  %v2288_v14 = vpop.f32.mrf.mxu3 }
 0x7ae   :  { %v2300_v15 = vmax.f32 %v2243_v13, %v2288_v14 }
 0x7b0   :  { %v2304_v17 = vmax.f32 %v2300_v15, 0.0 }
 0x7b2   :  { %2308 = vst.msk [vmem:[#allocation4] sm:$0xff] %vm1636_vm5, %v2304_v17  ;;  %v3732_v17 = vld [vmem:[%s5287_s8] ss:$0 sm:$0xff] }
 0x7b5   :  { %v2246_v21 = vpop.f32.mrf.mxu2  ;;  %v2291_v22 = vpop.f32.mrf.mxu3 }
 0x7b6   :  { %v2301_v23 = vmax.f32 %v2246_v21, %v2291_v22 }
 0x7b8   :  { %v2305_v25 = vmax.f32 %v2301_v23, 0.0 }
 0x7b9   :  { %v2313_v26 = vld [vmem:[#allocation4] sm:$0xff] }
 0x7ba   :  { %2309 = vst.msk [vmem:[#allocation4 + $0x8] sm:$0xff] %vm1636_vm5, %v2305_v25  ;;  %3602 = vmatmul.msk.f32.vlgmr.msra.gmra.mxu1 %vm1636_vm5, %v2313_v26 }
 0x7bd   :  { %v2249_v28 = vpop.f32.mrf.mxu2  ;;  %v2294_v29 = vpop.f32.mrf.mxu3 }
 0x7be   :  { %v2302_v31 = vmax.f32 %v2249_v28, %v2294_v29 }
 0x7c0   :  { %v2306_v32 = vmax.f32 %v2302_v31, 0.0 }
 0x7c1   :  { %v2328_v34 = vld [vmem:[#allocation4 + $0x1] sm:$0xff] }
 0x7c2   :  { %v2414_v35 = vld [vmem:[#allocation4 + $0x2] sm:$0xff]  ;;  %2310 = vst.msk [vmem:[#allocation4 + $0x10] sm:$0xff] %vm1636_vm5, %v2306_v32  ;;  %3599 = vmatmul.msk.f32.vlgmr.msra.gmra.mxu0 %vm1636_vm5, %v2328_v34 }
 0x7c3   :  { %v2468_v27 = vld [vmem:[#allocation4 + $0x3] sm:$0xff]  ;;  %3605 = vmatmul.msk.f32.vlgmr.msra.gmra.mxu2 %vm1636_vm5, %v2414_v35 }
 0x7c4   :  { %v2314_v36 = vld [vmem:[#allocation4 + $0x8] sm:$0xff]  ;;  %3608 = vmatmul.msk.f32.vlgmr.msrb.gmra.mxu3 %vm1636_vm5, %v2468_v27  ;;  %2819 = vmatpush.msra.mxu2 %v2764_v54 }
 0x7c5   :  { %3603 = vmatmul.msk.f32.gmra.mxu1 %vm1636_vm5, %v2314_v36  ;;  %v2252_v37 = vpop.f32.mrf.mxu2  ;;  %v2297_v38 = vpop.f32.mrf.mxu3  ;;  %v2522_v48 = vld [vmem:[#allocation4 + $0x4] sm:$0xff] }
 0x7c6   :  { %v2303_v40 = vmax.f32 %v2252_v37, %v2297_v38  ;;  %2820 = vmatpush.msra.mxu2 %v2763_v56 }
 0x7c8   :  { %v2307_v41 = vmax.f32 %v2303_v40, 0.0  ;;  %2821 = vmatpush.msra.mxu2 %v2762_v51 }
 0x7c9   :  { %v2329_v42 = vld [vmem:[#allocation4 + $0x9] sm:$0xff] }
 0x7ca   :  { %v2415_v43 = vld [vmem:[#allocation4 + $0xa] sm:$0xff]  ;;  %2312 = vst.msk [vmem:[#allocation4 + $0x18] sm:$0xf] %vm2311_vm9, %v2307_v41  ;;  %3600 = vmatmul.msk.f32.gmra.mxu0 %vm1636_vm5, %v2329_v42  ;;  %2822 = vmatpush.msra.mxu2 %v2761_v57 }
 0x7cb   :  { %v2469_v44 = vld [vmem:[#allocation4 + $0xb] sm:$0xff]  ;;  %3606 = vmatmul.msk.f32.gmra.mxu2 %vm1636_vm5, %v2415_v43  ;;  %v2777_v43 = vld [vmem:[#allocation33 + $0x98] sm:$0xff] }
 0x7cc   :  { %v2315_v30 = vld [vmem:[#allocation4 + $0x10] sm:$0xff]  ;;  %3609 = vmatmul.msk.f32.gmra.mxu3 %vm1636_vm5, %v2469_v44  ;;  %2790 = vmatpush.msra.mxu1 %v2777_v43 }
 0x7cd   :  { %3604 = vmatmul.msk.f32.gmra.mxu1 %vm1636_vm5, %v2315_v30  ;;  %v2523_v49 = vld [vmem:[#allocation4 + $0xc] sm:$0xff]  ;;  %2823 = vmatpush.msra.mxu2 %v2760_v58 }
 0x7ce   :  { %2791 = vmatpush.msra.mxu1 %v2776_v59  ;;  %v2883_v43 = vld [vmem:[#allocation33 + $0xf0] sm:$0xff] }
 0x7cf   :  { %2824 = vmatpush.msra.mxu2 %v2759_v60 }
 0x7d0   :  { %2792 = vmatpush.msra.mxu1 %v2775_v63  ;;  %v2979_v63 = vld [vmem:[#allocation34 + $0x28] sm:$0xff] }
 0x7d1   :  { %v2330_v45 = vld [vmem:[#allocation4 + $0x11] sm:$0xff]  ;;  %2825 = vmatpush.msra.mxu2 %v2758_v1 }
 0x7d2   :  { %v2416_v46 = vld [vmem:[#allocation4 + $0x12] sm:$0xff]  ;;  %3601 = vmatmul.msk.f32.gmra.mxu0 %vm1636_vm5, %v2330_v45  ;;  %2793 = vmatpush.msra.mxu1 %v2774_v39 }
 0x7d3   :  { %v2470_v47 = vld [vmem:[#allocation4 + $0x13] sm:$0xff]  ;;  %3607 = vmatmul.msk.f32.gmra.mxu2 %vm1636_vm5, %v2416_v46 }
 0x7d4   :  { %3610 = vmatmul.msk.f32.gmra.mxu3 %vm1636_vm5, %v2470_v47  ;;  %v2524_v50 = vld [vmem:[#allocation4 + $0x14] sm:$0xff]  ;;  %2826 = vmatpush.msra.mxu2 %v2757_v3  ;;  %v2978_v1 = vld [vmem:[#allocation34 + $0x20] sm:$0xff]  ;;  %v2976_v3 = vld [vmem:[#allocation34 + $0x10] sm:$0xff] }
 0x7d5   :  { %2794 = vmatpush.msra.mxu1 %v2773_v2  ;;  %v3013_v39 = vld [vmem:[#allocation36 + $0x18] sm:$0xff]  ;;  %v3012_v2 = vld [vmem:[#allocation36 + $0x10] sm:$0xff] }
 0x7da   :  { %3611 = vmatmul.msk.f32.vlgmr.msrb.gmra.mxu0 %vm1636_vm5, %v2522_v48  ;;  %v2667_v48 = vld [vmem:[#allocation30] sm:$0xff] }
 0x7e2   :  { %3612 = vmatmul.msk.f32.gmra.mxu0 %vm1636_vm5, %v2523_v49  ;;  %v2706_v49 = vld [vmem:[#allocation31] sm:$0xff] }
 0x7ea   :  { %3613 = vmatmul.msk.f32.gmra.mxu0 %vm1636_vm5, %v2524_v50  ;;  %v2668_v50 = vld [vmem:[#allocation30 + $0x8] sm:$0xff] }
 0x837   :  { %v2405_v8 = vpop.f32.mrf.mxu1 }
 0x83f   :  { %v2370_v6 = vpop.f32.mrf.mxu0 }
 0x840   :  { %v2406_v11 = vadd.f32 %v2405_v8, %v2370_v6  ;;  %v2934_v6 = vld [vmem:[#allocation33 + $0x178] sm:$0xff]  ;;  %v2845_v8 = vld [vmem:[#allocation33 + $0xd0] sm:$0xff] }
 0x842   :  { %v2408_v14 = vpop.f32.mrf.mxu1 }
 0x846   :  { %v2456_v0 = vpop.f32.mrf.mxu2 }
 0x847   :  { %v2373_v7 = vpop.f32.mrf.mxu0  ;;  %v2510_v12 = vpop.f32.mrf.mxu3  ;;  %v2465_v13 = vadd.f32 %v2456_v0, %v2406_v11  ;;  %v2772_v0 = vld [vmem:[#allocation33 + $0x70] sm:$0xff] }
 0x848   :  { %v2409_v20 = vadd.f32 %v2408_v14, %v2373_v7  ;;  %v2756_v7 = vld [vmem:[#allocation33 + $0x8] sm:$0xff]  ;;  %v2933_v11 = vld [vmem:[#allocation33 + $0x170] sm:$0xff]  ;;  %2795 = vmatpush.msra.mxu1 %v2772_v0 }
 0x849   :  { %v2519_v16 = vadd.f32 %v2510_v12, %v2465_v13  ;;  %2827 = vmatpush.msra.mxu2 %v2756_v7  ;;  %v2844_v12 = vld [vmem:[#allocation33 + $0xc8] sm:$0xff]  ;;  %v2974_v7 = vld [vmem:[#allocation34] sm:$0xff] }
 0x84a   :  { %v2411_v25 = vpop.f32.mrf.mxu1  ;;  %v2771_v13 = vld [vmem:[#allocation33 + $0x68] sm:$0xff] }
 0x84b   :  { %v2932_v14 = vld [vmem:[#allocation33 + $0x168] sm:$0xff]  ;;  %2796 = vmatpush.msra.mxu1 %v2771_v13 }
 0x84e   :  { %v2459_v15 = vpop.f32.mrf.mxu2 }
 0x84f   :  { %v2376_v10 = vpop.f32.mrf.mxu0  ;;  %v2466_v22 = vadd.f32 %v2459_v15, %v2409_v20  ;;  %v2513_v23 = vpop.f32.mrf.mxu3  ;;  %v2770_v15 = vld [vmem:[#allocation33 + $0x60] sm:$0xff]  ;;  %v2930_v20 = vld [vmem:[#allocation33 + $0x158] sm:$0xff] }
 0x850   :  { %v2412_v29 = vadd.f32 %v2411_v25, %v2376_v10  ;;  %v2755_v10 = vld [vmem:[#allocation33] sm:$0xff]  ;;  %2797 = vmatpush.msra.mxu1 %v2770_v15  ;;  %v2840_v25 = vld [vmem:[#allocation33 + $0xa8] sm:$0xff] }
 0x851   :  { %v2520_v24 = vadd.f32 %v2513_v23, %v2466_v22  ;;  %2828 = vmatpush.msra.mxu2 %v2755_v10  ;;  %v2768_v22 = vld [vmem:[#allocation33 + $0x50] sm:$0xff] }
 0x852   :  { %v2929_v23 = vld [vmem:[#allocation33 + $0x150] sm:$0xff] }
 0x856   :  { %v2462_v26 = vpop.f32.mrf.mxu2 }
 0x857   :  { %v2564_v9 = vpop.f32.mrf.mxu0  ;;  %v2467_v32 = vadd.f32 %v2462_v26, %v2412_v29  ;;  %v2516_v34 = vpop.f32.mrf.mxu3  ;;  %v2890_v26 = vld [vmem:[#allocation33 + $0x128] sm:$0xff]  ;;  %v2839_v29 = vld [vmem:[#allocation33 + $0xa0] sm:$0xff] }
 0x858   :  { %v2573_v19 = vadd.f32 %v2564_v9, %v2519_v16  ;;  %v2843_v16 = vld [vmem:[#allocation33 + $0xc0] sm:$0xff] }
 0x859   :  { %v2521_v35 = vadd.f32 %v2516_v34, %v2467_v32  ;;  %v2931_v9 = vld [vmem:[#allocation33 + $0x160] sm:$0xff]  ;;  %v2888_v34 = vld [vmem:[#allocation33 + $0x118] sm:$0xff] }
 0x85a   :  { %v2580_v21 = vadd.f32 %v3732_v17, %v2573_v19  ;;  %v2842_v19 = vld [vmem:[#allocation33 + $0xb8] sm:$0xff]  ;;  %v2927_v32 = vld [vmem:[#allocation33 + $0x140] sm:$0xff] }
 0x85c   :  { %3617 = vmatmul.msk.f32.vlgmr.msrb.gmra.mxu2 %vm1272_vm3, %v2580_v21  ;;  %3614 = vmatmul.msk.f32.vlgmr.msrb.gmra.mxu1 %vm1272_vm3, %v2580_v21  ;;  %v2841_v21 = vld [vmem:[#allocation33 + $0xb0] sm:$0xff] }
 0x85d   :  { %3660 = vmatpush.msrb.mxu2 %v2936_v62 }
 0x85f   :  { %v2567_v18 = vpop.f32.mrf.mxu0  ;;  %3661 = vmatpush.msrb.mxu2 %v2935_v4 }
 0x860   :  { %v2574_v28 = vadd.f32 %v2567_v18, %v2520_v24  ;;  %v2892_v24 = vld [vmem:[#allocation33 + $0x138] sm:$0xff]  ;;  %v2891_v18 = vld [vmem:[#allocation33 + $0x130] sm:$0xff] }
 0x861   :  { %3662 = vmatpush.msrb.mxu2 %v2934_v6 }
 0x862   :  { %v2581_v31 = vadd.f32 %v3732_v17, %v2574_v28  ;;  %v2928_v28 = vld [vmem:[#allocation33 + $0x148] sm:$0xff] }
 0x863   :  { %3663 = vmatpush.msrb.mxu2 %v2933_v11 }
 0x864   :  { %3618 = vmatmul.msk.f32.gmra.mxu2 %vm1272_vm3, %v2581_v31  ;;  %3615 = vmatmul.msk.f32.gmra.mxu1 %vm1272_vm3, %v2581_v31  ;;  %v2889_v31 = vld [vmem:[#allocation33 + $0x120] sm:$0xff] }
 0x865   :  { %3664 = vmatpush.msrb.mxu2 %v2932_v14 }
 0x867   :  { %v2570_v27 = vpop.f32.mrf.mxu0  ;;  %3665 = vmatpush.msrb.mxu2 %v2931_v9 }
 0x868   :  { %v2575_v36 = vadd.f32 %v2570_v27, %v2521_v35  ;;  %v2887_v27 = vld [vmem:[#allocation33 + $0x110] sm:$0xff] }
 0x869   :  { %3666 = vmatpush.msrb.mxu2 %v2930_v20 }
 0x86a   :  { %v2582_v37 = vadd.f32 %v3732_v17, %v2575_v36  ;;  %v2769_v17 = vld [vmem:[#allocation33 + $0x58] sm:$0xff]  ;;  %v2886_v36 = vld [vmem:[#allocation33 + $0x108] sm:$0xff] }
 0x86b   :  { %2798 = vmatpush.msra.mxu1 %v2769_v17  ;;  %3667 = vmatpush.msrb.mxu2 %v2929_v23  ;;  %v3733_v17 = vld [vmem:[%s5288_s22] ss:$0 sm:$0xff] }
 0x86c   :  { %3619 = vmatmul.msk.f32.gmra.mxu2 %vm1272_vm3, %v2582_v37  ;;  %3616 = vmatmul.msk.f32.gmra.mxu1 %vm1272_vm3, %v2582_v37  ;;  %v2885_v37 = vld [vmem:[#allocation33 + $0x100] sm:$0xff] }
 0x86d   :  { %2799 = vmatpush.msra.mxu1 %v2768_v22  ;;  %3668 = vmatpush.msrb.mxu2 %v2928_v28 }
 0x86f   :  { %2905 = vmatpush.msrb.mxu1 %v2892_v24  ;;  %3669 = vmatpush.msrb.mxu2 %v2927_v32 }
 0x871   :  { %2906 = vmatpush.msrb.mxu1 %v2891_v18 }
 0x873   :  { %2907 = vmatpush.msrb.mxu1 %v2890_v26 }
 0x875   :  { %2908 = vmatpush.msrb.mxu1 %v2889_v31 }
 0x877   :  { %2909 = vmatpush.msrb.mxu1 %v2888_v34 }
 0x879   :  { %2910 = vmatpush.msrb.mxu1 %v2887_v27 }
 0x87b   :  { %2911 = vmatpush.msrb.mxu1 %v2886_v36  ;;  %v3073_v36 = vld [vmem:[#allocation39] sm:$0xff] }
 0x87d   :  { %2912 = vmatpush.msrb.mxu1 %v2885_v37  ;;  %v3041_v37 = vld [vmem:[#allocation37] sm:$0xff] }
 0x8d9   :  { %v2619_v38 = vpop.f32.mrf.mxu1 }
 0x8df   :  { %v2655_v40 = vpop.f32.mrf.mxu2 }
 0x8e0   :  { %v2664_v47 = vmax.f32 %v2619_v38, %v2655_v40 }
 0x8e1   :  { %v2622_v41 = vpop.f32.mrf.mxu1 }
 0x8e7   :  { %v2658_v42 = vpop.f32.mrf.mxu2 }
 0x8e8   :  { %v2665_v46 = vmax.f32 %v2622_v41, %v2658_v42  ;;  %v2884_v41 = vld [vmem:[#allocation33 + $0xf8] sm:$0xff] }
 0x8e9   :  { %v2625_v44 = vpop.f32.mrf.mxu1  ;;  %2913 = vmatpush.msrb.mxu1 %v2884_v41 }
 0x8eb   :  { %2914 = vmatpush.msrb.mxu1 %v2883_v43  ;;  %v3655_v43 = vld [vmem:[%s5289_s23 + $0x88] sm:$0xff] }
 0x8ef   :  { %v2661_v30 = vpop.f32.mrf.mxu2 }
 0x8f0   :  { %v2666_v45 = vmax.f32 %v2625_v44, %v2661_v30 }
 0x8f2   :  { %2693 = vmatpush.msra.mxu3 %v2666_v45  ;;  %2731 = vmatpush.msra.mxu0 %v2666_v45 }
 0x8f4   :  { %2694 = vmatpush.msra.mxu3 %v2665_v46  ;;  %2732 = vmatpush.msra.mxu0 %v2665_v46 }
 0x8f6   :  { %2695 = vmatpush.msra.mxu3 %v2664_v47  ;;  %2733 = vmatpush.msra.mxu0 %v2664_v47 }
 0x8f7   :  { %3620 = vmatmul.msk.f32.vlgmr.msra.gmra.mxu3 %vm2670_vm10, %v2667_v48  ;;  %3623 = vmatmul.msk.f32.vlgmr.msra.gmra.mxu0 %vm2670_vm10, %v2706_v49 }
 0x8f8   :  { %2861 = vmatpush.msrb.mxu3 %v2848_v61  ;;  %2949 = vmatpush.msrb.mxu0 %v2936_v62  ;;  %v3015_v61 = vld [vmem:[#allocation36 + $0x28] sm:$0xff]  ;;  %v3014_v62 = vld [vmem:[#allocation36 + $0x20] sm:$0xff] }
 0x8fa   :  { %2862 = vmatpush.msrb.mxu3 %v2847_v55  ;;  %2950 = vmatpush.msrb.mxu0 %v2935_v4  ;;  %v2977_v55 = vld [vmem:[#allocation34 + $0x18] sm:$0xff] }
 0x8fb   :  { %v3011_v4 = vld [vmem:[#allocation36 + $0x8] sm:$0xff] }
 0x8fc   :  { %2863 = vmatpush.msrb.mxu3 %v2846_v5  ;;  %2951 = vmatpush.msrb.mxu0 %v2934_v6  ;;  %v3010_v5 = vld [vmem:[#allocation36] sm:$0xff]  ;;  %v2975_v6 = vld [vmem:[#allocation34 + $0x8] sm:$0xff] }
 0x8fe   :  { %2864 = vmatpush.msrb.mxu3 %v2845_v8  ;;  %2952 = vmatpush.msrb.mxu0 %v2933_v11 }
 0x8ff   :  { %3621 = vmatmul.msk.f32.gmra.mxu3 %vm2670_vm10, %v2668_v50  ;;  %3624 = vmatmul.msk.f32.gmra.mxu0 %vm2670_vm10, %v2707_v52 }
 0x900   :  { %2865 = vmatpush.msrb.mxu3 %v2844_v12  ;;  %2953 = vmatpush.msrb.mxu0 %v2932_v14 }
 0x902   :  { %2866 = vmatpush.msrb.mxu3 %v2843_v16  ;;  %2954 = vmatpush.msrb.mxu0 %v2931_v9 }
 0x904   :  { %2867 = vmatpush.msrb.mxu3 %v2842_v19  ;;  %2955 = vmatpush.msrb.mxu0 %v2930_v20 }
 0x906   :  { %2868 = vmatpush.msrb.mxu3 %v2841_v21  ;;  %2956 = vmatpush.msrb.mxu0 %v2929_v23 }
 0x907   :  { %3622 = vmatmul.msk.f32.gmra.mxu3 %vm2670_vm10, %v2669_v53  ;;  %3625 = vmatmul.msk.f32.gmra.mxu0 %vm2670_vm10, %v2708_v33 }
 0x908   :  { %2869 = vmatpush.msrb.mxu3 %v2840_v25  ;;  %2957 = vmatpush.msrb.mxu0 %v2928_v28 }
 0x90a   :  { %2870 = vmatpush.msrb.mxu3 %v2839_v29  ;;  %2958 = vmatpush.msrb.mxu0 %v2927_v32 }
 0x90c   :  { %3026 = vmatpush.msra.mxu3 %v3015_v61  ;;  %2997 = vmatpush.msra.mxu0 %v2979_v63  ;;  %v3139_v61 = vld [vmem:[%s5289_s23 + $0x18] sm:$0xff]  ;;  %v3137_v63 = vld [vmem:[%s5289_s23 + $0x8] sm:$0xff] }
 0x90e   :  { %3027 = vmatpush.msra.mxu3 %v3014_v62  ;;  %2998 = vmatpush.msra.mxu0 %v2978_v1  ;;  %v3138_v62 = vld [vmem:[%s5289_s23 + $0x10] sm:$0xff]  ;;  %v3651_v1 = vld [vmem:[%s5289_s23 + $0x68] sm:$0xff] }
 0x910   :  { %3028 = vmatpush.msra.mxu3 %v3013_v39  ;;  %2999 = vmatpush.msra.mxu0 %v2977_v55  ;;  %v3650_v39 = vld [vmem:[%s5289_s23 + $0x60] sm:$0xff] }
 0x911   :  { %v3136_v55 = vld [vmem:[%s5289_s23] sm:$0xff] }
 0x912   :  { %3029 = vmatpush.msra.mxu3 %v3012_v2  ;;  %3000 = vmatpush.msra.mxu0 %v2976_v3  ;;  %v3649_v2 = vld [vmem:[%s5289_s23 + $0x58] sm:$0xff]  ;;  %v3648_v3 = vld [vmem:[%s5289_s23 + $0x50] sm:$0xff] }
 0x914   :  { %3030 = vmatpush.msra.mxu3 %v3011_v4  ;;  %3001 = vmatpush.msra.mxu0 %v2975_v6  ;;  %v3647_v4 = vld [vmem:[%s5289_s23 + $0x48] sm:$0xff] }
 0x915   :  { %v3243_v6 = vld [vmem:[#allocation40 + $0x58] sm:$0xff] }
 0x916   :  { %3031 = vmatpush.msra.mxu3 %v3010_v5  ;;  %3002 = vmatpush.msra.mxu0 %v2974_v7  ;;  %v3244_v5 = vld [vmem:[#allocation40 + $0x60] sm:$0xf]  ;;  %v3242_v7 = vld [vmem:[#allocation40 + $0x50] sm:$0xff] }
 0x974   :  { %v2735_v35 = vpop.f32.mrf.mxu0 }
 0x97a   :  { %v2697_v38 = vpop.f32.mrf.mxu3 }
 0x97b   :  { %v2744_v40 = vmax.f32 %v2697_v38, %v2735_v35  ;;  %v3074_v38 = vld [vmem:[#allocation39 + $0x8] sm:$0xff] }
 0x97c   :  { %v2738_v44 = vpop.f32.mrf.mxu0 }
 0x97d   :  { %v2747_v42 = vmax.f32 %v2744_v40, 0.0  ;;  %v3042_v40 = vld [vmem:[#allocation37 + $0x8] sm:$0xff] }
 0x97f   :  { %2750 = vst.msk [vmem:[#allocation5] sm:$0xff] %vm1272_vm3, %v2747_v42 }
 0x982   :  { %v2700_v30 = vpop.f32.mrf.mxu3 }
 0x983   :  { %v2745_v45 = vmax.f32 %v2700_v30, %v2738_v44  ;;  %v3654_v44 = vld [vmem:[%s5289_s23 + $0x80] sm:$0xff] }
 0x984   :  { %v2741_v48 = vpop.f32.mrf.mxu0 }
 0x985   :  { %v2748_v46 = vmax.f32 %v2745_v45, 0.0  ;;  %v3144_v45 = vld [vmem:[%s5289_s23 + $0x40] sm:$0xff] }
 0x986   :  { %v2753_v47 = vld [vmem:[#allocation5] sm:$0xff] }
 0x987   :  { %2751 = vst.msk [vmem:[#allocation5 + $0x8] sm:$0xff] %vm1272_vm3, %v2748_v46  ;;  %3628 = vmatmul.msk.f32.vlgmr.msra.gmra.mxu2 %vm1272_vm3, %v2753_v47  ;;  %v3653_v46 = vld [vmem:[%s5289_s23 + $0x78] sm:$0xff] }
 0x98a   :  { %v2703_v49 = vpop.f32.mrf.mxu3 }
 0x98b   :  { %v2746_v50 = vmax.f32 %v2703_v49, %v2741_v48  ;;  %v3652_v48 = vld [vmem:[%s5289_s23 + $0x70] sm:$0xff] }
 0x98d   :  { %v2749_v52 = vmax.f32 %v2746_v50, 0.0 }
 0x98e   :  { %v2765_v53 = vld [vmem:[#allocation5 + $0x1] sm:$0xff] }
 0x98f   :  { %v2836_v33 = vld [vmem:[#allocation5 + $0x2] sm:$0xff]  ;;  %2752 = vst.msk [vmem:[#allocation5 + $0x10] sm:$0xf] %vm1278_vm4, %v2749_v52  ;;  %3626 = vmatmul.msk.f32.vlgmr.msra.gmra.mxu1 %vm1272_vm3, %v2765_v53 }
 0x990   :  { %v2754_v54 = vld [vmem:[#allocation5 + $0x8] sm:$0xff]  ;;  %3630 = vmatmul.msk.f32.vlgmr.msrb.gmra.mxu3 %vm1272_vm3, %v2836_v33 }
 0x991   :  { %v2924_v56 = vld [vmem:[#allocation5 + $0x4] sm:$0xff]  ;;  %3629 = vmatmul.msk.f32.gmra.mxu2 %vm1272_vm3, %v2754_v54  ;;  %3190 = vmatpush.msrb.mxu3 %v3655_v43  ;;  %v3112_v54 = vld [vmem:[%s5290_s15] sm:$0x3] }
 0x992   :  { %3634 = vmatmul.msk.f32.vlgmr.msrb.gmra.mxu0 %vm1272_vm3, %v2924_v56  ;;  %v2880_v59 = vld [vmem:[#allocation5 + $0x3] sm:$0xff] }
 0x993   :  { %3191 = vmatpush.msrb.mxu3 %v3654_v44 }
 0x995   :  { %3192 = vmatpush.msrb.mxu3 %v3653_v46 }
 0x996   :  { %v2766_v51 = vld [vmem:[#allocation5 + $0x9] sm:$0xff] }
 0x997   :  { %v2837_v57 = vld [vmem:[#allocation5 + $0xa] sm:$0xff]  ;;  %3627 = vmatmul.msk.f32.gmra.mxu1 %vm1272_vm3, %v2766_v51  ;;  %3193 = vmatpush.msrb.mxu3 %v3652_v48  ;;  %v3645_v51 = vld [vmem:[%s5290_s15 + $0x2] sm:$0x3] }
 0x998   :  { %v2925_v58 = vld [vmem:[#allocation5 + $0xc] sm:$0xff]  ;;  %3631 = vmatmul.msk.f32.gmra.mxu3 %vm1272_vm3, %v2837_v57  ;;  %v3143_v57 = vld [vmem:[%s5289_s23 + $0x38] sm:$0xff] }
 0x999   :  { %3635 = vmatmul.msk.f32.vlgmr.msrb.gmra.mxu2 %vm1272_vm3, %v2925_v58  ;;  %v2881_v60 = vld [vmem:[#allocation5 + $0xb] sm:$0xff]  ;;  %3194 = vmatpush.msrb.mxu3 %v3651_v1 }
 0x99a   :  { %v3142_v58 = vld [vmem:[%s5289_s23 + $0x30] sm:$0xff] }
 0x99b   :  { %3195 = vmatpush.msrb.mxu3 %v3650_v39 }
 0x99d   :  { %3196 = vmatpush.msrb.mxu3 %v3649_v2 }
 0x99f   :  { %3632 = vmatmul.msk.f32.vlgmr.msrb.gmra.mxu1 %vm1272_vm3, %v2880_v59  ;;  %v3141_v59 = vld [vmem:[%s5289_s23 + $0x28] sm:$0xff]  ;;  %3197 = vmatpush.msrb.mxu3 %v3648_v3 }
 0x9a1   :  { %3198 = vmatpush.msrb.mxu3 %v3647_v4 }
 0x9a7   :  { %3633 = vmatmul.msk.f32.gmra.mxu1 %vm1272_vm3, %v2881_v60  ;;  %v3140_v60 = vld [vmem:[%s5289_s23 + $0x20] sm:$0xff] }
 0xa0a   :  { %v2830_v0 = vpop.f32.mrf.mxu2 }
 0xa0c   :  { %v2801_v8 = vpop.f32.mrf.mxu1 }
 0xa0d   :  { %v2831_v12 = vadd.f32 %v2830_v0, %v2801_v8  ;;  %v3241_v8 = vld [vmem:[#allocation40 + $0x48] sm:$0xff]  ;;  %v3240_v0 = vld [vmem:[#allocation40 + $0x40] sm:$0xff] }
 0xa0f   :  { %v2960_v9 = vpop.f32.mrf.mxu0 }
 0xa13   :  { %v2872_v11 = vpop.f32.mrf.mxu3 }
 0xa14   :  { %v2804_v10 = vpop.f32.mrf.mxu1  ;;  %v2878_v13 = vadd.f32 %v2872_v11, %v2831_v12  ;;  %v2833_v15 = vpop.f32.mrf.mxu2  ;;  %v3238_v11 = vld [vmem:[#allocation40 + $0x30] sm:$0xff]  ;;  %v3237_v12 = vld [vmem:[#allocation40 + $0x28] sm:$0xff] }
 0xa15   :  { %v2834_v21 = vadd.f32 %v2833_v15, %v2804_v10  ;;  %v3239_v10 = vld [vmem:[#allocation40 + $0x38] sm:$0xff] }
 0xa1b   :  { %v2875_v20 = vpop.f32.mrf.mxu3 }
 0xa1c   :  { %v2916_v14 = vpop.f32.mrf.mxu1  ;;  %v2879_v23 = vadd.f32 %v2875_v20, %v2834_v21  ;;  %v2963_v18 = vpop.f32.mrf.mxu2  ;;  %v3734_v20 = vld [vmem:[%s4540_s19] ss:$0 sm:$0xff]  ;;  %s4376_s19 = smov [#allocation42]  }
 0xa1d   :  { %v2922_v16 = vadd.f32 %v2916_v14, %v2878_v13  ;;  %v3236_v13 = vld [vmem:[#allocation40 + $0x20] sm:$0xff] }
 0xa1f   :  { %v2966_v19 = vadd.f32 %v2960_v9, %v2922_v16  ;;  %v3235_v16 = vld [vmem:[#allocation40 + $0x18] sm:$0xff]  ;;  %v3233_v9 = vld [vmem:[#allocation40 + $0x8] sm:$0xff] }
 0xa21   :  { %v2972_v22 = vadd.f32 %v3733_v17, %v2966_v19  ;;  %v3232_v19 = vld [vmem:[#allocation40] sm:$0xff] }
 0xa23   :  { %3638 = vmatmul.msk.f32.vlgmr.msra.gmra.mxu3 %vm2980_vm11, %v2972_v22  ;;  %3636 = vmatmul.msk.f32.vlgmr.msra.gmra.mxu0 %vm2980_vm11, %v2972_v22 }
 0xa24   :  { %v2919_v24 = vpop.f32.mrf.mxu1 }
 0xa25   :  { %v2923_v25 = vadd.f32 %v2919_v24, %v2879_v23 }
 0xa27   :  { %v2967_v26 = vadd.f32 %v2963_v18, %v2923_v25  ;;  %v3735_v18 = vld [vmem:[%s4550_s20] ss:$0 sm:$0xff]  ;;  %s3295_s20 = sshll.u32 %s4376_s19, 4  ;;  %s3296_s20 = int_to_ptr.vmem [resolvable:$true] %s3295_s20 }
 0xa29   :  { %v2973_v28 = vadd.f32 %v3733_v17, %v2967_v26  ;;  %v3234_v17 = vld [vmem:[#allocation40 + $0x10] sm:$0xff] }
 0xa2b   :  { %3639 = vmatmul.msk.f32.gmra.mxu3 %vm2980_vm11, %v2973_v28  ;;  %3637 = vmatmul.msk.f32.gmra.mxu0 %vm2980_vm11, %v2973_v28 }
 0xaa0   :  { %v3004_v29 = vpop.f32.mrf.mxu0 }
 0xaa6   :  { %v3033_v31 = vpop.f32.mrf.mxu3 }
 0xaa7   :  { %v3039_v27 = vmax.f32 %v3004_v29, %v3033_v31 }
 0xaa8   :  { %v3007_v32 = vpop.f32.mrf.mxu0 }
 0xaae   :  { %v3036_v34 = vpop.f32.mrf.mxu3 }
 0xaaf   :  { %v3040_v35 = vmax.f32 %v3007_v32, %v3036_v34 }
 0xab1   :  { %3064 = vmatpush.msra.mxu1 %v3040_v35  ;;  %3095 = vmatpush.msra.mxu2 %v3040_v35 }
 0xab3   :  { %3065 = vmatpush.msra.mxu1 %v3039_v27  ;;  %3096 = vmatpush.msra.mxu2 %v3039_v27 }
 0xab4   :  { %3642 = vmatmul.msk.f32.vlgmr.msra.gmra.mxu2 %vm3043_vm12, %v3073_v36  ;;  %3640 = vmatmul.msk.f32.vlgmr.msra.gmra.mxu1 %vm3043_vm12, %v3041_v37 }
 0xab5   :  { %3213 = vmatpush.msrb.mxu1 %v3144_v45  ;;  %3658 = vmatpush.msk.msrb.mxu2 %vm556_vm0, %v3244_v5 }
 0xab7   :  { %3214 = vmatpush.msrb.mxu1 %v3143_v57  ;;  %3260 = vmatpush.msrb.mxu2 %v3243_v6 }
 0xab9   :  { %3215 = vmatpush.msrb.mxu1 %v3142_v58  ;;  %3261 = vmatpush.msrb.mxu2 %v3242_v7 }
 0xabb   :  { %3216 = vmatpush.msrb.mxu1 %v3141_v59  ;;  %3262 = vmatpush.msrb.mxu2 %v3241_v8 }
 0xabc   :  { %3643 = vmatmul.msk.f32.gmra.mxu2 %vm3043_vm12, %v3074_v38  ;;  %3641 = vmatmul.msk.f32.gmra.mxu1 %vm3043_vm12, %v3042_v40 }
 0xabd   :  { %3217 = vmatpush.msrb.mxu1 %v3140_v60  ;;  %3263 = vmatpush.msrb.mxu2 %v3240_v0 }
 0xabf   :  { %3218 = vmatpush.msrb.mxu1 %v3139_v61  ;;  %3264 = vmatpush.msrb.mxu2 %v3239_v10 }
 0xac1   :  { %3219 = vmatpush.msrb.mxu1 %v3138_v62  ;;  %3265 = vmatpush.msrb.mxu2 %v3238_v11 }
 0xac3   :  { %3220 = vmatpush.msrb.mxu1 %v3137_v63  ;;  %3266 = vmatpush.msrb.mxu2 %v3237_v12 }
 0xac5   :  { %3221 = vmatpush.msrb.mxu1 %v3136_v55  ;;  %3267 = vmatpush.msrb.mxu2 %v3236_v13 }
 0xac7   :  { %3268 = vmatpush.msrb.mxu2 %v3235_v16 }
 0xac9   :  { %3269 = vmatpush.msrb.mxu2 %v3234_v17 }
 0xacb   :  { %3270 = vmatpush.msrb.mxu2 %v3233_v9 }
 0xacd   :  { %3271 = vmatpush.msrb.mxu2 %v3232_v19 }
 0xb31   :  { %v3067_v41 = vpop.f32.mrf.mxu1 }
 0xb37   :  { %v3098_v42 = vpop.f32.mrf.mxu2 }
 0xb38   :  { %v3104_v30 = vmax.f32 %v3067_v41, %v3098_v42 }
 0xb39   :  { %v3070_v49 = vpop.f32.mrf.mxu1 }
 0xb3a   :  { %v3106_v47 = vmax.f32 %v3104_v30, 0.0 }
 0xb3c   :  { %3108 = vst.msk [vmem:[#allocation6] sm:$0xff] %vm1147_vm2, %v3106_v47 }
 0xb3f   :  { %v3101_v50 = vpop.f32.mrf.mxu2 }
 0xb40   :  { %v3105_v52 = vmax.f32 %v3070_v49, %v3101_v50 }
 0xb42   :  { %v3107_v53 = vmax.f32 %v3105_v52, 0.0 }
 0xb43   :  { %v3110_v56 = vld [vmem:[#allocation6] sm:$0xff] }
 0xb44   :  { %3109 = vst.msk [vmem:[#allocation6 + $0x8] sm:$0xff] %vm1147_vm2, %v3107_v53 }
 0xb4b   :  { %v3111_v33 = vld [vmem:[#allocation6 + $0x8] sm:$0xff] }
 0xb4c   :  { %3130 = vmatpush.msrb.mxu0 %v3111_v33 }
 0xb4e   :  { %3131 = vmatpush.msrb.mxu0 %v3110_v56 }
 0xb4f   :  { %3644 = vmatmul.msk.f32.vlgmr.msrb.gmra.mxu0 %vm3043_vm12, %v3112_v54 }
 0xb50   :  { %3164 = vmatpush.msra.mxu0 %v3111_v33 }
 0xb52   :  { %3165 = vmatpush.msra.mxu0 %v3110_v56 }
 0xb57   :  { %3646 = vmatmul.msk.f32.vlgmr.msra.gmra.mxu0 %vm3043_vm12, %v3645_v51 }
 0xbcc   :  { %v3133_v14 = vpop.f32.mrf.mxu0 }
 0xbcd   :  { %3657 = vmatmul.msk.f32.vlgmr.msrb.gmra.mxu1 %vm1147_vm2, %v3133_v14 }
 0xbd4   :  { %v3167_v15 = vpop.f32.mrf.mxu0 }
 0xbd5   :  { %3656 = vmatmul.msk.f32.vlgmr.msrb.gmra.mxu3 %vm1147_vm2, %v3167_v15 }
 0xc4a   :  { %v3223_v22 = vpop.f32.mrf.mxu1 }
 0xc58   :  { %v3200_v21 = vpop.f32.mrf.mxu3 }
 0xc59   :  { %v3224_v23 = vadd.f32 %v3223_v22, %v3200_v21 }
 0xc5b   :  { %v3230_v24 = vadd.f32 %v3734_v20, %v3224_v23 }
 0xc5d   :  { %v3231_v25 = vmax.f32 %v3230_v24, 0.0 }
 0xc5f   :  { %3659 = vmatmul.msk.f32.vlgmr.msrb.gmra.mxu2 %vm3249_vm13, %v3231_v25 }
 0xce2   :  { %v3273_v26 = vpop.f32.mrf.mxu2 }
 0xce3   :  { %v3274_v28 = vadd.f32 %v3735_v18, %v3273_v26 }
 0xce5   :  { %v3277_v29 = vsel %vm3276_vm14, %v3274_v28, -inf }
 0xce6   :  { %3278 = vmax.xlane.f32.xlu0 %v3277_v29 }
 0xd59   :  { %v3279_v31 = vpop.xlane.xlu0 %3278 }
 0xd5a   :  { %v3280_v32 = vsub.f32 %v3274_v28, %v3279_v31 }
 0xd5c   :  { %v3281_v34 = vmul.f32 1.442695, %v3280_v32 }
 0xd5e   :  { %3736 = vpow2.f32 %v3281_v34 }
 0xd64   :  { %v3737_v35 = vpop.eup %3736 }
 0xd65   :  { %v3283_v27 = vsel %vm3276_vm14, %v3737_v35, 0.0 }
 0xd66   :  { %3284 = vadd.xlane.f32.xlu0 %v3283_v27 }
 0xdd9   :  { %v3285_v36 = vpop.xlane.xlu0 %3284 }
 0xdda   :  { %3738 = vlog2.f32 %v3285_v36 }
 0xde0   :  { %v3739_v37 = vpop.eup %3738 }
 0xde1   :  { %v3287_v38 = vmul.f32 0.6931472, %v3739_v37 }
 0xde3   :  { %v3288_v40 = vsub.f32 %v3280_v32, %v3287_v38 }
 0xde5   :  { %3289 = vst.msk [vmem:[#allocation42] sm:$0x3] %vm3276_vm14, %v3288_v40 }
 0xde6   :  { %4291 = shalt.err (!%p4288_p2)
}
 0xde7   :  { %3300 = dma.vmem_to_hbm [thread:$0]  %s3296_s20, 32, %s3298_s25, [#allocation9]  }
 0xde8   :  { %4316 = dma.done.wait [#allocation9], 32  }
 0xde9   :  { %4317 = vsyncadd [#allocation9], 4294967264 }
 0xdea   :  { %3305 = vsyncpa [#allocation8], 1 }
 0xdeb   :  { %3306 = vsyncpa [#allocation11], 1 }
 0xdec   :  { %3307 = vsyncpa [#allocation14], 1 }
 0xded   :  { %3308 = vsyncpa [#allocation17], 1 }
 0xdee   :  { %3309 = vsyncpa [#allocation20], 1 }
 0xdef   :  { %3310 = vsyncpa [#allocation23], 1 }
 0xdf0   :  { %3311 = vsyncpa [#allocation26], 1 }
 0xdf1   :  { %3312 = vsyncpa [#allocation29], 1 }
 0xdf2   :  { %3313 = vsyncpa [#allocation32], 1 }
 0xdf3   :  { %3314 = vsyncpa [#allocation35], 1 }
 0xdf4   :  { %3315 = vsyncpa [#allocation38], 1 }
 0xdf5   :  { %3316 = vsyncpa [#allocation41], 1 }
 0xdf6   :  { %3317 = vsyncpa [#allocation9], 1 }

</bundles_post_ra>
